<compile_context>
chip_gen: v5e
topology: v5e:2x2
jax: 0.10.0
libtpu: 0.0.40
codegen_flags: <defaults>
</compile_context>

<pallas_src>
import math
import functools

import jax
import jax.numpy as jnp
from jax import lax
from jax.experimental import pallas as pl
from jax.experimental.pallas import tpu as pltpu

_CDT = jnp.bfloat16          # MXU operand dtype; accumulation is always f32
_VMEM_LIMIT = 64 * 1024 * 1024


# --------------------------------------------------------------------------
# helpers
# --------------------------------------------------------------------------

def _fit_tile(dim, cap, align):
    """Largest tile <= cap that divides `dim` and is `align`-aligned, else full dim."""
    t = min(dim, cap)
    if t == dim:
        return dim
    t = (t // align) * align
    while t >= align:
        if dim % t == 0:
            return t
        t -= align
    return dim


# --------------------------------------------------------------------------
# kernel 1: embedding Linear (sqrt(d_model) folded into weights) + pos. enc.
#   row-tiled over the flattened (B*S) axis.
# --------------------------------------------------------------------------

def _embed_pe_kernel(x_ref, w_ref, b_ref, pe_ref, o_ref):
    y = jnp.dot(x_ref[...].astype(_CDT), w_ref[...],
                preferred_element_type=jnp.float32)
    o_ref[...] = y + b_ref[...] + pe_ref[...]


def embed_pos_encode(x2d, w, b, pe2d, *, row_cap=512):
    M, Din = x2d.shape
    D = w.shape[1]
    tr = _fit_tile(M, row_cap, 8)
    return pl.pallas_call(
        _embed_pe_kernel,
        out_shape=jax.ShapeDtypeStruct((M, D), jnp.float32),
        grid=(M // tr,),
        in_specs=[
            pl.BlockSpec((tr, Din), lambda i: (i, 0)),
            pl.BlockSpec((Din, D), lambda i: (0, 0)),
            pl.BlockSpec((1, D), lambda i: (0, 0)),
            pl.BlockSpec((tr, D), lambda i: (i, 0)),
        ],
        out_specs=pl.BlockSpec((tr, D), lambda i: (i, 0)),
        compiler_params=pltpu.CompilerParams(
            dimension_semantics=("parallel",),
            vmem_limit_bytes=_VMEM_LIMIT),
    )(x2d, w, b, pe2d)


# --------------------------------------------------------------------------
# fused MHA sub-layer core: LayerNorm(xq + MHA(xq, xkv, xkv))
#   * wq (D,D) already contains the 1/sqrt(dh) scale
#   * wkv (D,2D) is the fused K/V projection
#   * per-head work uses static lane slices of the flat projections; the
#     per-head contexts are concatenated back to (Sq,D) for one out-proj dot.
# --------------------------------------------------------------------------

def _mha_ln_core(xq, xkv, wq, bq, wkv, bkv, wo, bo, g, beta, num_heads, eps):
    Sq, D = xq.shape
    H = num_heads
    dh = D // H

    q = jnp.dot(xq.astype(_CDT), wq, preferred_element_type=jnp.float32) + bq
    kvp = jnp.dot(xkv.astype(_CDT), wkv, preferred_element_type=jnp.float32) + bkv
    k = kvp[:, :D]
    v = kvp[:, D:]

    cols = []
    for h in range(H):
        lo, hi = h * dh, (h + 1) * dh
        qh = q[:, lo:hi].astype(_CDT)
        kh = k[:, lo:hi].astype(_CDT)
        vh = v[:, lo:hi].astype(_CDT)
        # scores: contract the head dim of both operands (no explicit k.T)
        s = lax.dot_general(qh, kh, (((1,), (1,)), ((), ())),
                            preferred_element_type=jnp.float32)
        s = s - jnp.max(s, axis=-1, keepdims=True)
        p = jnp.exp(s)
        p = p / jnp.sum(p, axis=-1, keepdims=True)   # exact softmax
        cols.append(jnp.dot(p.astype(_CDT), vh,
                            preferred_element_type=jnp.float32))
    ctx = jnp.concatenate(cols, axis=-1)             # (Sq, D)

    attn = jnp.dot(ctx.astype(_CDT), wo,
                   preferred_element_type=jnp.float32) + bo

    # residual + LayerNorm (eps matches PyTorch default)
    y = xq + attn
    mu = jnp.mean(y, axis=-1, keepdims=True)
    yc = y - mu
    var = jnp.mean(yc * yc, axis=-1, keepdims=True)
    return yc * lax.rsqrt(var + eps) * g + beta


def _self_mha_ln_kernel(x_ref, wq_ref, bq_ref, wkv_ref, bkv_ref, wo_ref,
                        bo_ref, g_ref, beta_ref, o_ref, *, num_heads, eps):
    x = x_ref[0]
    o_ref[0] = _mha_ln_core(x, x, wq_ref[...], bq_ref[...], wkv_ref[...],
                            bkv_ref[...], wo_ref[...], bo_ref[...],
                            g_ref[...], beta_ref[...], num_heads, eps)


def _cross_mha_ln_kernel(x_ref, mem_ref, wq_ref, bq_ref, wkv_ref, bkv_ref,
                         wo_ref, bo_ref, g_ref, beta_ref, o_ref, *,
                         num_heads, eps):
    o_ref[0] = _mha_ln_core(x_ref[0], mem_ref[0], wq_ref[...], bq_ref[...],
                            wkv_ref[...], bkv_ref[...], wo_ref[...],
                            bo_ref[...], g_ref[...], beta_ref[...],
                            num_heads, eps)


def _attn_weight_specs(D):
    return [
        pl.BlockSpec((D, D), lambda *a: (0, 0)),        # wq
        pl.BlockSpec((1, D), lambda *a: (0, 0)),        # bq
        pl.BlockSpec((D, 2 * D), lambda *a: (0, 0)),    # wkv
        pl.BlockSpec((1, 2 * D), lambda *a: (0, 0)),    # bkv
        pl.BlockSpec((D, D), lambda *a: (0, 0)),        # wo
        pl.BlockSpec((1, D), lambda *a: (0, 0)),        # bo
        pl.BlockSpec((1, D), lambda *a: (0, 0)),        # ln gamma
        pl.BlockSpec((1, D), lambda *a: (0, 0)),        # ln beta
    ]


def self_mha_ln(x, ap, gamma, beta, num_heads):
    """LayerNorm(x + SelfMHA(x)) -- x is DMA'd once (query == key/value)."""
    B, S, D = x.shape
    kernel = functools.partial(_self_mha_ln_kernel, num_heads=num_heads,
                               eps=1e-5)
    return pl.pallas_call(
        kernel,
        out_shape=jax.ShapeDtypeStruct((B, S, D), jnp.float32),
        grid=(B,),
        in_specs=[pl.BlockSpec((1, S, D), lambda b: (b, 0, 0))]
                 + _attn_weight_specs(D),
        out_specs=pl.BlockSpec((1, S, D), lambda b: (b, 0, 0)),
        compiler_params=pltpu.CompilerParams(
            dimension_semantics=("parallel",),
            vmem_limit_bytes=_VMEM_LIMIT),
    )(x, ap["wq"], ap["bq"], ap["wkv"], ap["bkv"], ap["wo"], ap["bo"],
      gamma, beta)


def cross_mha_ln(x, mem, ap, gamma, beta, num_heads, *, tq_cap=512):
    """LayerNorm(x + MHA(x, mem, mem)) with a query-tile grid axis."""
    B, Sq, D = x.shape
    Sk = mem.shape[1]
    tq = _fit_tile(Sq, tq_cap, 8)
    kernel = functools.partial(_cross_mha_ln_kernel, num_heads=num_heads,
                               eps=1e-5)
    return pl.pallas_call(
        kernel,
        out_shape=jax.ShapeDtypeStruct((B, Sq, D), jnp.float32),
        grid=(B, Sq // tq),
        in_specs=[pl.BlockSpec((1, tq, D), lambda b, q: (b, q, 0)),
                  pl.BlockSpec((1, Sk, D), lambda b, q: (b, 0, 0))]
                 + _attn_weight_specs(D),
        out_specs=pl.BlockSpec((1, tq, D), lambda b, q: (b, q, 0)),
        compiler_params=pltpu.CompilerParams(
            dimension_semantics=("parallel", "parallel"),
            vmem_limit_bytes=_VMEM_LIMIT),
    )(x, mem, ap["wq"], ap["bq"], ap["wkv"], ap["bkv"], ap["wo"], ap["bo"],
      gamma, beta)


# --------------------------------------------------------------------------
# fused FFN sub-layer = LayerNorm(x + W2(relu(W1 x + b1)) + b2)
#   row-tiled over the flattened (B*S, D) slab; the (tile, 4D) hidden never
#   touches HBM.
# --------------------------------------------------------------------------

def _ffn_ln_kernel(x_ref, w1_ref, b1_ref, w2_ref, b2_ref, g_ref, beta_ref,
                   o_ref, *, eps):
    x = x_ref[...]
    h = jnp.dot(x.astype(_CDT), w1_ref[...],
                preferred_element_type=jnp.float32) + b1_ref[...]
    h = jnp.maximum(h, 0.0)
    f = jnp.dot(h.astype(_CDT), w2_ref[...],
                preferred_element_type=jnp.float32) + b2_ref[...]
    y = x + f
    mu = jnp.mean(y, axis=-1, keepdims=True)
    yc = y - mu
    var = jnp.mean(yc * yc, axis=-1, keepdims=True)
    o_ref[...] = yc * lax.rsqrt(var + eps) * g_ref[...] + beta_ref[...]


def ffn_ln(x, w1, b1, w2, b2, gamma, beta, *, row_cap=512):
    B, S, D = x.shape
    Dh = w1.shape[1]
    M = B * S
    tr = _fit_tile(M, row_cap, 8)
    out = pl.pallas_call(
        functools.partial(_ffn_ln_kernel, eps=1e-5),
        out_shape=jax.ShapeDtypeStruct((M, D), jnp.float32),
        grid=(M // tr,),
        in_specs=[
            pl.BlockSpec((tr, D), lambda i: (i, 0)),
            pl.BlockSpec((D, Dh), lambda i: (0, 0)),
            pl.BlockSpec((1, Dh), lambda i: (0, 0)),
            pl.BlockSpec((Dh, D), lambda i: (0, 0)),
            pl.BlockSpec((1, D), lambda i: (0, 0)),
            pl.BlockSpec((1, D), lambda i: (0, 0)),
            pl.BlockSpec((1, D), lambda i: (0, 0)),
        ],
        out_specs=pl.BlockSpec((tr, D), lambda i: (i, 0)),
        compiler_params=pltpu.CompilerParams(
            dimension_semantics=("parallel",),
            vmem_limit_bytes=_VMEM_LIMIT),
    )(x.reshape(M, D), w1, b1, w2, b2, gamma, beta)
    return out.reshape(B, S, D)


# --------------------------------------------------------------------------
# tiled Linear (final output projection): grid (M/tm, N/tn, K/tk), K last,
# f32 VMEM accumulator, pl.when init/finalize.
# --------------------------------------------------------------------------

def _matmul_kernel(x_ref, w_ref, b_ref, o_ref, acc_ref):
    @pl.when(pl.program_id(2) == 0)
    def _():
        acc_ref[...] = jnp.zeros_like(acc_ref)

    acc_ref[...] += jnp.dot(x_ref[...].astype(_CDT), w_ref[...],
                            preferred_element_type=jnp.float32)

    @pl.when(pl.program_id(2) == pl.num_programs(2) - 1)
    def _():
        o_ref[...] = (acc_ref[...] + b_ref[...]).astype(o_ref.dtype)


def linear(x, w, b, *, tm_cap=512, tn_cap=256, tk_cap=512):
    """x: (M, K) @ w: (K, N) + b -> (M, N); w stored (Din, Dout) in bf16."""
    M, K = x.shape
    N = w.shape[1]
    tm = _fit_tile(M, tm_cap, 8)
    tn = _fit_tile(N, tn_cap, 128)
    tk = _fit_tile(K, tk_cap, 128)
    return pl.pallas_call(
        _matmul_kernel,
        out_shape=jax.ShapeDtypeStruct((M, N), jnp.float32),
        grid=(M // tm, N // tn, K // tk),
        in_specs=[
            pl.BlockSpec((tm, tk), lambda i, j, k: (i, k)),
            pl.BlockSpec((tk, tn), lambda i, j, k: (k, j)),
            pl.BlockSpec((1, tn), lambda i, j, k: (0, j)),
        ],
        out_specs=pl.BlockSpec((tm, tn), lambda i, j, k: (i, j)),
        scratch_shapes=[pltpu.VMEM((tm, tn), jnp.float32)],
        compiler_params=pltpu.CompilerParams(
            dimension_semantics=("parallel", "parallel", "arbitrary"),
            vmem_limit_bytes=_VMEM_LIMIT),
    )(x, w, b.reshape(1, N))


# --------------------------------------------------------------------------
# model glue (all inside one jit)
# --------------------------------------------------------------------------

def positional_encoding(seq_len, d_model):
    pos = jnp.arange(seq_len, dtype=jnp.float32)[:, None]
    div = jnp.exp(jnp.arange(0, d_model, 2, dtype=jnp.float32)
                  * (-math.log(10000.0) / d_model))
    pe = jnp.zeros((seq_len, d_model), dtype=jnp.float32)
    pe = pe.at[:, 0::2].set(jnp.sin(pos * div))
    pe = pe.at[:, 1::2].set(jnp.cos(pos * div))
    return pe  # (S, D), broadcast over batch (matches pe[:S, :] in PyTorch)


def transformer_decoder_forward(tgt, memory, params, *, num_heads):
    S, B, D = tgt.shape
    # (S, B, D) -> (B, S, D) once; all per-layer kernels work batch-major.
    x = jnp.transpose(tgt, (1, 0, 2))
    mem = jnp.transpose(memory, (1, 0, 2))

    pe = positional_encoding(S, D)
    pe_rows = jnp.broadcast_to(pe[None], (B, S, D)).reshape(B * S, D)
    x = embed_pos_encode(x.reshape(B * S, D), params["emb_w"],
                         params["emb_b"], pe_rows).reshape(B, S, D)

    for lp in params["layers"]:
        x = self_mha_ln(x, lp["self_attn"], lp["norm1_w"], lp["norm1_b"],
                        num_heads)
        x = cross_mha_ln(x, mem, lp["cross_attn"], lp["norm2_w"],
                         lp["norm2_b"], num_heads)
        x = ffn_ln(x, lp["lin1_w"], lp["lin1_b"], lp["lin2_w"], lp["lin2_b"],
                   lp["norm3_w"], lp["norm3_b"])

    out = linear(x.reshape(B * S, D), params["out_w"], params["out_b"])
    return out.reshape(B, S, -1).transpose(1, 0, 2)   # back to (S, B, out)


# --------------------------------------------------------------------------
# parameters: generated in PyTorch layout, converted ONCE to kernel layout
# --------------------------------------------------------------------------

def init_torch_layout_params(key, d_model, num_layers, output_dim):
    keys = iter(jax.random.split(key, 4 + 12 * num_layers))

    def W(shape, scale=0.05):
        return (scale * jax.random.normal(next(keys), shape)).astype(jnp.float32)

    D = d_model
    params = {
        "emb_w": W((D, D)), "emb_b": W((D,)),              # nn.Linear(D, D)
        "out_w": W((output_dim, D)), "out_b": W((output_dim,)),
        "layers": [],
    }
    for _ in range(num_layers):
        params["layers"].append({
            "self_attn": {"in_w": W((3 * D, D)), "in_b": W((3 * D,)),
                          "out_w": W((D, D)), "out_b": W((D,))},
            "cross_attn": {"in_w": W((3 * D, D)), "in_b": W((3 * D,)),
                           "out_w": W((D, D)), "out_b": W((D,))},
            "lin1_w": W((4 * D, D)), "lin1_b": W((4 * D,)),
            "lin2_w": W((D, 4 * D)), "lin2_b": W((D,)),
            "norm1_w": jnp.ones((D,), jnp.float32), "norm1_b": jnp.zeros((D,), jnp.float32),
            "norm2_w": jnp.ones((D,), jnp.float32), "norm2_b": jnp.zeros((D,), jnp.float32),
            "norm3_w": jnp.ones((D,), jnp.float32), "norm3_b": jnp.zeros((D,), jnp.float32),
        })
    return params


def prepare_params(tp, d_model, num_heads):
    """One-time conversion: transpose to (Din, Dout), fold sqrt(d_model) into
    the embedding weights, fold 1/sqrt(dh) into wq/bq, fuse K/V projections,
    and store matmul weights in bf16 (biases / LN params stay f32)."""
    D = d_model
    dh = D // num_heads
    emb_s = math.sqrt(D)
    qk_s = 1.0 / math.sqrt(dh)

    def attn(p):
        w_in, b_in = p["in_w"], p["in_b"]                    # (3D, D), (3D,)
        wq = (w_in[:D].T * qk_s).astype(_CDT)                # (D, D), scaled
        bq = (b_in[:D] * qk_s).reshape(1, D)
        wkv = jnp.concatenate([w_in[D:2 * D].T, w_in[2 * D:].T],
                              axis=1).astype(_CDT)           # (D, 2D)
        bkv = jnp.concatenate([b_in[D:2 * D], b_in[2 * D:]]).reshape(1, 2 * D)
        wo = p["out_w"].T.astype(_CDT)                       # (D, D)
        bo = p["out_b"].reshape(1, D)
        return dict(wq=wq, bq=bq, wkv=wkv, bkv=bkv, wo=wo, bo=bo)

    out = {
        "emb_w": (tp["emb_w"].T * emb_s).astype(_CDT),
        "emb_b": (tp["emb_b"] * emb_s).reshape(1, D),
        "out_w": tp["out_w"].T.astype(_CDT),
        "out_b": tp["out_b"],
        "layers": [],
    }
    for lp in tp["layers"]:
        out["layers"].append(dict(
            self_attn=attn(lp["self_attn"]),
            cross_attn=attn(lp["cross_attn"]),
            lin1_w=lp["lin1_w"].T.astype(_CDT), lin1_b=lp["lin1_b"].reshape(1, -1),
            lin2_w=lp["lin2_w"].T.astype(_CDT), lin2_b=lp["lin2_b"].reshape(1, -1),
            norm1_w=lp["norm1_w"].reshape(1, D), norm1_b=lp["norm1_b"].reshape(1, D),
            norm2_w=lp["norm2_w"].reshape(1, D), norm2_b=lp["norm2_b"].reshape(1, D),
            norm3_w=lp["norm3_w"].reshape(1, D), norm3_b=lp["norm3_b"].reshape(1, D),
        ))
    return out


# --------------------------------------------------------------------------
# main
# --------------------------------------------------------------------------

if __name__ == "__main__":
    # Small shapes consistent with the module: (seq, batch, d_model) inputs.
    S, B, D = 8, 2, 32
    num_heads = 4
    num_layers = 2
    output_dim = D   # decoder maps back to input_dim == d_model

    key = jax.random.PRNGKey(0)
    k_tgt, k_mem, k_par = jax.random.split(key, 3)
    tgt = jax.random.normal(k_tgt, (S, B, D), dtype=jnp.float32)
    memory = jax.random.normal(k_mem, (S, B, D), dtype=jnp.float32)

    torch_params = init_torch_layout_params(k_par, D, num_layers, output_dim)
    params = prepare_params(torch_params, D, num_heads)

    forward = jax.jit(transformer_decoder_forward, static_argnames=("num_heads",))
    out = forward(tgt, memory, params, num_heads=num_heads)
    out = jax.block_until_ready(out)
    assert out.shape == (S, B, output_dim)
    assert bool(jnp.all(jnp.isfinite(out)))
    print("KERNEL_OK")
</pallas_src>

<mosaic_0001>
module attributes {stable_mosaic.version = 11 : i64} {
  func.func @_embed_pe_kernel(%arg0: i32, %arg1: memref<16x32xf32, #tpu.memory_space<vmem>>, %arg2: memref<32x32xbf16, #tpu.memory_space<vmem>>, %arg3: memref<1x32xf32, #tpu.memory_space<vmem>>, %arg4: memref<16x32xf32, #tpu.memory_space<vmem>>, %arg5: memref<16x32xf32, #tpu.memory_space<vmem>>) attributes {dimension_semantics = [#tpu.dimension_semantics<parallel>], iteration_bounds = array<i64: 1>, scalar_prefetch = 0 : i64, scratch_operands = 0 : i64, tpu.core_type = #tpu.core_type<tc>, window_params = [{transform_indices = @transform_0, window_bounds = array<i64: 16, 32>}, {pipeline_mode = #tpu.pipeline_mode<synchronous>, transform_indices = @transform_1, window_bounds = array<i64: 32, 32>}, {pipeline_mode = #tpu.pipeline_mode<synchronous>, transform_indices = @transform_2, window_bounds = array<i64: 1, 32>}, {transform_indices = @transform_3, window_bounds = array<i64: 16, 32>}, {transform_indices = @transform_4, window_bounds = array<i64: 16, 32>}]} {
    %c0 = arith.constant 0 : index
    %c0_0 = arith.constant 0 : index
    %0 = vector.load %arg1[%c0, %c0_0] : memref<16x32xf32, #tpu.memory_space<vmem>>, vector<16x32xf32>
    %1 = arith.truncf %0 : vector<16x32xf32> to vector<16x32xbf16>
    %c0_1 = arith.constant 0 : index
    %c0_2 = arith.constant 0 : index
    %2 = vector.load %arg2[%c0_1, %c0_2] : memref<32x32xbf16, #tpu.memory_space<vmem>>, vector<32x32xbf16>
    %cst = arith.constant dense<0.000000e+00> : vector<16x32xf32>
    %3 = tpu.matmul %1, %2, %cst {dimension_numbers = #tpu.dot_dimension_numbers<[1], [0], [0], [1], [0, 0, 1, 1], [], []>} : vector<16x32xbf16>, vector<32x32xbf16>, vector<16x32xf32> -> vector<16x32xf32>
    %c0_3 = arith.constant 0 : index
    %c0_4 = arith.constant 0 : index
    %4 = vector.load %arg3[%c0_3, %c0_4] : memref<1x32xf32, #tpu.memory_space<vmem>>, vector<1x32xf32>
    %5 = vector.broadcast %4 : vector<1x32xf32> to vector<16x32xf32>
    %6 = arith.addf %3, %5 : vector<16x32xf32>
    %c0_5 = arith.constant 0 : index
    %c0_6 = arith.constant 0 : index
    %7 = vector.load %arg4[%c0_5, %c0_6] : memref<16x32xf32, #tpu.memory_space<vmem>>, vector<16x32xf32>
    %8 = arith.addf %6, %7 : vector<16x32xf32>
    %c0_7 = arith.constant 0 : index
    %c0_8 = arith.constant 0 : index
    %9 = vector.load %arg5[%c0_7, %c0_8] : memref<16x32xf32, #tpu.memory_space<vmem>>, vector<16x32xf32>
    tpu.vector_store %arg5[%c0_7, %c0_8], %8 {strides = array<i32>} : memref<16x32xf32, #tpu.memory_space<vmem>>, vector<16x32xf32>,
    return
  }
  func.func @transform_0(%arg0: i32) -> (i32, i32) {
    %c0_i32 = arith.constant 0 : i32
    %c0_i32_0 = arith.constant 0 : i32
    return %arg0, %c0_i32 : i32, i32
  }
  func.func @transform_1(%arg0: i32) -> (i32, i32) {
    %c0_i32 = arith.constant 0 : i32
    %c0_i32_0 = arith.constant 0 : i32
    %c0_i32_1 = arith.constant 0 : i32
    return %c0_i32, %c0_i32_0 : i32, i32
  }
  func.func @transform_2(%arg0: i32) -> (i32, i32) {
    %c0_i32 = arith.constant 0 : i32
    %c0_i32_0 = arith.constant 0 : i32
    %c0_i32_1 = arith.constant 0 : i32
    return %c0_i32, %c0_i32_0 : i32, i32
  }
  func.func @transform_3(%arg0: i32) -> (i32, i32) {
    %c0_i32 = arith.constant 0 : i32
    %c0_i32_0 = arith.constant 0 : i32
    return %arg0, %c0_i32 : i32, i32
  }
  func.func @transform_4(%arg0: i32) -> (i32, i32) {
    %c0_i32 = arith.constant 0 : i32
    %c0_i32_0 = arith.constant 0 : i32
    return %arg0, %c0_i32 : i32, i32
  }
}

module attributes {stable_mosaic.version = 11 : i64} {
  func.func @_self_mha_ln_kernel(%arg0: i32, %arg1: memref<1x8x32xf32, #tpu.memory_space<vmem>>, %arg2: memref<32x32xbf16, #tpu.memory_space<vmem>>, %arg3: memref<1x32xf32, #tpu.memory_space<vmem>>, %arg4: memref<32x64xbf16, #tpu.memory_space<vmem>>, %arg5: memref<1x64xf32, #tpu.memory_space<vmem>>, %arg6: memref<32x32xbf16, #tpu.memory_space<vmem>>, %arg7: memref<1x32xf32, #tpu.memory_space<vmem>>, %arg8: memref<1x32xf32, #tpu.memory_space<vmem>>, %arg9: memref<1x32xf32, #tpu.memory_space<vmem>>, %arg10: memref<1x8x32xf32, #tpu.memory_space<vmem>>) attributes {dimension_semantics = [#tpu.dimension_semantics<parallel>], iteration_bounds = array<i64: 2>, scalar_prefetch = 0 : i64, scratch_operands = 0 : i64, tpu.core_type = #tpu.core_type<tc>, window_params = [{transform_indices = @transform_0, window_bounds = array<i64: 1, 8, 32>}, {pipeline_mode = #tpu.pipeline_mode<synchronous>, transform_indices = @transform_1, window_bounds = array<i64: 32, 32>}, {pipeline_mode = #tpu.pipeline_mode<synchronous>, transform_indices = @transform_2, window_bounds = array<i64: 1, 32>}, {pipeline_mode = #tpu.pipeline_mode<synchronous>, transform_indices = @transform_3, window_bounds = array<i64: 32, 64>}, {pipeline_mode = #tpu.pipeline_mode<synchronous>, transform_indices = @transform_4, window_bounds = array<i64: 1, 64>}, {pipeline_mode = #tpu.pipeline_mode<synchronous>, transform_indices = @transform_5, window_bounds = array<i64: 32, 32>}, {pipeline_mode = #tpu.pipeline_mode<synchronous>, transform_indices = @transform_6, window_bounds = array<i64: 1, 32>}, {pipeline_mode = #tpu.pipeline_mode<synchronous>, transform_indices = @transform_7, window_bounds = array<i64: 1, 32>}, {pipeline_mode = #tpu.pipeline_mode<synchronous>, transform_indices = @transform_8, window_bounds = array<i64: 1, 32>}, {transform_indices = @transform_9, window_bounds = array<i64: 1, 8, 32>}]} {
    %c0 = arith.constant 0 : index
    %c0_0 = arith.constant 0 : index
    %c0_1 = arith.constant 0 : index
    %0 = vector.load %arg1[%c0, %c0_0, %c0_1] : memref<1x8x32xf32, #tpu.memory_space<vmem>>, vector<1x8x32xf32>
    %1 = vector.shape_cast %0 : vector<1x8x32xf32> to vector<8x32xf32>
    %c0_2 = arith.constant 0 : index
    %c0_3 = arith.constant 0 : index
    %2 = vector.load %arg2[%c0_2, %c0_3] : memref<32x32xbf16, #tpu.memory_space<vmem>>, vector<32x32xbf16>
    %c0_4 = arith.constant 0 : index
    %c0_5 = arith.constant 0 : index
    %3 = vector.load %arg3[%c0_4, %c0_5] : memref<1x32xf32, #tpu.memory_space<vmem>>, vector<1x32xf32>
    %c0_6 = arith.constant 0 : index
    %c0_7 = arith.constant 0 : index
    %4 = vector.load %arg4[%c0_6, %c0_7] : memref<32x64xbf16, #tpu.memory_space<vmem>>, vector<32x64xbf16>
    %c0_8 = arith.constant 0 : index
    %c0_9 = arith.constant 0 : index
    %5 = vector.load %arg5[%c0_8, %c0_9] : memref<1x64xf32, #tpu.memory_space<vmem>>, vector<1x64xf32>
    %c0_10 = arith.constant 0 : index
    %c0_11 = arith.constant 0 : index
    %6 = vector.load %arg6[%c0_10, %c0_11] : memref<32x32xbf16, #tpu.memory_space<vmem>>, vector<32x32xbf16>
    %c0_12 = arith.constant 0 : index
    %c0_13 = arith.constant 0 : index
    %7 = vector.load %arg7[%c0_12, %c0_13] : memref<1x32xf32, #tpu.memory_space<vmem>>, vector<1x32xf32>
    %c0_14 = arith.constant 0 : index
    %c0_15 = arith.constant 0 : index
    %8 = vector.load %arg8[%c0_14, %c0_15] : memref<1x32xf32, #tpu.memory_space<vmem>>, vector<1x32xf32>
    %c0_16 = arith.constant 0 : index
    %c0_17 = arith.constant 0 : index
    %9 = vector.load %arg9[%c0_16, %c0_17] : memref<1x32xf32, #tpu.memory_space<vmem>>, vector<1x32xf32>
    %10 = arith.truncf %1 : vector<8x32xf32> to vector<8x32xbf16>
    %cst = arith.constant dense<0.000000e+00> : vector<8x32xf32>
    %11 = tpu.matmul %10, %2, %cst {dimension_numbers = #tpu.dot_dimension_numbers<[1], [0], [0], [1], [0, 0, 1, 1], [], []>} : vector<8x32xbf16>, vector<32x32xbf16>, vector<8x32xf32> -> vector<8x32xf32>
    %12 = vector.broadcast %3 : vector<1x32xf32> to vector<8x32xf32>
    %13 = arith.addf %11, %12 : vector<8x32xf32>
    %14 = arith.truncf %1 : vector<8x32xf32> to vector<8x32xbf16>
    %cst_18 = arith.constant dense<0.000000e+00> : vector<8x64xf32>
    %15 = tpu.matmul %14, %4, %cst_18 {dimension_numbers = #tpu.dot_dimension_numbers<[1], [0], [0], [1], [0, 0, 1, 1], [], []>} : vector<8x32xbf16>, vector<32x64xbf16>, vector<8x64xf32> -> vector<8x64xf32>
    %16 = vector.broadcast %5 : vector<1x64xf32> to vector<8x64xf32>
    %17 = arith.addf %15, %16 : vector<8x64xf32>
    %18 = vector.extract_strided_slice %17 {offsets = [0, 0], sizes = [8, 32], strides = [1, 1]} : vector<8x64xf32> to vector<8x32xf32>
    %19 = vector.extract_strided_slice %17 {offsets = [0, 32], sizes = [8, 32], strides = [1, 1]} : vector<8x64xf32> to vector<8x32xf32>
    %20 = vector.extract_strided_slice %13 {offsets = [0, 0], sizes = [8, 8], strides = [1, 1]} : vector<8x32xf32> to vector<8x8xf32>
    %21 = arith.truncf %20 : vector<8x8xf32> to vector<8x8xbf16>
    %22 = vector.extract_strided_slice %18 {offsets = [0, 0], sizes = [8, 8], strides = [1, 1]} : vector<8x32xf32> to vector<8x8xf32>
    %23 = arith.truncf %22 : vector<8x8xf32> to vector<8x8xbf16>
    %24 = vector.extract_strided_slice %19 {offsets = [0, 0], sizes = [8, 8], strides = [1, 1]} : vector<8x32xf32> to vector<8x8xf32>
    %25 = arith.truncf %24 : vector<8x8xf32> to vector<8x8xbf16>
    %cst_19 = arith.constant dense<0.000000e+00> : vector<8x8xf32>
    %26 = tpu.matmul %21, %23, %cst_19 {dimension_numbers = #tpu.dot_dimension_numbers<[1], [1], [0], [0], [0, 0, 1, 0], [], []>} : vector<8x8xbf16>, vector<8x8xbf16>, vector<8x8xf32> -> vector<8x8xf32>
    %cst_20 = arith.constant dense<0xFF800000> : vector<8xf32>
    %27 = vector.multi_reduction <maximumf>, %26, %cst_20 [1] : vector<8x8xf32> to vector<8xf32>
    %28 = vector.shape_cast %27 : vector<8xf32> to vector<8x1xf32>
    %29 = vector.broadcast %28 : vector<8x1xf32> to vector<8x8xf32>
    %30 = arith.subf %26, %29 : vector<8x8xf32>
    %31 = math.exp %30 : vector<8x8xf32>
    %cst_21 = arith.constant dense<0.000000e+00> : vector<8xf32>
    %32 = vector.multi_reduction <add>, %31, %cst_21 [1] : vector<8x8xf32> to vector<8xf32>
    %33 = vector.shape_cast %32 : vector<8xf32> to vector<8x1xf32>
    %34 = vector.broadcast %33 : vector<8x1xf32> to vector<8x8xf32>
    %35 = arith.divf %31, %34 : vector<8x8xf32>
    %36 = arith.truncf %35 : vector<8x8xf32> to vector<8x8xbf16>
    %cst_22 = arith.constant dense<0.000000e+00> : vector<8x8xf32>
    %37 = tpu.matmul %36, %25, %cst_22 {dimension_numbers = #tpu.dot_dimension_numbers<[1], [0], [0], [1], [0, 0, 1, 1], [], []>} : vector<8x8xbf16>, vector<8x8xbf16>, vector<8x8xf32> -> vector<8x8xf32>
    %38 = vector.extract_strided_slice %13 {offsets = [0, 8], sizes = [8, 8], strides = [1, 1]} : vector<8x32xf32> to vector<8x8xf32>
    %39 = arith.truncf %38 : vector<8x8xf32> to vector<8x8xbf16>
    %40 = vector.extract_strided_slice %18 {offsets = [0, 8], sizes = [8, 8], strides = [1, 1]} : vector<8x32xf32> to vector<8x8xf32>
    %41 = arith.truncf %40 : vector<8x8xf32> to vector<8x8xbf16>
    %42 = vector.extract_strided_slice %19 {offsets = [0, 8], sizes = [8, 8], strides = [1, 1]} : vector<8x32xf32> to vector<8x8xf32>
    %43 = arith.truncf %42 : vector<8x8xf32> to vector<8x8xbf16>
    %cst_23 = arith.constant dense<0.000000e+00> : vector<8x8xf32>
    %44 = tpu.matmul %39, %41, %cst_23 {dimension_numbers = #tpu.dot_dimension_numbers<[1], [1], [0], [0], [0, 0, 1, 0], [], []>} : vector<8x8xbf16>, vector<8x8xbf16>, vector<8x8xf32> -> vector<8x8xf32>
    %cst_24 = arith.constant dense<0xFF800000> : vector<8xf32>
    %45 = vector.multi_reduction <maximumf>, %44, %cst_24 [1] : vector<8x8xf32> to vector<8xf32>
    %46 = vector.shape_cast %45 : vector<8xf32> to vector<8x1xf32>
    %47 = vector.broadcast %46 : vector<8x1xf32> to vector<8x8xf32>
    %48 = arith.subf %44, %47 : vector<8x8xf32>
    %49 = math.exp %48 : vector<8x8xf32>
    %cst_25 = arith.constant dense<0.000000e+00> : vector<8xf32>
    %50 = vector.multi_reduction <add>, %49, %cst_25 [1] : vector<8x8xf32> to vector<8xf32>
    %51 = vector.shape_cast %50 : vector<8xf32> to vector<8x1xf32>
    %52 = vector.broadcast %51 : vector<8x1xf32> to vector<8x8xf32>
    %53 = arith.divf %49, %52 : vector<8x8xf32>
    %54 = arith.truncf %53 : vector<8x8xf32> to vector<8x8xbf16>
    %cst_26 = arith.constant dense<0.000000e+00> : vector<8x8xf32>
    %55 = tpu.matmul %54, %43, %cst_26 {dimension_numbers = #tpu.dot_dimension_numbers<[1], [0], [0], [1], [0, 0, 1, 1], [], []>} : vector<8x8xbf16>, vector<8x8xbf16>, vector<8x8xf32> -> vector<8x8xf32>
    %56 = vector.extract_strided_slice %13 {offsets = [0, 16], sizes = [8, 8], strides = [1, 1]} : vector<8x32xf32> to vector<8x8xf32>
    %57 = arith.truncf %56 : vector<8x8xf32> to vector<8x8xbf16>
    %58 = vector.extract_strided_slice %18 {offsets = [0, 16], sizes = [8, 8], strides = [1, 1]} : vector<8x32xf32> to vector<8x8xf32>
    %59 = arith.truncf %58 : vector<8x8xf32> to vector<8x8xbf16>
    %60 = vector.extract_strided_slice %19 {offsets = [0, 16], sizes = [8, 8], strides = [1, 1]} : vector<8x32xf32> to vector<8x8xf32>
    %61 = arith.truncf %60 : vector<8x8xf32> to vector<8x8xbf16>
    %cst_27 = arith.constant dense<0.000000e+00> : vector<8x8xf32>
    %62 = tpu.matmul %57, %59, %cst_27 {dimension_numbers = #tpu.dot_dimension_numbers<[1], [1], [0], [0], [0, 0, 1, 0], [], []>} : vector<8x8xbf16>, vector<8x8xbf16>, vector<8x8xf32> -> vector<8x8xf32>
    %cst_28 = arith.constant dense<0xFF800000> : vector<8xf32>
    %63 = vector.multi_reduction <maximumf>, %62, %cst_28 [1] : vector<8x8xf32> to vector<8xf32>
    %64 = vector.shape_cast %63 : vector<8xf32> to vector<8x1xf32>
    %65 = vector.broadcast %64 : vector<8x1xf32> to vector<8x8xf32>
    %66 = arith.subf %62, %65 : vector<8x8xf32>
    %67 = math.exp %66 : vector<8x8xf32>
    %cst_29 = arith.constant dense<0.000000e+00> : vector<8xf32>
    %68 = vector.multi_reduction <add>, %67, %cst_29 [1] : vector<8x8xf32> to vector<8xf32>
    %69 = vector.shape_cast %68 : vector<8xf32> to vector<8x1xf32>
    %70 = vector.broadcast %69 : vector<8x1xf32> to vector<8x8xf32>
    %71 = arith.divf %67, %70 : vector<8x8xf32>
    %72 = arith.truncf %71 : vector<8x8xf32> to vector<8x8xbf16>
    %cst_30 = arith.constant dense<0.000000e+00> : vector<8x8xf32>
    %73 = tpu.matmul %72, %61, %cst_30 {dimension_numbers = #tpu.dot_dimension_numbers<[1], [0], [0], [1], [0, 0, 1, 1], [], []>} : vector<8x8xbf16>, vector<8x8xbf16>, vector<8x8xf32> -> vector<8x8xf32>
    %74 = vector.extract_strided_slice %13 {offsets = [0, 24], sizes = [8, 8], strides = [1, 1]} : vector<8x32xf32> to vector<8x8xf32>
    %75 = arith.truncf %74 : vector<8x8xf32> to vector<8x8xbf16>
    %76 = vector.extract_strided_slice %18 {offsets = [0, 24], sizes = [8, 8], strides = [1, 1]} : vector<8x32xf32> to vector<8x8xf32>
    %77 = arith.truncf %76 : vector<8x8xf32> to vector<8x8xbf16>
    %78 = vector.extract_strided_slice %19 {offsets = [0, 24], sizes = [8, 8], strides = [1, 1]} : vector<8x32xf32> to vector<8x8xf32>
    %79 = arith.truncf %78 : vector<8x8xf32> to vector<8x8xbf16>
    %cst_31 = arith.constant dense<0.000000e+00> : vector<8x8xf32>
    %80 = tpu.matmul %75, %77, %cst_31 {dimension_numbers = #tpu.dot_dimension_numbers<[1], [1], [0], [0], [0, 0, 1, 0], [], []>} : vector<8x8xbf16>, vector<8x8xbf16>, vector<8x8xf32> -> vector<8x8xf32>
    %cst_32 = arith.constant dense<0xFF800000> : vector<8xf32>
    %81 = vector.multi_reduction <maximumf>, %80, %cst_32 [1] : vector<8x8xf32> to vector<8xf32>
    %82 = vector.shape_cast %81 : vector<8xf32> to vector<8x1xf32>
    %83 = vector.broadcast %82 : vector<8x1xf32> to vector<8x8xf32>
    %84 = arith.subf %80, %83 : vector<8x8xf32>
    %85 = math.exp %84 : vector<8x8xf32>
    %cst_33 = arith.constant dense<0.000000e+00> : vector<8xf32>
    %86 = vector.multi_reduction <add>, %85, %cst_33 [1] : vector<8x8xf32> to vector<8xf32>
    %87 = vector.shape_cast %86 : vector<8xf32> to vector<8x1xf32>
    %88 = vector.broadcast %87 : vector<8x1xf32> to vector<8x8xf32>
    %89 = arith.divf %85, %88 : vector<8x8xf32>
    %90 = arith.truncf %89 : vector<8x8xf32> to vector<8x8xbf16>
    %cst_34 = arith.constant dense<0.000000e+00> : vector<8x8xf32>
    %91 = tpu.matmul %90, %79, %cst_34 {dimension_numbers = #tpu.dot_dimension_numbers<[1], [0], [0], [1], [0, 0, 1, 1], [], []>} : vector<8x8xbf16>, vector<8x8xbf16>, vector<8x8xf32> -> vector<8x8xf32>
    %92 = tpu.concatenate %37, %55, %73, %91 in 1 : vector<8x8xf32>, vector<8x8xf32>, vector<8x8xf32>, vector<8x8xf32> -> vector<8x32xf32>
    %93 = arith.truncf %92 : vector<8x32xf32> to vector<8x32xbf16>
    %cst_35 = arith.constant dense<0.000000e+00> : vector<8x32xf32>
    %94 = tpu.matmul %93, %6, %cst_35 {dimension_numbers = #tpu.dot_dimension_numbers<[1], [0], [0], [1], [0, 0, 1, 1], [], []>} : vector<8x32xbf16>, vector<32x32xbf16>, vector<8x32xf32> -> vector<8x32xf32>
    %95 = vector.broadcast %7 : vector<1x32xf32> to vector<8x32xf32>
    %96 = arith.addf %94, %95 : vector<8x32xf32>
    %97 = arith.addf %1, %96 : vector<8x32xf32>
    %cst_36 = arith.constant dense<0.000000e+00> : vector<8xf32>
    %98 = vector.multi_reduction <add>, %97, %cst_36 [1] : vector<8x32xf32> to vector<8xf32>
    %99 = vector.shape_cast %98 : vector<8xf32> to vector<8x1xf32>
    %cst_37 = arith.constant 3.200000e+01 : f32
    %100 = vector.broadcast %cst_37 : f32 to vector<8x1xf32>
    %101 = arith.divf %99, %100 : vector<8x1xf32>
    %102 = vector.broadcast %101 : vector<8x1xf32> to vector<8x32xf32>
    %103 = arith.subf %97, %102 : vector<8x32xf32>
    %104 = arith.mulf %103, %103 : vector<8x32xf32>
    %cst_38 = arith.constant dense<0.000000e+00> : vector<8xf32>
    %105 = vector.multi_reduction <add>, %104, %cst_38 [1] : vector<8x32xf32> to vector<8xf32>
    %106 = vector.shape_cast %105 : vector<8xf32> to vector<8x1xf32>
    %cst_39 = arith.constant 3.200000e+01 : f32
    %107 = vector.broadcast %cst_39 : f32 to vector<8x1xf32>
    %108 = arith.divf %106, %107 : vector<8x1xf32>
    %cst_40 = arith.constant 9.99999974E-6 : f32
    %109 = vector.broadcast %cst_40 : f32 to vector<8x1xf32>
    %110 = arith.addf %108, %109 : vector<8x1xf32>
    %111 = math.rsqrt %110 : vector<8x1xf32>
    %112 = vector.broadcast %111 : vector<8x1xf32> to vector<8x32xf32>
    %113 = arith.mulf %103, %112 : vector<8x32xf32>
    %114 = vector.broadcast %8 : vector<1x32xf32> to vector<8x32xf32>
    %115 = arith.mulf %113, %114 : vector<8x32xf32>
    %116 = vector.broadcast %9 : vector<1x32xf32> to vector<8x32xf32>
    %117 = arith.addf %115, %116 : vector<8x32xf32>
    %c0_41 = arith.constant 0 : index
    %c0_42 = arith.constant 0 : index
    %c0_43 = arith.constant 0 : index
    %118 = vector.load %arg10[%c0_41, %c0_42, %c0_43] : memref<1x8x32xf32, #tpu.memory_space<vmem>>, vector<1x8x32xf32>
    %119 = vector.shape_cast %118 : vector<1x8x32xf32> to vector<8x32xf32>
    %120 = vector.shape_cast %117 : vector<8x32xf32> to vector<1x8x32xf32>
    tpu.vector_store %arg10[%c0_41, %c0_42, %c0_43], %120 {strides = array<i32>} : memref<1x8x32xf32, #tpu.memory_space<vmem>>, vector<1x8x32xf32>,
    return
  }
  func.func @transform_0(%arg0: i32) -> (i32, i32, i32) {
    %c0_i32 = arith.constant 0 : i32
    %c0_i32_0 = arith.constant 0 : i32
    %c0_i32_1 = arith.constant 0 : i32
    return %arg0, %c0_i32, %c0_i32_0 : i32, i32, i32
  }
  func.func @transform_1(%arg0: i32) -> (i32, i32) {
    %c0_i32 = arith.constant 0 : i32
    %c0_i32_0 = arith.constant 0 : i32
    %c0_i32_1 = arith.constant 0 : i32
    return %c0_i32, %c0_i32_0 : i32, i32
  }
  func.func @transform_2(%arg0: i32) -> (i32, i32) {
    %c0_i32 = arith.constant 0 : i32
    %c0_i32_0 = arith.constant 0 : i32
    %c0_i32_1 = arith.constant 0 : i32
    return %c0_i32, %c0_i32_0 : i32, i32
  }
  func.func @transform_3(%arg0: i32) -> (i32, i32) {
    %c0_i32 = arith.constant 0 : i32
    %c0_i32_0 = arith.constant 0 : i32
    %c0_i32_1 = arith.constant 0 : i32
    return %c0_i32, %c0_i32_0 : i32, i32
  }
  func.func @transform_4(%arg0: i32) -> (i32, i32) {
    %c0_i32 = arith.constant 0 : i32
    %c0_i32_0 = arith.constant 0 : i32
    %c0_i32_1 = arith.constant 0 : i32
    return %c0_i32, %c0_i32_0 : i32, i32
  }
  func.func @transform_5(%arg0: i32) -> (i32, i32) {
    %c0_i32 = arith.constant 0 : i32
    %c0_i32_0 = arith.constant 0 : i32
    %c0_i32_1 = arith.constant 0 : i32
    return %c0_i32, %c0_i32_0 : i32, i32
  }
  func.func @transform_6(%arg0: i32) -> (i32, i32) {
    %c0_i32 = arith.constant 0 : i32
    %c0_i32_0 = arith.constant 0 : i32
    %c0_i32_1 = arith.constant 0 : i32
    return %c0_i32, %c0_i32_0 : i32, i32
  }
  func.func @transform_7(%arg0: i32) -> (i32, i32) {
    %c0_i32 = arith.constant 0 : i32
    %c0_i32_0 = arith.constant 0 : i32
    %c0_i32_1 = arith.constant 0 : i32
    return %c0_i32, %c0_i32_0 : i32, i32
  }
  func.func @transform_8(%arg0: i32) -> (i32, i32) {
    %c0_i32 = arith.constant 0 : i32
    %c0_i32_0 = arith.constant 0 : i32
    %c0_i32_1 = arith.constant 0 : i32
    return %c0_i32, %c0_i32_0 : i32, i32
  }
  func.func @transform_9(%arg0: i32) -> (i32, i32, i32) {
    %c0_i32 = arith.constant 0 : i32
    %c0_i32_0 = arith.constant 0 : i32
    %c0_i32_1 = arith.constant 0 : i32
    return %arg0, %c0_i32, %c0_i32_0 : i32, i32, i32
  }
}

module attributes {stable_mosaic.version = 11 : i64} {
  func.func @_cross_mha_ln_kernel(%arg0: i32, %arg1: i32, %arg2: memref<1x8x32xf32, #tpu.memory_space<vmem>>, %arg3: memref<1x8x32xf32, #tpu.memory_space<vmem>>, %arg4: memref<32x32xbf16, #tpu.memory_space<vmem>>, %arg5: memref<1x32xf32, #tpu.memory_space<vmem>>, %arg6: memref<32x64xbf16, #tpu.memory_space<vmem>>, %arg7: memref<1x64xf32, #tpu.memory_space<vmem>>, %arg8: memref<32x32xbf16, #tpu.memory_space<vmem>>, %arg9: memref<1x32xf32, #tpu.memory_space<vmem>>, %arg10: memref<1x32xf32, #tpu.memory_space<vmem>>, %arg11: memref<1x32xf32, #tpu.memory_space<vmem>>, %arg12: memref<1x8x32xf32, #tpu.memory_space<vmem>>) attributes {dimension_semantics = [#tpu.dimension_semantics<parallel>, #tpu.dimension_semantics<parallel>], iteration_bounds = array<i64: 2, 1>, scalar_prefetch = 0 : i64, scratch_operands = 0 : i64, tpu.core_type = #tpu.core_type<tc>, window_params = [{transform_indices = @transform_0, window_bounds = array<i64: 1, 8, 32>}, {transform_indices = @transform_1, window_bounds = array<i64: 1, 8, 32>}, {pipeline_mode = #tpu.pipeline_mode<synchronous>, transform_indices = @transform_2, window_bounds = array<i64: 32, 32>}, {pipeline_mode = #tpu.pipeline_mode<synchronous>, transform_indices = @transform_3, window_bounds = array<i64: 1, 32>}, {pipeline_mode = #tpu.pipeline_mode<synchronous>, transform_indices = @transform_4, window_bounds = array<i64: 32, 64>}, {pipeline_mode = #tpu.pipeline_mode<synchronous>, transform_indices = @transform_5, window_bounds = array<i64: 1, 64>}, {pipeline_mode = #tpu.pipeline_mode<synchronous>, transform_indices = @transform_6, window_bounds = array<i64: 32, 32>}, {pipeline_mode = #tpu.pipeline_mode<synchronous>, transform_indices = @transform_7, window_bounds = array<i64: 1, 32>}, {pipeline_mode = #tpu.pipeline_mode<synchronous>, transform_indices = @transform_8, window_bounds = array<i64: 1, 32>}, {pipeline_mode = #tpu.pipeline_mode<synchronous>, transform_indices = @transform_9, window_bounds = array<i64: 1, 32>}, {transform_indices = @transform_10, window_bounds = array<i64: 1, 8, 32>}]} {
    %c0 = arith.constant 0 : index
    %c0_0 = arith.constant 0 : index
    %c0_1 = arith.constant 0 : index
    %0 = vector.load %arg2[%c0, %c0_0, %c0_1] : memref<1x8x32xf32, #tpu.memory_space<vmem>>, vector<1x8x32xf32>
    %1 = vector.shape_cast %0 : vector<1x8x32xf32> to vector<8x32xf32>
    %c0_2 = arith.constant 0 : index
    %c0_3 = arith.constant 0 : index
    %c0_4 = arith.constant 0 : index
    %2 = vector.load %arg3[%c0_2, %c0_3, %c0_4] : memref<1x8x32xf32, #tpu.memory_space<vmem>>, vector<1x8x32xf32>
    %3 = vector.shape_cast %2 : vector<1x8x32xf32> to vector<8x32xf32>
    %c0_5 = arith.constant 0 : index
    %c0_6 = arith.constant 0 : index
    %4 = vector.load %arg4[%c0_5, %c0_6] : memref<32x32xbf16, #tpu.memory_space<vmem>>, vector<32x32xbf16>
    %c0_7 = arith.constant 0 : index
    %c0_8 = arith.constant 0 : index
    %5 = vector.load %arg5[%c0_7, %c0_8] : memref<1x32xf32, #tpu.memory_space<vmem>>, vector<1x32xf32>
    %c0_9 = arith.constant 0 : index
    %c0_10 = arith.constant 0 : index
    %6 = vector.load %arg6[%c0_9, %c0_10] : memref<32x64xbf16, #tpu.memory_space<vmem>>, vector<32x64xbf16>
    %c0_11 = arith.constant 0 : index
    %c0_12 = arith.constant 0 : index
    %7 = vector.load %arg7[%c0_11, %c0_12] : memref<1x64xf32, #tpu.memory_space<vmem>>, vector<1x64xf32>
    %c0_13 = arith.constant 0 : index
    %c0_14 = arith.constant 0 : index
    %8 = vector.load %arg8[%c0_13, %c0_14] : memref<32x32xbf16, #tpu.memory_space<vmem>>, vector<32x32xbf16>
    %c0_15 = arith.constant 0 : index
    %c0_16 = arith.constant 0 : index
    %9 = vector.load %arg9[%c0_15, %c0_16] : memref<1x32xf32, #tpu.memory_space<vmem>>, vector<1x32xf32>
    %c0_17 = arith.constant 0 : index
    %c0_18 = arith.constant 0 : index
    %10 = vector.load %arg10[%c0_17, %c0_18] : memref<1x32xf32, #tpu.memory_space<vmem>>, vector<1x32xf32>
    %c0_19 = arith.constant 0 : index
    %c0_20 = arith.constant 0 : index
    %11 = vector.load %arg11[%c0_19, %c0_20] : memref<1x32xf32, #tpu.memory_space<vmem>>, vector<1x32xf32>
    %12 = arith.truncf %1 : vector<8x32xf32> to vector<8x32xbf16>
    %cst = arith.constant dense<0.000000e+00> : vector<8x32xf32>
    %13 = tpu.matmul %12, %4, %cst {dimension_numbers = #tpu.dot_dimension_numbers<[1], [0], [0], [1], [0, 0, 1, 1], [], []>} : vector<8x32xbf16>, vector<32x32xbf16>, vector<8x32xf32> -> vector<8x32xf32>
    %14 = vector.broadcast %5 : vector<1x32xf32> to vector<8x32xf32>
    %15 = arith.addf %13, %14 : vector<8x32xf32>
    %16 = arith.truncf %3 : vector<8x32xf32> to vector<8x32xbf16>
    %cst_21 = arith.constant dense<0.000000e+00> : vector<8x64xf32>
    %17 = tpu.matmul %16, %6, %cst_21 {dimension_numbers = #tpu.dot_dimension_numbers<[1], [0], [0], [1], [0, 0, 1, 1], [], []>} : vector<8x32xbf16>, vector<32x64xbf16>, vector<8x64xf32> -> vector<8x64xf32>
    %18 = vector.broadcast %7 : vector<1x64xf32> to vector<8x64xf32>
    %19 = arith.addf %17, %18 : vector<8x64xf32>
    %20 = vector.extract_strided_slice %19 {offsets = [0, 0], sizes = [8, 32], strides = [1, 1]} : vector<8x64xf32> to vector<8x32xf32>
    %21 = vector.extract_strided_slice %19 {offsets = [0, 32], sizes = [8, 32], strides = [1, 1]} : vector<8x64xf32> to vector<8x32xf32>
    %22 = vector.extract_strided_slice %15 {offsets = [0, 0], sizes = [8, 8], strides = [1, 1]} : vector<8x32xf32> to vector<8x8xf32>
    %23 = arith.truncf %22 : vector<8x8xf32> to vector<8x8xbf16>
    %24 = vector.extract_strided_slice %20 {offsets = [0, 0], sizes = [8, 8], strides = [1, 1]} : vector<8x32xf32> to vector<8x8xf32>
    %25 = arith.truncf %24 : vector<8x8xf32> to vector<8x8xbf16>
    %26 = vector.extract_strided_slice %21 {offsets = [0, 0], sizes = [8, 8], strides = [1, 1]} : vector<8x32xf32> to vector<8x8xf32>
    %27 = arith.truncf %26 : vector<8x8xf32> to vector<8x8xbf16>
    %cst_22 = arith.constant dense<0.000000e+00> : vector<8x8xf32>
    %28 = tpu.matmul %23, %25, %cst_22 {dimension_numbers = #tpu.dot_dimension_numbers<[1], [1], [0], [0], [0, 0, 1, 0], [], []>} : vector<8x8xbf16>, vector<8x8xbf16>, vector<8x8xf32> -> vector<8x8xf32>
    %cst_23 = arith.constant dense<0xFF800000> : vector<8xf32>
    %29 = vector.multi_reduction <maximumf>, %28, %cst_23 [1] : vector<8x8xf32> to vector<8xf32>
    %30 = vector.shape_cast %29 : vector<8xf32> to vector<8x1xf32>
    %31 = vector.broadcast %30 : vector<8x1xf32> to vector<8x8xf32>
    %32 = arith.subf %28, %31 : vector<8x8xf32>
    %33 = math.exp %32 : vector<8x8xf32>
    %cst_24 = arith.constant dense<0.000000e+00> : vector<8xf32>
    %34 = vector.multi_reduction <add>, %33, %cst_24 [1] : vector<8x8xf32> to vector<8xf32>
    %35 = vector.shape_cast %34 : vector<8xf32> to vector<8x1xf32>
    %36 = vector.broadcast %35 : vector<8x1xf32> to vector<8x8xf32>
    %37 = arith.divf %33, %36 : vector<8x8xf32>
    %38 = arith.truncf %37 : vector<8x8xf32> to vector<8x8xbf16>
    %cst_25 = arith.constant dense<0.000000e+00> : vector<8x8xf32>
    %39 = tpu.matmul %38, %27, %cst_25 {dimension_numbers = #tpu.dot_dimension_numbers<[1], [0], [0], [1], [0, 0, 1, 1], [], []>} : vector<8x8xbf16>, vector<8x8xbf16>, vector<8x8xf32> -> vector<8x8xf32>
    %40 = vector.extract_strided_slice %15 {offsets = [0, 8], sizes = [8, 8], strides = [1, 1]} : vector<8x32xf32> to vector<8x8xf32>
    %41 = arith.truncf %40 : vector<8x8xf32> to vector<8x8xbf16>
    %42 = vector.extract_strided_slice %20 {offsets = [0, 8], sizes = [8, 8], strides = [1, 1]} : vector<8x32xf32> to vector<8x8xf32>
    %43 = arith.truncf %42 : vector<8x8xf32> to vector<8x8xbf16>
    %44 = vector.extract_strided_slice %21 {offsets = [0, 8], sizes = [8, 8], strides = [1, 1]} : vector<8x32xf32> to vector<8x8xf32>
    %45 = arith.truncf %44 : vector<8x8xf32> to vector<8x8xbf16>
    %cst_26 = arith.constant dense<0.000000e+00> : vector<8x8xf32>
    %46 = tpu.matmul %41, %43, %cst_26 {dimension_numbers = #tpu.dot_dimension_numbers<[1], [1], [0], [0], [0, 0, 1, 0], [], []>} : vector<8x8xbf16>, vector<8x8xbf16>, vector<8x8xf32> -> vector<8x8xf32>
    %cst_27 = arith.constant dense<0xFF800000> : vector<8xf32>
    %47 = vector.multi_reduction <maximumf>, %46, %cst_27 [1] : vector<8x8xf32> to vector<8xf32>
    %48 = vector.shape_cast %47 : vector<8xf32> to vector<8x1xf32>
    %49 = vector.broadcast %48 : vector<8x1xf32> to vector<8x8xf32>
    %50 = arith.subf %46, %49 : vector<8x8xf32>
    %51 = math.exp %50 : vector<8x8xf32>
    %cst_28 = arith.constant dense<0.000000e+00> : vector<8xf32>
    %52 = vector.multi_reduction <add>, %51, %cst_28 [1] : vector<8x8xf32> to vector<8xf32>
    %53 = vector.shape_cast %52 : vector<8xf32> to vector<8x1xf32>
    %54 = vector.broadcast %53 : vector<8x1xf32> to vector<8x8xf32>
    %55 = arith.divf %51, %54 : vector<8x8xf32>
    %56 = arith.truncf %55 : vector<8x8xf32> to vector<8x8xbf16>
    %cst_29 = arith.constant dense<0.000000e+00> : vector<8x8xf32>
    %57 = tpu.matmul %56, %45, %cst_29 {dimension_numbers = #tpu.dot_dimension_numbers<[1], [0], [0], [1], [0, 0, 1, 1], [], []>} : vector<8x8xbf16>, vector<8x8xbf16>, vector<8x8xf32> -> vector<8x8xf32>
    %58 = vector.extract_strided_slice %15 {offsets = [0, 16], sizes = [8, 8], strides = [1, 1]} : vector<8x32xf32> to vector<8x8xf32>
    %59 = arith.truncf %58 : vector<8x8xf32> to vector<8x8xbf16>
    %60 = vector.extract_strided_slice %20 {offsets = [0, 16], sizes = [8, 8], strides = [1, 1]} : vector<8x32xf32> to vector<8x8xf32>
    %61 = arith.truncf %60 : vector<8x8xf32> to vector<8x8xbf16>
    %62 = vector.extract_strided_slice %21 {offsets = [0, 16], sizes = [8, 8], strides = [1, 1]} : vector<8x32xf32> to vector<8x8xf32>
    %63 = arith.truncf %62 : vector<8x8xf32> to vector<8x8xbf16>
    %cst_30 = arith.constant dense<0.000000e+00> : vector<8x8xf32>
    %64 = tpu.matmul %59, %61, %cst_30 {dimension_numbers = #tpu.dot_dimension_numbers<[1], [1], [0], [0], [0, 0, 1, 0], [], []>} : vector<8x8xbf16>, vector<8x8xbf16>, vector<8x8xf32> -> vector<8x8xf32>
    %cst_31 = arith.constant dense<0xFF800000> : vector<8xf32>
    %65 = vector.multi_reduction <maximumf>, %64, %cst_31 [1] : vector<8x8xf32> to vector<8xf32>
    %66 = vector.shape_cast %65 : vector<8xf32> to vector<8x1xf32>
    %67 = vector.broadcast %66 : vector<8x1xf32> to vector<8x8xf32>
    %68 = arith.subf %64, %67 : vector<8x8xf32>
    %69 = math.exp %68 : vector<8x8xf32>
    %cst_32 = arith.constant dense<0.000000e+00> : vector<8xf32>
    %70 = vector.multi_reduction <add>, %69, %cst_32 [1] : vector<8x8xf32> to vector<8xf32>
    %71 = vector.shape_cast %70 : vector<8xf32> to vector<8x1xf32>
    %72 = vector.broadcast %71 : vector<8x1xf32> to vector<8x8xf32>
    %73 = arith.divf %69, %72 : vector<8x8xf32>
    %74 = arith.truncf %73 : vector<8x8xf32> to vector<8x8xbf16>
    %cst_33 = arith.constant dense<0.000000e+00> : vector<8x8xf32>
    %75 = tpu.matmul %74, %63, %cst_33 {dimension_numbers = #tpu.dot_dimension_numbers<[1], [0], [0], [1], [0, 0, 1, 1], [], []>} : vector<8x8xbf16>, vector<8x8xbf16>, vector<8x8xf32> -> vector<8x8xf32>
    %76 = vector.extract_strided_slice %15 {offsets = [0, 24], sizes = [8, 8], strides = [1, 1]} : vector<8x32xf32> to vector<8x8xf32>
    %77 = arith.truncf %76 : vector<8x8xf32> to vector<8x8xbf16>
    %78 = vector.extract_strided_slice %20 {offsets = [0, 24], sizes = [8, 8], strides = [1, 1]} : vector<8x32xf32> to vector<8x8xf32>
    %79 = arith.truncf %78 : vector<8x8xf32> to vector<8x8xbf16>
    %80 = vector.extract_strided_slice %21 {offsets = [0, 24], sizes = [8, 8], strides = [1, 1]} : vector<8x32xf32> to vector<8x8xf32>
    %81 = arith.truncf %80 : vector<8x8xf32> to vector<8x8xbf16>
    %cst_34 = arith.constant dense<0.000000e+00> : vector<8x8xf32>
    %82 = tpu.matmul %77, %79, %cst_34 {dimension_numbers = #tpu.dot_dimension_numbers<[1], [1], [0], [0], [0, 0, 1, 0], [], []>} : vector<8x8xbf16>, vector<8x8xbf16>, vector<8x8xf32> -> vector<8x8xf32>
    %cst_35 = arith.constant dense<0xFF800000> : vector<8xf32>
    %83 = vector.multi_reduction <maximumf>, %82, %cst_35 [1] : vector<8x8xf32> to vector<8xf32>
    %84 = vector.shape_cast %83 : vector<8xf32> to vector<8x1xf32>
    %85 = vector.broadcast %84 : vector<8x1xf32> to vector<8x8xf32>
    %86 = arith.subf %82, %85 : vector<8x8xf32>
    %87 = math.exp %86 : vector<8x8xf32>
    %cst_36 = arith.constant dense<0.000000e+00> : vector<8xf32>
    %88 = vector.multi_reduction <add>, %87, %cst_36 [1] : vector<8x8xf32> to vector<8xf32>
    %89 = vector.shape_cast %88 : vector<8xf32> to vector<8x1xf32>
    %90 = vector.broadcast %89 : vector<8x1xf32> to vector<8x8xf32>
    %91 = arith.divf %87, %90 : vector<8x8xf32>
    %92 = arith.truncf %91 : vector<8x8xf32> to vector<8x8xbf16>
    %cst_37 = arith.constant dense<0.000000e+00> : vector<8x8xf32>
    %93 = tpu.matmul %92, %81, %cst_37 {dimension_numbers = #tpu.dot_dimension_numbers<[1], [0], [0], [1], [0, 0, 1, 1], [], []>} : vector<8x8xbf16>, vector<8x8xbf16>, vector<8x8xf32> -> vector<8x8xf32>
    %94 = tpu.concatenate %39, %57, %75, %93 in 1 : vector<8x8xf32>, vector<8x8xf32>, vector<8x8xf32>, vector<8x8xf32> -> vector<8x32xf32>
    %95 = arith.truncf %94 : vector<8x32xf32> to vector<8x32xbf16>
    %cst_38 = arith.constant dense<0.000000e+00> : vector<8x32xf32>
    %96 = tpu.matmul %95, %8, %cst_38 {dimension_numbers = #tpu.dot_dimension_numbers<[1], [0], [0], [1], [0, 0, 1, 1], [], []>} : vector<8x32xbf16>, vector<32x32xbf16>, vector<8x32xf32> -> vector<8x32xf32>
    %97 = vector.broadcast %9 : vector<1x32xf32> to vector<8x32xf32>
    %98 = arith.addf %96, %97 : vector<8x32xf32>
    %99 = arith.addf %1, %98 : vector<8x32xf32>
    %cst_39 = arith.constant dense<0.000000e+00> : vector<8xf32>
    %100 = vector.multi_reduction <add>, %99, %cst_39 [1] : vector<8x32xf32> to vector<8xf32>
    %101 = vector.shape_cast %100 : vector<8xf32> to vector<8x1xf32>
    %cst_40 = arith.constant 3.200000e+01 : f32
    %102 = vector.broadcast %cst_40 : f32 to vector<8x1xf32>
    %103 = arith.divf %101, %102 : vector<8x1xf32>
    %104 = vector.broadcast %103 : vector<8x1xf32> to vector<8x32xf32>
    %105 = arith.subf %99, %104 : vector<8x32xf32>
    %106 = arith.mulf %105, %105 : vector<8x32xf32>
    %cst_41 = arith.constant dense<0.000000e+00> : vector<8xf32>
    %107 = vector.multi_reduction <add>, %106, %cst_41 [1] : vector<8x32xf32> to vector<8xf32>
    %108 = vector.shape_cast %107 : vector<8xf32> to vector<8x1xf32>
    %cst_42 = arith.constant 3.200000e+01 : f32
    %109 = vector.broadcast %cst_42 : f32 to vector<8x1xf32>
    %110 = arith.divf %108, %109 : vector<8x1xf32>
    %cst_43 = arith.constant 9.99999974E-6 : f32
    %111 = vector.broadcast %cst_43 : f32 to vector<8x1xf32>
    %112 = arith.addf %110, %111 : vector<8x1xf32>
    %113 = math.rsqrt %112 : vector<8x1xf32>
    %114 = vector.broadcast %113 : vector<8x1xf32> to vector<8x32xf32>
    %115 = arith.mulf %105, %114 : vector<8x32xf32>
    %116 = vector.broadcast %10 : vector<1x32xf32> to vector<8x32xf32>
    %117 = arith.mulf %115, %116 : vector<8x32xf32>
    %118 = vector.broadcast %11 : vector<1x32xf32> to vector<8x32xf32>
    %119 = arith.addf %117, %118 : vector<8x32xf32>
    %c0_44 = arith.constant 0 : index
    %c0_45 = arith.constant 0 : index
    %c0_46 = arith.constant 0 : index
    %120 = vector.load %arg12[%c0_44, %c0_45, %c0_46] : memref<1x8x32xf32, #tpu.memory_space<vmem>>, vector<1x8x32xf32>
    %121 = vector.shape_cast %120 : vector<1x8x32xf32> to vector<8x32xf32>
    %122 = vector.shape_cast %119 : vector<8x32xf32> to vector<1x8x32xf32>
    tpu.vector_store %arg12[%c0_44, %c0_45, %c0_46], %122 {strides = array<i32>} : memref<1x8x32xf32, #tpu.memory_space<vmem>>, vector<1x8x32xf32>,
    return
  }
  func.func @transform_0(%arg0: i32, %arg1: i32) -> (i32, i32, i32) {
    %c0_i32 = arith.constant 0 : i32
    %c0_i32_0 = arith.constant 0 : i32
    return %arg0, %arg1, %c0_i32 : i32, i32, i32
  }
  func.func @transform_1(%arg0: i32, %arg1: i32) -> (i32, i32, i32) {
    %c0_i32 = arith.constant 0 : i32
    %c0_i32_0 = arith.constant 0 : i32
    %c0_i32_1 = arith.constant 0 : i32
    return %arg0, %c0_i32, %c0_i32_0 : i32, i32, i32
  }
  func.func @transform_2(%arg0: i32, %arg1: i32) -> (i32, i32) {
    %c0_i32 = arith.constant 0 : i32
    %c0_i32_0 = arith.constant 0 : i32
    %c0_i32_1 = arith.constant 0 : i32
    return %c0_i32, %c0_i32_0 : i32, i32
  }
  func.func @transform_3(%arg0: i32, %arg1: i32) -> (i32, i32) {
    %c0_i32 = arith.constant 0 : i32
    %c0_i32_0 = arith.constant 0 : i32
    %c0_i32_1 = arith.constant 0 : i32
    return %c0_i32, %c0_i32_0 : i32, i32
  }
  func.func @transform_4(%arg0: i32, %arg1: i32) -> (i32, i32) {
    %c0_i32 = arith.constant 0 : i32
    %c0_i32_0 = arith.constant 0 : i32
    %c0_i32_1 = arith.constant 0 : i32
    return %c0_i32, %c0_i32_0 : i32, i32
  }
  func.func @transform_5(%arg0: i32, %arg1: i32) -> (i32, i32) {
    %c0_i32 = arith.constant 0 : i32
    %c0_i32_0 = arith.constant 0 : i32
    %c0_i32_1 = arith.constant 0 : i32
    return %c0_i32, %c0_i32_0 : i32, i32
  }
  func.func @transform_6(%arg0: i32, %arg1: i32) -> (i32, i32) {
    %c0_i32 = arith.constant 0 : i32
    %c0_i32_0 = arith.constant 0 : i32
    %c0_i32_1 = arith.constant 0 : i32
    return %c0_i32, %c0_i32_0 : i32, i32
  }
  func.func @transform_7(%arg0: i32, %arg1: i32) -> (i32, i32) {
    %c0_i32 = arith.constant 0 : i32
    %c0_i32_0 = arith.constant 0 : i32
    %c0_i32_1 = arith.constant 0 : i32
    return %c0_i32, %c0_i32_0 : i32, i32
  }
  func.func @transform_8(%arg0: i32, %arg1: i32) -> (i32, i32) {
    %c0_i32 = arith.constant 0 : i32
    %c0_i32_0 = arith.constant 0 : i32
    %c0_i32_1 = arith.constant 0 : i32
    return %c0_i32, %c0_i32_0 : i32, i32
  }
  func.func @transform_9(%arg0: i32, %arg1: i32) -> (i32, i32) {
    %c0_i32 = arith.constant 0 : i32
    %c0_i32_0 = arith.constant 0 : i32
    %c0_i32_1 = arith.constant 0 : i32
    return %c0_i32, %c0_i32_0 : i32, i32
  }
  func.func @transform_10(%arg0: i32, %arg1: i32) -> (i32, i32, i32) {
    %c0_i32 = arith.constant 0 : i32
    %c0_i32_0 = arith.constant 0 : i32
    return %arg0, %arg1, %c0_i32 : i32, i32, i32
  }
}

module attributes {stable_mosaic.version = 11 : i64} {
  func.func @_ffn_ln_kernel(%arg0: i32, %arg1: memref<16x32xf32, #tpu.memory_space<vmem>>, %arg2: memref<32x128xbf16, #tpu.memory_space<vmem>>, %arg3: memref<1x128xf32, #tpu.memory_space<vmem>>, %arg4: memref<128x32xbf16, #tpu.memory_space<vmem>>, %arg5: memref<1x32xf32, #tpu.memory_space<vmem>>, %arg6: memref<1x32xf32, #tpu.memory_space<vmem>>, %arg7: memref<1x32xf32, #tpu.memory_space<vmem>>, %arg8: memref<16x32xf32, #tpu.memory_space<vmem>>) attributes {dimension_semantics = [#tpu.dimension_semantics<parallel>], iteration_bounds = array<i64: 1>, scalar_prefetch = 0 : i64, scratch_operands = 0 : i64, tpu.core_type = #tpu.core_type<tc>, window_params = [{transform_indices = @transform_0, window_bounds = array<i64: 16, 32>}, {pipeline_mode = #tpu.pipeline_mode<synchronous>, transform_indices = @transform_1, window_bounds = array<i64: 32, 128>}, {pipeline_mode = #tpu.pipeline_mode<synchronous>, transform_indices = @transform_2, window_bounds = array<i64: 1, 128>}, {pipeline_mode = #tpu.pipeline_mode<synchronous>, transform_indices = @transform_3, window_bounds = array<i64: 128, 32>}, {pipeline_mode = #tpu.pipeline_mode<synchronous>, transform_indices = @transform_4, window_bounds = array<i64: 1, 32>}, {pipeline_mode = #tpu.pipeline_mode<synchronous>, transform_indices = @transform_5, window_bounds = array<i64: 1, 32>}, {pipeline_mode = #tpu.pipeline_mode<synchronous>, transform_indices = @transform_6, window_bounds = array<i64: 1, 32>}, {transform_indices = @transform_7, window_bounds = array<i64: 16, 32>}]} {
    %c0 = arith.constant 0 : index
    %c0_0 = arith.constant 0 : index
    %0 = vector.load %arg1[%c0, %c0_0] : memref<16x32xf32, #tpu.memory_space<vmem>>, vector<16x32xf32>
    %1 = arith.truncf %0 : vector<16x32xf32> to vector<16x32xbf16>
    %c0_1 = arith.constant 0 : index
    %c0_2 = arith.constant 0 : index
    %2 = vector.load %arg2[%c0_1, %c0_2] : memref<32x128xbf16, #tpu.memory_space<vmem>>, vector<32x128xbf16>
    %cst = arith.constant dense<0.000000e+00> : vector<16x128xf32>
    %3 = tpu.matmul %1, %2, %cst {dimension_numbers = #tpu.dot_dimension_numbers<[1], [0], [0], [1], [0, 0, 1, 1], [], []>} : vector<16x32xbf16>, vector<32x128xbf16>, vector<16x128xf32> -> vector<16x128xf32>
    %c0_3 = arith.constant 0 : index
    %c0_4 = arith.constant 0 : index
    %4 = vector.load %arg3[%c0_3, %c0_4] : memref<1x128xf32, #tpu.memory_space<vmem>>, vector<1x128xf32>
    %5 = vector.broadcast %4 : vector<1x128xf32> to vector<16x128xf32>
    %6 = arith.addf %3, %5 : vector<16x128xf32>
    %cst_5 = arith.constant 0.000000e+00 : f32
    %7 = vector.broadcast %cst_5 : f32 to vector<16x128xf32>
    %8 = arith.maximumf %6, %7 : vector<16x128xf32>
    %9 = arith.truncf %8 : vector<16x128xf32> to vector<16x128xbf16>
    %c0_6 = arith.constant 0 : index
    %c0_7 = arith.constant 0 : index
    %10 = vector.load %arg4[%c0_6, %c0_7] : memref<128x32xbf16, #tpu.memory_space<vmem>>, vector<128x32xbf16>
    %cst_8 = arith.constant dense<0.000000e+00> : vector<16x32xf32>
    %11 = tpu.matmul %9, %10, %cst_8 {dimension_numbers = #tpu.dot_dimension_numbers<[1], [0], [0], [1], [0, 0, 1, 1], [], []>} : vector<16x128xbf16>, vector<128x32xbf16>, vector<16x32xf32> -> vector<16x32xf32>
    %c0_9 = arith.constant 0 : index
    %c0_10 = arith.constant 0 : index
    %12 = vector.load %arg5[%c0_9, %c0_10] : memref<1x32xf32, #tpu.memory_space<vmem>>, vector<1x32xf32>
    %13 = vector.broadcast %12 : vector<1x32xf32> to vector<16x32xf32>
    %14 = arith.addf %11, %13 : vector<16x32xf32>
    %15 = arith.addf %0, %14 : vector<16x32xf32>
    %cst_11 = arith.constant dense<0.000000e+00> : vector<16xf32>
    %16 = vector.multi_reduction <add>, %15, %cst_11 [1] : vector<16x32xf32> to vector<16xf32>
    %17 = vector.shape_cast %16 : vector<16xf32> to vector<16x1xf32>
    %cst_12 = arith.constant 3.200000e+01 : f32
    %18 = vector.broadcast %cst_12 : f32 to vector<16x1xf32>
    %19 = arith.divf %17, %18 : vector<16x1xf32>
    %20 = vector.broadcast %19 : vector<16x1xf32> to vector<16x32xf32>
    %21 = arith.subf %15, %20 : vector<16x32xf32>
    %22 = arith.mulf %21, %21 : vector<16x32xf32>
    %cst_13 = arith.constant dense<0.000000e+00> : vector<16xf32>
    %23 = vector.multi_reduction <add>, %22, %cst_13 [1] : vector<16x32xf32> to vector<16xf32>
    %24 = vector.shape_cast %23 : vector<16xf32> to vector<16x1xf32>
    %cst_14 = arith.constant 3.200000e+01 : f32
    %25 = vector.broadcast %cst_14 : f32 to vector<16x1xf32>
    %26 = arith.divf %24, %25 : vector<16x1xf32>
    %cst_15 = arith.constant 9.99999974E-6 : f32
    %27 = vector.broadcast %cst_15 : f32 to vector<16x1xf32>
    %28 = arith.addf %26, %27 : vector<16x1xf32>
    %29 = math.rsqrt %28 : vector<16x1xf32>
    %30 = vector.broadcast %29 : vector<16x1xf32> to vector<16x32xf32>
    %31 = arith.mulf %21, %30 : vector<16x32xf32>
    %c0_16 = arith.constant 0 : index
    %c0_17 = arith.constant 0 : index
    %32 = vector.load %arg6[%c0_16, %c0_17] : memref<1x32xf32, #tpu.memory_space<vmem>>, vector<1x32xf32>
    %33 = vector.broadcast %32 : vector<1x32xf32> to vector<16x32xf32>
    %34 = arith.mulf %31, %33 : vector<16x32xf32>
    %c0_18 = arith.constant 0 : index
    %c0_19 = arith.constant 0 : index
    %35 = vector.load %arg7[%c0_18, %c0_19] : memref<1x32xf32, #tpu.memory_space<vmem>>, vector<1x32xf32>
    %36 = vector.broadcast %35 : vector<1x32xf32> to vector<16x32xf32>
    %37 = arith.addf %34, %36 : vector<16x32xf32>
    %c0_20 = arith.constant 0 : index
    %c0_21 = arith.constant 0 : index
    %38 = vector.load %arg8[%c0_20, %c0_21] : memref<16x32xf32, #tpu.memory_space<vmem>>, vector<16x32xf32>
    tpu.vector_store %arg8[%c0_20, %c0_21], %37 {strides = array<i32>} : memref<16x32xf32, #tpu.memory_space<vmem>>, vector<16x32xf32>,
    return
  }
  func.func @transform_0(%arg0: i32) -> (i32, i32) {
    %c0_i32 = arith.constant 0 : i32
    %c0_i32_0 = arith.constant 0 : i32
    return %arg0, %c0_i32 : i32, i32
  }
  func.func @transform_1(%arg0: i32) -> (i32, i32) {
    %c0_i32 = arith.constant 0 : i32
    %c0_i32_0 = arith.constant 0 : i32
    %c0_i32_1 = arith.constant 0 : i32
    return %c0_i32, %c0_i32_0 : i32, i32
  }
  func.func @transform_2(%arg0: i32) -> (i32, i32) {
    %c0_i32 = arith.constant 0 : i32
    %c0_i32_0 = arith.constant 0 : i32
    %c0_i32_1 = arith.constant 0 : i32
    return %c0_i32, %c0_i32_0 : i32, i32
  }
  func.func @transform_3(%arg0: i32) -> (i32, i32) {
    %c0_i32 = arith.constant 0 : i32
    %c0_i32_0 = arith.constant 0 : i32
    %c0_i32_1 = arith.constant 0 : i32
    return %c0_i32, %c0_i32_0 : i32, i32
  }
  func.func @transform_4(%arg0: i32) -> (i32, i32) {
    %c0_i32 = arith.constant 0 : i32
    %c0_i32_0 = arith.constant 0 : i32
    %c0_i32_1 = arith.constant 0 : i32
    return %c0_i32, %c0_i32_0 : i32, i32
  }
  func.func @transform_5(%arg0: i32) -> (i32, i32) {
    %c0_i32 = arith.constant 0 : i32
    %c0_i32_0 = arith.constant 0 : i32
    %c0_i32_1 = arith.constant 0 : i32
    return %c0_i32, %c0_i32_0 : i32, i32
  }
  func.func @transform_6(%arg0: i32) -> (i32, i32) {
    %c0_i32 = arith.constant 0 : i32
    %c0_i32_0 = arith.constant 0 : i32
    %c0_i32_1 = arith.constant 0 : i32
    return %c0_i32, %c0_i32_0 : i32, i32
  }
  func.func @transform_7(%arg0: i32) -> (i32, i32) {
    %c0_i32 = arith.constant 0 : i32
    %c0_i32_0 = arith.constant 0 : i32
    return %arg0, %c0_i32 : i32, i32
  }
}

module attributes {stable_mosaic.version = 11 : i64} {
  func.func @_cross_mha_ln_kernel(%arg0: i32, %arg1: i32, %arg2: memref<1x8x32xf32, #tpu.memory_space<vmem>>, %arg3: memref<1x8x32xf32, #tpu.memory_space<vmem>>, %arg4: memref<32x32xbf16, #tpu.memory_space<vmem>>, %arg5: memref<1x32xf32, #tpu.memory_space<vmem>>, %arg6: memref<32x64xbf16, #tpu.memory_space<vmem>>, %arg7: memref<1x64xf32, #tpu.memory_space<vmem>>, %arg8: memref<32x32xbf16, #tpu.memory_space<vmem>>, %arg9: memref<1x32xf32, #tpu.memory_space<vmem>>, %arg10: memref<1x32xf32, #tpu.memory_space<vmem>>, %arg11: memref<1x32xf32, #tpu.memory_space<vmem>>, %arg12: memref<1x8x32xf32, #tpu.memory_space<vmem>>) attributes {dimension_semantics = [#tpu.dimension_semantics<parallel>, #tpu.dimension_semantics<parallel>], iteration_bounds = array<i64: 2, 1>, scalar_prefetch = 0 : i64, scratch_operands = 0 : i64, tpu.core_type = #tpu.core_type<tc>, window_params = [{transform_indices = @transform_0, window_bounds = array<i64: 1, 8, 32>}, {transform_indices = @transform_1, window_bounds = array<i64: 1, 8, 32>}, {pipeline_mode = #tpu.pipeline_mode<synchronous>, transform_indices = @transform_2, window_bounds = array<i64: 32, 32>}, {pipeline_mode = #tpu.pipeline_mode<synchronous>, transform_indices = @transform_3, window_bounds = array<i64: 1, 32>}, {pipeline_mode = #tpu.pipeline_mode<synchronous>, transform_indices = @transform_4, window_bounds = array<i64: 32, 64>}, {pipeline_mode = #tpu.pipeline_mode<synchronous>, transform_indices = @transform_5, window_bounds = array<i64: 1, 64>}, {pipeline_mode = #tpu.pipeline_mode<synchronous>, transform_indices = @transform_6, window_bounds = array<i64: 32, 32>}, {pipeline_mode = #tpu.pipeline_mode<synchronous>, transform_indices = @transform_7, window_bounds = array<i64: 1, 32>}, {pipeline_mode = #tpu.pipeline_mode<synchronous>, transform_indices = @transform_8, window_bounds = array<i64: 1, 32>}, {pipeline_mode = #tpu.pipeline_mode<synchronous>, transform_indices = @transform_9, window_bounds = array<i64: 1, 32>}, {transform_indices = @transform_10, window_bounds = array<i64: 1, 8, 32>}]} {
    %c0 = arith.constant 0 : index
    %c0_0 = arith.constant 0 : index
    %c0_1 = arith.constant 0 : index
    %0 = vector.load %arg2[%c0, %c0_0, %c0_1] : memref<1x8x32xf32, #tpu.memory_space<vmem>>, vector<1x8x32xf32>
    %1 = vector.shape_cast %0 : vector<1x8x32xf32> to vector<8x32xf32>
    %c0_2 = arith.constant 0 : index
    %c0_3 = arith.constant 0 : index
    %c0_4 = arith.constant 0 : index
    %2 = vector.load %arg3[%c0_2, %c0_3, %c0_4] : memref<1x8x32xf32, #tpu.memory_space<vmem>>, vector<1x8x32xf32>
    %3 = vector.shape_cast %2 : vector<1x8x32xf32> to vector<8x32xf32>
    %c0_5 = arith.constant 0 : index
    %c0_6 = arith.constant 0 : index
    %4 = vector.load %arg4[%c0_5, %c0_6] : memref<32x32xbf16, #tpu.memory_space<vmem>>, vector<32x32xbf16>
    %c0_7 = arith.constant 0 : index
    %c0_8 = arith.constant 0 : index
    %5 = vector.load %arg5[%c0_7, %c0_8] : memref<1x32xf32, #tpu.memory_space<vmem>>, vector<1x32xf32>
    %c0_9 = arith.constant 0 : index
    %c0_10 = arith.constant 0 : index
    %6 = vector.load %arg6[%c0_9, %c0_10] : memref<32x64xbf16, #tpu.memory_space<vmem>>, vector<32x64xbf16>
    %c0_11 = arith.constant 0 : index
    %c0_12 = arith.constant 0 : index
    %7 = vector.load %arg7[%c0_11, %c0_12] : memref<1x64xf32, #tpu.memory_space<vmem>>, vector<1x64xf32>
    %c0_13 = arith.constant 0 : index
    %c0_14 = arith.constant 0 : index
    %8 = vector.load %arg8[%c0_13, %c0_14] : memref<32x32xbf16, #tpu.memory_space<vmem>>, vector<32x32xbf16>
    %c0_15 = arith.constant 0 : index
    %c0_16 = arith.constant 0 : index
    %9 = vector.load %arg9[%c0_15, %c0_16] : memref<1x32xf32, #tpu.memory_space<vmem>>, vector<1x32xf32>
    %c0_17 = arith.constant 0 : index
    %c0_18 = arith.constant 0 : index
    %10 = vector.load %arg10[%c0_17, %c0_18] : memref<1x32xf32, #tpu.memory_space<vmem>>, vector<1x32xf32>
    %c0_19 = arith.constant 0 : index
    %c0_20 = arith.constant 0 : index
    %11 = vector.load %arg11[%c0_19, %c0_20] : memref<1x32xf32, #tpu.memory_space<vmem>>, vector<1x32xf32>
    %12 = arith.truncf %1 : vector<8x32xf32> to vector<8x32xbf16>
    %cst = arith.constant dense<0.000000e+00> : vector<8x32xf32>
    %13 = tpu.matmul %12, %4, %cst {dimension_numbers = #tpu.dot_dimension_numbers<[1], [0], [0], [1], [0, 0, 1, 1], [], []>} : vector<8x32xbf16>, vector<32x32xbf16>, vector<8x32xf32> -> vector<8x32xf32>
    %14 = vector.broadcast %5 : vector<1x32xf32> to vector<8x32xf32>
    %15 = arith.addf %13, %14 : vector<8x32xf32>
    %16 = arith.truncf %3 : vector<8x32xf32> to vector<8x32xbf16>
    %cst_21 = arith.constant dense<0.000000e+00> : vector<8x64xf32>
    %17 = tpu.matmul %16, %6, %cst_21 {dimension_numbers = #tpu.dot_dimension_numbers<[1], [0], [0], [1], [0, 0, 1, 1], [], []>} : vector<8x32xbf16>, vector<32x64xbf16>, vector<8x64xf32> -> vector<8x64xf32>
    %18 = vector.broadcast %7 : vector<1x64xf32> to vector<8x64xf32>
    %19 = arith.addf %17, %18 : vector<8x64xf32>
    %20 = vector.extract_strided_slice %19 {offsets = [0, 0], sizes = [8, 32], strides = [1, 1]} : vector<8x64xf32> to vector<8x32xf32>
    %21 = vector.extract_strided_slice %19 {offsets = [0, 32], sizes = [8, 32], strides = [1, 1]} : vector<8x64xf32> to vector<8x32xf32>
    %22 = vector.extract_strided_slice %15 {offsets = [0, 0], sizes = [8, 8], strides = [1, 1]} : vector<8x32xf32> to vector<8x8xf32>
    %23 = arith.truncf %22 : vector<8x8xf32> to vector<8x8xbf16>
    %24 = vector.extract_strided_slice %20 {offsets = [0, 0], sizes = [8, 8], strides = [1, 1]} : vector<8x32xf32> to vector<8x8xf32>
    %25 = arith.truncf %24 : vector<8x8xf32> to vector<8x8xbf16>
    %26 = vector.extract_strided_slice %21 {offsets = [0, 0], sizes = [8, 8], strides = [1, 1]} : vector<8x32xf32> to vector<8x8xf32>
    %27 = arith.truncf %26 : vector<8x8xf32> to vector<8x8xbf16>
    %cst_22 = arith.constant dense<0.000000e+00> : vector<8x8xf32>
    %28 = tpu.matmul %23, %25, %cst_22 {dimension_numbers = #tpu.dot_dimension_numbers<[1], [1], [0], [0], [0, 0, 1, 0], [], []>} : vector<8x8xbf16>, vector<8x8xbf16>, vector<8x8xf32> -> vector<8x8xf32>
    %cst_23 = arith.constant dense<0xFF800000> : vector<8xf32>
    %29 = vector.multi_reduction <maximumf>, %28, %cst_23 [1] : vector<8x8xf32> to vector<8xf32>
    %30 = vector.shape_cast %29 : vector<8xf32> to vector<8x1xf32>
    %31 = vector.broadcast %30 : vector<8x1xf32> to vector<8x8xf32>
    %32 = arith.subf %28, %31 : vector<8x8xf32>
    %33 = math.exp %32 : vector<8x8xf32>
    %cst_24 = arith.constant dense<0.000000e+00> : vector<8xf32>
    %34 = vector.multi_reduction <add>, %33, %cst_24 [1] : vector<8x8xf32> to vector<8xf32>
    %35 = vector.shape_cast %34 : vector<8xf32> to vector<8x1xf32>
    %36 = vector.broadcast %35 : vector<8x1xf32> to vector<8x8xf32>
    %37 = arith.divf %33, %36 : vector<8x8xf32>
    %38 = arith.truncf %37 : vector<8x8xf32> to vector<8x8xbf16>
    %cst_25 = arith.constant dense<0.000000e+00> : vector<8x8xf32>
    %39 = tpu.matmul %38, %27, %cst_25 {dimension_numbers = #tpu.dot_dimension_numbers<[1], [0], [0], [1], [0, 0, 1, 1], [], []>} : vector<8x8xbf16>, vector<8x8xbf16>, vector<8x8xf32> -> vector<8x8xf32>
    %40 = vector.extract_strided_slice %15 {offsets = [0, 8], sizes = [8, 8], strides = [1, 1]} : vector<8x32xf32> to vector<8x8xf32>
    %41 = arith.truncf %40 : vector<8x8xf32> to vector<8x8xbf16>
    %42 = vector.extract_strided_slice %20 {offsets = [0, 8], sizes = [8, 8], strides = [1, 1]} : vector<8x32xf32> to vector<8x8xf32>
    %43 = arith.truncf %42 : vector<8x8xf32> to vector<8x8xbf16>
    %44 = vector.extract_strided_slice %21 {offsets = [0, 8], sizes = [8, 8], strides = [1, 1]} : vector<8x32xf32> to vector<8x8xf32>
    %45 = arith.truncf %44 : vector<8x8xf32> to vector<8x8xbf16>
    %cst_26 = arith.constant dense<0.000000e+00> : vector<8x8xf32>
    %46 = tpu.matmul %41, %43, %cst_26 {dimension_numbers = #tpu.dot_dimension_numbers<[1], [1], [0], [0], [0, 0, 1, 0], [], []>} : vector<8x8xbf16>, vector<8x8xbf16>, vector<8x8xf32> -> vector<8x8xf32>
    %cst_27 = arith.constant dense<0xFF800000> : vector<8xf32>
    %47 = vector.multi_reduction <maximumf>, %46, %cst_27 [1] : vector<8x8xf32> to vector<8xf32>
    %48 = vector.shape_cast %47 : vector<8xf32> to vector<8x1xf32>
    %49 = vector.broadcast %48 : vector<8x1xf32> to vector<8x8xf32>
    %50 = arith.subf %46, %49 : vector<8x8xf32>
    %51 = math.exp %50 : vector<8x8xf32>
    %cst_28 = arith.constant dense<0.000000e+00> : vector<8xf32>
    %52 = vector.multi_reduction <add>, %51, %cst_28 [1] : vector<8x8xf32> to vector<8xf32>
    %53 = vector.shape_cast %52 : vector<8xf32> to vector<8x1xf32>
    %54 = vector.broadcast %53 : vector<8x1xf32> to vector<8x8xf32>
    %55 = arith.divf %51, %54 : vector<8x8xf32>
    %56 = arith.truncf %55 : vector<8x8xf32> to vector<8x8xbf16>
    %cst_29 = arith.constant dense<0.000000e+00> : vector<8x8xf32>
    %57 = tpu.matmul %56, %45, %cst_29 {dimension_numbers = #tpu.dot_dimension_numbers<[1], [0], [0], [1], [0, 0, 1, 1], [], []>} : vector<8x8xbf16>, vector<8x8xbf16>, vector<8x8xf32> -> vector<8x8xf32>
    %58 = vector.extract_strided_slice %15 {offsets = [0, 16], sizes = [8, 8], strides = [1, 1]} : vector<8x32xf32> to vector<8x8xf32>
    %59 = arith.truncf %58 : vector<8x8xf32> to vector<8x8xbf16>
    %60 = vector.extract_strided_slice %20 {offsets = [0, 16], sizes = [8, 8], strides = [1, 1]} : vector<8x32xf32> to vector<8x8xf32>
    %61 = arith.truncf %60 : vector<8x8xf32> to vector<8x8xbf16>
    %62 = vector.extract_strided_slice %21 {offsets = [0, 16], sizes = [8, 8], strides = [1, 1]} : vector<8x32xf32> to vector<8x8xf32>
    %63 = arith.truncf %62 : vector<8x8xf32> to vector<8x8xbf16>
    %cst_30 = arith.constant dense<0.000000e+00> : vector<8x8xf32>
    %64 = tpu.matmul %59, %61, %cst_30 {dimension_numbers = #tpu.dot_dimension_numbers<[1], [1], [0], [0], [0, 0, 1, 0], [], []>} : vector<8x8xbf16>, vector<8x8xbf16>, vector<8x8xf32> -> vector<8x8xf32>
    %cst_31 = arith.constant dense<0xFF800000> : vector<8xf32>
    %65 = vector.multi_reduction <maximumf>, %64, %cst_31 [1] : vector<8x8xf32> to vector<8xf32>
    %66 = vector.shape_cast %65 : vector<8xf32> to vector<8x1xf32>
    %67 = vector.broadcast %66 : vector<8x1xf32> to vector<8x8xf32>
    %68 = arith.subf %64, %67 : vector<8x8xf32>
    %69 = math.exp %68 : vector<8x8xf32>
    %cst_32 = arith.constant dense<0.000000e+00> : vector<8xf32>
    %70 = vector.multi_reduction <add>, %69, %cst_32 [1] : vector<8x8xf32> to vector<8xf32>
    %71 = vector.shape_cast %70 : vector<8xf32> to vector<8x1xf32>
    %72 = vector.broadcast %71 : vector<8x1xf32> to vector<8x8xf32>
    %73 = arith.divf %69, %72 : vector<8x8xf32>
    %74 = arith.truncf %73 : vector<8x8xf32> to vector<8x8xbf16>
    %cst_33 = arith.constant dense<0.000000e+00> : vector<8x8xf32>
    %75 = tpu.matmul %74, %63, %cst_33 {dimension_numbers = #tpu.dot_dimension_numbers<[1], [0], [0], [1], [0, 0, 1, 1], [], []>} : vector<8x8xbf16>, vector<8x8xbf16>, vector<8x8xf32> -> vector<8x8xf32>
    %76 = vector.extract_strided_slice %15 {offsets = [0, 24], sizes = [8, 8], strides = [1, 1]} : vector<8x32xf32> to vector<8x8xf32>
    %77 = arith.truncf %76 : vector<8x8xf32> to vector<8x8xbf16>
    %78 = vector.extract_strided_slice %20 {offsets = [0, 24], sizes = [8, 8], strides = [1, 1]} : vector<8x32xf32> to vector<8x8xf32>
    %79 = arith.truncf %78 : vector<8x8xf32> to vector<8x8xbf16>
    %80 = vector.extract_strided_slice %21 {offsets = [0, 24], sizes = [8, 8], strides = [1, 1]} : vector<8x32xf32> to vector<8x8xf32>
    %81 = arith.truncf %80 : vector<8x8xf32> to vector<8x8xbf16>
    %cst_34 = arith.constant dense<0.000000e+00> : vector<8x8xf32>
    %82 = tpu.matmul %77, %79, %cst_34 {dimension_numbers = #tpu.dot_dimension_numbers<[1], [1], [0], [0], [0, 0, 1, 0], [], []>} : vector<8x8xbf16>, vector<8x8xbf16>, vector<8x8xf32> -> vector<8x8xf32>
    %cst_35 = arith.constant dense<0xFF800000> : vector<8xf32>
    %83 = vector.multi_reduction <maximumf>, %82, %cst_35 [1] : vector<8x8xf32> to vector<8xf32>
    %84 = vector.shape_cast %83 : vector<8xf32> to vector<8x1xf32>
    %85 = vector.broadcast %84 : vector<8x1xf32> to vector<8x8xf32>
    %86 = arith.subf %82, %85 : vector<8x8xf32>
    %87 = math.exp %86 : vector<8x8xf32>
    %cst_36 = arith.constant dense<0.000000e+00> : vector<8xf32>
    %88 = vector.multi_reduction <add>, %87, %cst_36 [1] : vector<8x8xf32> to vector<8xf32>
    %89 = vector.shape_cast %88 : vector<8xf32> to vector<8x1xf32>
    %90 = vector.broadcast %89 : vector<8x1xf32> to vector<8x8xf32>
    %91 = arith.divf %87, %90 : vector<8x8xf32>
    %92 = arith.truncf %91 : vector<8x8xf32> to vector<8x8xbf16>
    %cst_37 = arith.constant dense<0.000000e+00> : vector<8x8xf32>
    %93 = tpu.matmul %92, %81, %cst_37 {dimension_numbers = #tpu.dot_dimension_numbers<[1], [0], [0], [1], [0, 0, 1, 1], [], []>} : vector<8x8xbf16>, vector<8x8xbf16>, vector<8x8xf32> -> vector<8x8xf32>
    %94 = tpu.concatenate %39, %57, %75, %93 in 1 : vector<8x8xf32>, vector<8x8xf32>, vector<8x8xf32>, vector<8x8xf32> -> vector<8x32xf32>
    %95 = arith.truncf %94 : vector<8x32xf32> to vector<8x32xbf16>
    %cst_38 = arith.constant dense<0.000000e+00> : vector<8x32xf32>
    %96 = tpu.matmul %95, %8, %cst_38 {dimension_numbers = #tpu.dot_dimension_numbers<[1], [0], [0], [1], [0, 0, 1, 1], [], []>} : vector<8x32xbf16>, vector<32x32xbf16>, vector<8x32xf32> -> vector<8x32xf32>
    %97 = vector.broadcast %9 : vector<1x32xf32> to vector<8x32xf32>
    %98 = arith.addf %96, %97 : vector<8x32xf32>
    %99 = arith.addf %1, %98 : vector<8x32xf32>
    %cst_39 = arith.constant dense<0.000000e+00> : vector<8xf32>
    %100 = vector.multi_reduction <add>, %99, %cst_39 [1] : vector<8x32xf32> to vector<8xf32>
    %101 = vector.shape_cast %100 : vector<8xf32> to vector<8x1xf32>
    %cst_40 = arith.constant 3.200000e+01 : f32
    %102 = vector.broadcast %cst_40 : f32 to vector<8x1xf32>
    %103 = arith.divf %101, %102 : vector<8x1xf32>
    %104 = vector.broadcast %103 : vector<8x1xf32> to vector<8x32xf32>
    %105 = arith.subf %99, %104 : vector<8x32xf32>
    %106 = arith.mulf %105, %105 : vector<8x32xf32>
    %cst_41 = arith.constant dense<0.000000e+00> : vector<8xf32>
    %107 = vector.multi_reduction <add>, %106, %cst_41 [1] : vector<8x32xf32> to vector<8xf32>
    %108 = vector.shape_cast %107 : vector<8xf32> to vector<8x1xf32>
    %cst_42 = arith.constant 3.200000e+01 : f32
    %109 = vector.broadcast %cst_42 : f32 to vector<8x1xf32>
    %110 = arith.divf %108, %109 : vector<8x1xf32>
    %cst_43 = arith.constant 9.99999974E-6 : f32
    %111 = vector.broadcast %cst_43 : f32 to vector<8x1xf32>
    %112 = arith.addf %110, %111 : vector<8x1xf32>
    %113 = math.rsqrt %112 : vector<8x1xf32>
    %114 = vector.broadcast %113 : vector<8x1xf32> to vector<8x32xf32>
    %115 = arith.mulf %105, %114 : vector<8x32xf32>
    %116 = vector.broadcast %10 : vector<1x32xf32> to vector<8x32xf32>
    %117 = arith.mulf %115, %116 : vector<8x32xf32>
    %118 = vector.broadcast %11 : vector<1x32xf32> to vector<8x32xf32>
    %119 = arith.addf %117, %118 : vector<8x32xf32>
    %c0_44 = arith.constant 0 : index
    %c0_45 = arith.constant 0 : index
    %c0_46 = arith.constant 0 : index
    %120 = vector.load %arg12[%c0_44, %c0_45, %c0_46] : memref<1x8x32xf32, #tpu.memory_space<vmem>>, vector<1x8x32xf32>
    %121 = vector.shape_cast %120 : vector<1x8x32xf32> to vector<8x32xf32>
    %122 = vector.shape_cast %119 : vector<8x32xf32> to vector<1x8x32xf32>
    tpu.vector_store %arg12[%c0_44, %c0_45, %c0_46], %122 {strides = array<i32>} : memref<1x8x32xf32, #tpu.memory_space<vmem>>, vector<1x8x32xf32>,
    return
  }
  func.func @transform_0(%arg0: i32, %arg1: i32) -> (i32, i32, i32) {
    %c0_i32 = arith.constant 0 : i32
    %c0_i32_0 = arith.constant 0 : i32
    return %arg0, %arg1, %c0_i32 : i32, i32, i32
  }
  func.func @transform_1(%arg0: i32, %arg1: i32) -> (i32, i32, i32) {
    %c0_i32 = arith.constant 0 : i32
    %c0_i32_0 = arith.constant 0 : i32
    %c0_i32_1 = arith.constant 0 : i32
    return %arg0, %c0_i32, %c0_i32_0 : i32, i32, i32
  }
  func.func @transform_2(%arg0: i32, %arg1: i32) -> (i32, i32) {
    %c0_i32 = arith.constant 0 : i32
    %c0_i32_0 = arith.constant 0 : i32
    %c0_i32_1 = arith.constant 0 : i32
    return %c0_i32, %c0_i32_0 : i32, i32
  }
  func.func @transform_3(%arg0: i32, %arg1: i32) -> (i32, i32) {
    %c0_i32 = arith.constant 0 : i32
    %c0_i32_0 = arith.constant 0 : i32
    %c0_i32_1 = arith.constant 0 : i32
    return %c0_i32, %c0_i32_0 : i32, i32
  }
  func.func @transform_4(%arg0: i32, %arg1: i32) -> (i32, i32) {
    %c0_i32 = arith.constant 0 : i32
    %c0_i32_0 = arith.constant 0 : i32
    %c0_i32_1 = arith.constant 0 : i32
    return %c0_i32, %c0_i32_0 : i32, i32
  }
  func.func @transform_5(%arg0: i32, %arg1: i32) -> (i32, i32) {
    %c0_i32 = arith.constant 0 : i32
    %c0_i32_0 = arith.constant 0 : i32
    %c0_i32_1 = arith.constant 0 : i32
    return %c0_i32, %c0_i32_0 : i32, i32
  }
  func.func @transform_6(%arg0: i32, %arg1: i32) -> (i32, i32) {
    %c0_i32 = arith.constant 0 : i32
    %c0_i32_0 = arith.constant 0 : i32
    %c0_i32_1 = arith.constant 0 : i32
    return %c0_i32, %c0_i32_0 : i32, i32
  }
  func.func @transform_7(%arg0: i32, %arg1: i32) -> (i32, i32) {
    %c0_i32 = arith.constant 0 : i32
    %c0_i32_0 = arith.constant 0 : i32
    %c0_i32_1 = arith.constant 0 : i32
    return %c0_i32, %c0_i32_0 : i32, i32
  }
  func.func @transform_8(%arg0: i32, %arg1: i32) -> (i32, i32) {
    %c0_i32 = arith.constant 0 : i32
    %c0_i32_0 = arith.constant 0 : i32
    %c0_i32_1 = arith.constant 0 : i32
    return %c0_i32, %c0_i32_0 : i32, i32
  }
  func.func @transform_9(%arg0: i32, %arg1: i32) -> (i32, i32) {
    %c0_i32 = arith.constant 0 : i32
    %c0_i32_0 = arith.constant 0 : i32
    %c0_i32_1 = arith.constant 0 : i32
    return %c0_i32, %c0_i32_0 : i32, i32
  }
  func.func @transform_10(%arg0: i32, %arg1: i32) -> (i32, i32, i32) {
    %c0_i32 = arith.constant 0 : i32
    %c0_i32_0 = arith.constant 0 : i32
    return %arg0, %arg1, %c0_i32 : i32, i32, i32
  }
}

module attributes {stable_mosaic.version = 11 : i64} {
  func.func @_matmul_kernel(%arg0: i32, %arg1: i32, %arg2: i32, %arg3: memref<16x32xf32, #tpu.memory_space<vmem>>, %arg4: memref<32x32xbf16, #tpu.memory_space<vmem>>, %arg5: memref<1x32xf32, #tpu.memory_space<vmem>>, %arg6: memref<16x32xf32, #tpu.memory_space<vmem>>, %arg7: memref<16x32xf32, #tpu.memory_space<vmem>>) attributes {dimension_semantics = [#tpu.dimension_semantics<parallel>, #tpu.dimension_semantics<parallel>, #tpu.dimension_semantics<arbitrary>], iteration_bounds = array<i64: 1, 1, 1>, scalar_prefetch = 0 : i64, scratch_operands = 1 : i64, tpu.core_type = #tpu.core_type<tc>, window_params = [{transform_indices = @transform_0, window_bounds = array<i64: 16, 32>}, {transform_indices = @transform_1, window_bounds = array<i64: 32, 32>}, {transform_indices = @transform_2, window_bounds = array<i64: 1, 32>}, {transform_indices = @transform_3, window_bounds = array<i64: 16, 32>}]} {
    %c0_i32 = arith.constant 0 : i32
    %0 = arith.cmpi eq, %arg2, %c0_i32 : i32
    %1 = arith.extui %0 : i1 to i32
    %c0_i32_0 = arith.constant 0 : i32
    %2 = arith.cmpi ne, %1, %c0_i32_0 : i32
    scf.if %2 {
      %cst_10 = arith.constant 0.000000e+00 : f32
      %13 = vector.broadcast %cst_10 : f32 to vector<16x32xf32>
      %c0_11 = arith.constant 0 : index
      %c0_12 = arith.constant 0 : index
      %14 = vector.load %arg7[%c0_11, %c0_12] : memref<16x32xf32, #tpu.memory_space<vmem>>, vector<16x32xf32>
      tpu.vector_store %arg7[%c0_11, %c0_12], %13 {strides = array<i32>} : memref<16x32xf32, #tpu.memory_space<vmem>>, vector<16x32xf32>,
    } else {
    }
    %c0 = arith.constant 0 : index
    %c0_1 = arith.constant 0 : index
    %3 = vector.load %arg7[%c0, %c0_1] : memref<16x32xf32, #tpu.memory_space<vmem>>, vector<16x32xf32>
    %c0_2 = arith.constant 0 : index
    %c0_3 = arith.constant 0 : index
    %4 = vector.load %arg3[%c0_2, %c0_3] : memref<16x32xf32, #tpu.memory_space<vmem>>, vector<16x32xf32>
    %5 = arith.truncf %4 : vector<16x32xf32> to vector<16x32xbf16>
    %c0_4 = arith.constant 0 : index
    %c0_5 = arith.constant 0 : index
    %6 = vector.load %arg4[%c0_4, %c0_5] : memref<32x32xbf16, #tpu.memory_space<vmem>>, vector<32x32xbf16>
    %cst = arith.constant dense<0.000000e+00> : vector<16x32xf32>
    %7 = tpu.matmul %5, %6, %cst {dimension_numbers = #tpu.dot_dimension_numbers<[1], [0], [0], [1], [0, 0, 1, 1], [], []>} : vector<16x32xbf16>, vector<32x32xbf16>, vector<16x32xf32> -> vector<16x32xf32>
    %8 = arith.addf %3, %7 : vector<16x32xf32>
    %c0_6 = arith.constant 0 : index
    %c0_7 = arith.constant 0 : index
    %9 = vector.load %arg7[%c0_6, %c0_7] : memref<16x32xf32, #tpu.memory_space<vmem>>, vector<16x32xf32>
    tpu.vector_store %arg7[%c0_6, %c0_7], %8 {strides = array<i32>} : memref<16x32xf32, #tpu.memory_space<vmem>>, vector<16x32xf32>,
    %c0_i32_8 = arith.constant 0 : i32
    %10 = arith.cmpi eq, %arg2, %c0_i32_8 : i32
    %11 = arith.extui %10 : i1 to i32
    %c0_i32_9 = arith.constant 0 : i32
    %12 = arith.cmpi ne, %11, %c0_i32_9 : i32
    scf.if %12 {
      %c0_10 = arith.constant 0 : index
      %c0_11 = arith.constant 0 : index
      %13 = vector.load %arg7[%c0_10, %c0_11] : memref<16x32xf32, #tpu.memory_space<vmem>>, vector<16x32xf32>
      %c0_12 = arith.constant 0 : index
      %c0_13 = arith.constant 0 : index
      %14 = vector.load %arg5[%c0_12, %c0_13] : memref<1x32xf32, #tpu.memory_space<vmem>>, vector<1x32xf32>
      %15 = vector.broadcast %14 : vector<1x32xf32> to vector<16x32xf32>
      %16 = arith.addf %13, %15 : vector<16x32xf32>
      %c0_14 = arith.constant 0 : index
      %c0_15 = arith.constant 0 : index
      %17 = vector.load %arg6[%c0_14, %c0_15] : memref<16x32xf32, #tpu.memory_space<vmem>>, vector<16x32xf32>
      tpu.vector_store %arg6[%c0_14, %c0_15], %16 {strides = array<i32>} : memref<16x32xf32, #tpu.memory_space<vmem>>, vector<16x32xf32>,
    } else {
    }
    return
  }
  func.func @transform_0(%arg0: i32, %arg1: i32, %arg2: i32) -> (i32, i32) {
    %c0_i32 = arith.constant 0 : i32
    return %arg0, %arg2 : i32, i32
  }
  func.func @transform_1(%arg0: i32, %arg1: i32, %arg2: i32) -> (i32, i32) {
    %c0_i32 = arith.constant 0 : i32
    return %arg2, %arg1 : i32, i32
  }
  func.func @transform_2(%arg0: i32, %arg1: i32, %arg2: i32) -> (i32, i32) {
    %c0_i32 = arith.constant 0 : i32
    %c0_i32_0 = arith.constant 0 : i32
    return %c0_i32, %arg1 : i32, i32
  }
  func.func @transform_3(%arg0: i32, %arg1: i32, %arg2: i32) -> (i32, i32) {
    %c0_i32 = arith.constant 0 : i32
    return %arg0, %arg1 : i32, i32
  }
}

</mosaic_0001>

<bundles_post_ra>
// kernel: transformer_decoder_forward.8
= control target key start
LH: loop header
LB: loop body
LE: loop exit
PB: predicated region body
PF: predicated region fallthrough
CT: control target
= control target key end

     0   :  { %vm41_vm0 = vcmask 261120   ;;  %s133_s1 = inlined_call_operand.vmem [shape: bf16[32,32], index: 1, kind: input, shape index: {}]   ;;  %s134_s0 = inlined_call_operand.vmem [shape: f32[16,32], index: 0, kind: input, shape index: {}]   ;;  %s135_s2 = inlined_call_operand.vmem [shape: f32[1,32], index: 2, kind: input, shape index: {}]   ;;  %s136_s3 = inlined_call_operand.vmem [shape: f32[16,32], index: 3, kind: input, shape index: {}]   ;;  %s137_s4 = inlined_call_operand.vmem [shape: f32[16,32], index: 4, kind: output, shape index: {}]  }
   0x1   :  { %v79_v0 = vld [vmem:[%s133_s1 + $0x8] sm:$0xff]  ;;  %v78_v1 = vld [vmem:[%s133_s1] sm:$0xff] }
   0x2   :  { %51 = vmatpush.bf16.msra.mxu0 %v79_v0  ;;  %v18_v2 = vld [vmem:[%s134_s0] sm:$0xff]  ;;  %v19_v3 = vld [vmem:[%s134_s0 + $0x8] sm:$0xff] }
   0x3   :  { %v20_v4 = vpack.c.bf16 %v19_v3, %v18_v2  ;;  %v80_v5 = vld [vmem:[%s135_s2] ss:$0 sm:$0xff]  ;;  %v60_v11 = vld [vmem:[%s136_s3 + $0x8] sm:$0xff] }
   0x4   :  { %v59_v7 = vld [vmem:[%s136_s3] sm:$0xff] }
   0x6   :  { %52 = vmatpush.bf16.msra.mxu0 %v78_v1 }
   0x9   :  { %77 = vmatmul.msk.bf16.vlgmr.msra.gmra.mxu0 %vm41_vm0, %v20_v4 }
  0x86   :  { %v54_v6 = vpop.f32.mrf.mxu0 }
  0x87   :  { %v55_v8 = vadd.f32 %v80_v5, %v54_v6 }
  0x89   :  { %v61_v9 = vadd.f32 %v59_v7, %v55_v8 }
  0x8b   :  { %63 = vst.msk [vmem:[%s137_s4] sm:$0xff] %vm41_vm0, %v61_v9 }
  0x8e   :  { %v56_v10 = vpop.f32.mrf.mxu0 }
  0x8f   :  { %v57_v12 = vadd.f32 %v80_v5, %v56_v10 }
  0x91   :  { %v62_v13 = vadd.f32 %v60_v11, %v57_v12 }
  0x93   :  { %64 = vst.msk [vmem:[%s137_s4 + $0x8] sm:$0xff] %vm41_vm0, %v62_v13 }

// kernel: transformer_decoder_forward.9
= control target key start
LH: loop header
LB: loop body
LE: loop exit
PB: predicated region body
PF: predicated region fallthrough
CT: control target
= control target key end

     0   :  { %s990_s30 = smov 0   ;;  %s1096_s0 = inlined_call_operand.vmem [shape: f32[2,8,32], index: 0, kind: input, shape index: {}]   ;;  %s1097_s1 = inlined_call_operand.vmem [shape: bf16[32,32], index: 1, kind: input, shape index: {}]   ;;  %s1098_s2 = inlined_call_operand.vmem [shape: f32[1,32], index: 2, kind: input, shape index: {}]   ;;  %s1099_s3 = inlined_call_operand.vmem [shape: bf16[32,64], index: 3, kind: input, shape index: {}]   ;;  %s1100_s4 = inlined_call_operand.vmem [shape: f32[1,64], index: 4, kind: input, shape index: {}]   ;;  %s1101_s5 = inlined_call_operand.vmem [shape: bf16[32,32], index: 5, kind: input, shape index: {}]   ;;  %s1102_s6 = inlined_call_operand.vmem [shape: f32[1,32], index: 6, kind: input, shape index: {}]   ;;  %s1103_s7 = inlined_call_operand.vmem [shape: f32[1,32], index: 7, kind: input, shape index: {}]   ;;  %s1104_s8 = inlined_call_operand.vmem [shape: f32[1,32], index: 8, kind: input, shape index: {}]   ;;  %s1105_s9 = inlined_call_operand.vmem [shape: f32[2,8,32], index: 9, kind: output, shape index: {}]  }
   0x1 LB: > { %s827_s10 = sadd.s32 4294967295, %s927_s30   ;;  %p831_p0 = scmp.ge.s32.totalorder %s927_s30, 1  ;;  %s927_s30 = sphi %s990_s30, %s19_s30  }
   0x2   : > { %p286_p1 = scmp.lt.s32.totalorder %s927_s30, 3 }
   0x4   : > { %p287_p2 = pnand %p831_p0, %p286_p1 }
   0x5   : > { %p320_p3 = scmp.lt.s32.totalorder (!%p287_p2), %s827_s10, 1  ;;  %s929_s27 = smov (!%p287_p2), 96  }
   0x6   : > { %290 = sbr.rel (%p287_p2) target bundleno = 1615 (0x64f), region = 56  ;;  %s930_s28 = smov (!%p287_p2), 120  }
   0x7   : > { %s931_s29 = smov (!%p287_p2), 112   ;;  %s932_s11 = smov (!%p287_p2), 104  }
   0x8   : > { %s933_s12 = smov (!%p287_p2), 88   ;;  %s934_s13 = smov (!%p287_p2), 80  }
   0x9   : > { %s935_s14 = smov (!%p287_p2), 72   ;;  %s936_s15 = smov (!%p287_p2), 16  }
   0xa   : > { %s937_s18 = smov (!%p287_p2), 8   ;;  %s938_s20 = smov (!%p287_p2), 24  }
   0xb   : > { %v872_v0 = vld [vmem:[%s1097_s1 + $0x8] sm:$0xff]  ;;  %v871_v2 = vld [vmem:[%s1097_s1] sm:$0xff]  ;;  %s1107_s10 = smov (!%p320_p3, %s827_s10), 1  ;;  %vm363_vm0 = vcmask 261120   ;;  %vm410_vm1 = vcmask 64512   ;;  %vm461_vm2 = vcmask 1043456  }
   0xc   : > { %v874_v1 = vld [vmem:[%s1099_s3 + $0x8] sm:$0xff]  ;;  %373 = vmatpush.bf16.msra.mxu0 %v872_v0  ;;  %v873_v3 = vld [vmem:[%s1099_s3] sm:$0xff]  ;;  %s832_s19 = sshll.u32 %s1107_s10, 3 }
   0xd   : > { %401 = vmatpush.bf16.msra.mxu1 %v874_v1  ;;  %s323_s22 = scalar_lea.vmem %s1096_s0, %s832_s19  ;;  %v896_v6 = vld [vmem:[%s1098_s2] ss:$0 sm:$0xff] }
   0xe   : > { %v1018_v4 = vld [vmem:[%s323_s22] sm:$0xff] }
   0xf   : > { %v347_v5 = vpack.c.bf16 %v1018_v4, %v1018_v4  ;;  %v897_v7 = vld [vmem:[%s1100_s4] ss:$0 sm:$0xff] }
  0x10   : > { %374 = vmatpush.bf16.msra.mxu0 %v871_v2 }
  0x11   : > { %402 = vmatpush.bf16.msra.mxu1 %v873_v3 }
  0x13   : > { %842 = vmatmul.msk.bf16.vlgmr.msra.gmra.mxu0 %vm363_vm0, %v347_v5 }
  0x14   : > { %851 = vmatmul.msk.bf16.vlgmr.msra.gmra.mxu1 %vm363_vm0, %v347_v5 }
  0x90   : > { %v376_v8 = vpop.f32.mrf.mxu0 }
  0x91   : > { %v404_v9 = vpop.f32.mrf.mxu1  ;;  %v377_v10 = vadd.f32 %v896_v6, %v376_v8 }
  0x92   : > { %v405_v11 = vadd.f32 %v897_v7, %v404_v9 }
  0x93   : > { %v408_v12 = vpack.c.bf16 %v377_v10, %v377_v10 }
  0x94   : > { %v1030_v13 = vpack.c.bf16 %v405_v11, %v405_v11 }
  0x95   : > { %479 = vrot.lane.b32.xlu2 %v408_v12, %s930_s28 }
  0x96   : > { %456 = vrot.lane.b32.xlu1 %v1030_v13, %s929_s27  ;;  %v415_v14 = vsel %vm410_vm1, %v1030_v13, 0 }
  0x97   : > { %424 = vmatpush.bf16.xpose.msra.mxu2 %v415_v14 }
  0x98   : > { %v378_v15 = vpop.f32.mrf.mxu0 }
  0x99   : > { %v406_v16 = vpop.f32.mrf.mxu1 }
  0x9d   : > { %550 = vrot.lane.b32.xlu2 %v1030_v13, %s931_s29 }
  0x9e   : > { %481 = vrot.lane.b32.xlu1 %v1030_v13, %s930_s28  ;;  %852 = vmatmul.msk.bf16.vlgmr.msra.gmra.mxu2 %vm410_vm1, %v408_v12 }
  0xa5   : > { %617 = vrot.lane.b32.xlu2 %v408_v12, %s932_s11 }
  0xa6   : > { %548 = vrot.lane.b32.xlu1 %v408_v12, %s931_s29 }
  0xef   : > { %v480_v17 = vpop.permute.xlu2 %479 }
  0xf7   : > { %v551_v18 = vpop.permute.xlu2 %550 }
  0xf8   : > { %v556_v19 = vsel %vm410_vm1, %v551_v18, 0 }
  0xf9   : > { %565 = vmatpush.bf16.xpose.msrb.mxu1 %v556_v19 }
  0xff   : > { %v618_v51 = vpop.permute.xlu2 %617 }
 0x108   : > { %v457_v20 = vpop.permute.xlu1 %456 }
 0x109   : > { %v463_v21 = vsel %vm461_vm2, %v457_v20, 0 }
 0x10a   : > { %472 = vmatpush.bf16.msra.mxu3 %v463_v21 }
 0x110   : > { %v482_v22 = vpop.permute.xlu1 %481 }
 0x111   : > { %v487_v23 = vsel %vm410_vm1, %v482_v22, 0 }
 0x112   : > { %496 = vmatpush.bf16.xpose.msrb.mxu3 %v487_v23 }
 0x118   : > { %v549_v24 = vpop.permute.xlu1 %548 }
 0x119   : > { %856 = vmatmul.msk.bf16.vlgmr.msrb.gmra.mxu1 %vm410_vm1, %v549_v24 }
 0x121   : > { %v426_v25 = vpop.f32.mrf.mxu2 }
 0x122   : > { %v430_v26 = vsel %vm410_vm1, %v426_v25, -inf }
 0x123   : > { %431 = vmax.xlane.f32.xlu0 %v430_v26 }
 0x129   : > { %v428_v27 = vpop.f32.mrf.mxu2 }
 0x196   : > { %v567_v28 = vpop.f32.mrf.mxu1  ;;  %v432_v29 = vpop.xlane.xlu0 %431 }
 0x197   : > { %v571_v30 = vsel %vm410_vm1, %v567_v28, -inf  ;;  %v433_v31 = vsub.f32 %v426_v25, %v432_v29 }
 0x198   : > { %572 = vmax.xlane.f32.xlu2 %v571_v30 }
 0x199   : > { %v434_v32 = vmul.f32 1.442695, %v433_v31 }
 0x19b   : > { %901 = vpow2.f32 %v434_v32 }
 0x19e   : > { %v569_v33 = vpop.f32.mrf.mxu1 }
 0x1a1   : > { %v902_v34 = vpop.eup %901 }
 0x1a2   : > { %v436_v35 = vsel %vm410_vm1, %v902_v34, 0.0 }
 0x1a3   : > { %437 = vadd.xlane.f32.xlu0 %v436_v35 }
 0x1b7   : > { %619 = vrot.lane.b32.xlu0 %v1030_v13, %s932_s11 }
 0x20b   : > { %v573_v53 = vpop.xlane.xlu2 %572 }
 0x20c   : > { %v574_v54 = vsub.f32 %v567_v28, %v573_v53 }
 0x20e   : > { %v575_v56 = vmul.f32 1.442695, %v574_v54 }
 0x216   : > { %v438_v36 = vpop.xlane.xlu0 %437 }
 0x217   : > { %903 = vrcp.f32 %v438_v36  ;;  %v450_v40 = vand.u32 2147483648, %v438_v36  ;;  %v448_v42 = vand.u32 2147483647, %v438_v36  ;;  %vm444_vm4 = vweird.f32 %v438_v36 }
 0x218   : > { %905 = vpow2.f32 %v575_v56 }
 0x219   : > { %v451_v44 = vor.u32 1.1754944e-38, %v450_v40  ;;  %vm449_vm6 = vcmp.eq.f32.partialorder %v448_v42, 8.507059e+37 }
 0x21d   : > { %v904_v37 = vpop.eup %903 }
 0x21e   : > { %v440_v38 = vmul.f32 %v904_v37, %v438_v36  ;;  %vm445_vm3 = vweird.f32 %v904_v37  ;;  %v906_v59 = vpop.eup %905 }
 0x21f   : > { %vm446_vm5 = vmor %vm444_vm4, %vm445_vm3  ;;  %v577_v61 = vsel %vm410_vm1, %v906_v59, 0.0 }
 0x220   : > { %v441_v39 = vsub.f32 1.0, %v440_v38 }
 0x222   : > { %v442_v41 = vmul.f32 %v904_v37, %v441_v39 }
 0x224   : > { %v443_v43 = vadd.f32 %v904_v37, %v442_v41 }
 0x226   : > { %v447_v45 = vsel %vm446_vm5, %v904_v37, %v443_v43 }
 0x227   : > { %v452_v46 = vsel %vm449_vm6, %v451_v44, %v447_v45  ;;  %vm701_vm6 = vcmask 195584  }
 0x228   : > { %v453_v47 = vmul.f32 %v902_v34, %v452_v46 }
 0x229   : > { %v620_v48 = vpop.permute.xlu0 %619 }
 0x22a   : > { %v625_v49 = vsel %vm410_vm1, %v620_v48, 0  ;;  %v454_v50 = vpack.c.bf16 %v453_v47, %v453_v47 }
 0x22c   : > { %853 = vmatmul.msk.bf16.vlgmr.msra.gmra.mxu3 %vm410_vm1, %v454_v50 }
 0x22d   : > { %634 = vmatpush.bf16.xpose.msra.mxu3 %v625_v49 }
 0x23c   : > { %854 = vmatmul.msk.bf16.vlgmr.msrb.gmra.mxu3 %vm410_vm1, %v480_v17 }
 0x24c   : > { %858 = vmatmul.msk.bf16.vlgmr.msra.gmra.mxu3 %vm410_vm1, %v618_v51 }
 0x2af   : > { %v1050_v52 = vpop.f32.mrf.mxu3 }
 0x2b7   : > { %v476_v55 = vpop.f32.mrf.mxu3 }
 0x2bf   : > { %v498_v57 = vpop.f32.mrf.mxu3 }
 0x2c0   : > { %v502_v58 = vsel %vm410_vm1, %v498_v57, -inf }
 0x2c1   : > { %503 = vmax.xlane.f32.xlu1 %v502_v58 }
 0x2c7   : > { %v500_v60 = vpop.f32.mrf.mxu3 }
 0x2c8   : > { %v876_v60 = vld [vmem:[%s1101_s5 + $0x8] sm:$0xff] }
 0x2c9   : > { %578 = vadd.xlane.f32.xlu1 %v577_v61  ;;  %728 = vmatpush.bf16.msra.mxu1 %v876_v60 }
 0x2cf   : > { %v636_v62 = vpop.f32.mrf.mxu3 }
 0x2d0   : > { %v640_v63 = vsel %vm410_vm1, %v636_v62, -inf }
 0x2d1   : > { %641 = vmax.xlane.f32.xlu0 %v640_v63 }
 0x2d7   : > { %v638_v0 = vpop.f32.mrf.mxu3 }
 0x2e2   : > { %527 = vrot.lane.b32.xlu1 %v1030_v13, %s933_s12  ;;  %s327_s12 = scalar_lea.vmem %s1105_s9, %s832_s19 }
 0x2e5   : > { %596 = vrot.lane.b32.xlu0 %v1030_v13, %s934_s13 }
 0x334   : > { %v504_v1 = vpop.xlane.xlu1 %503 }
 0x335   : > { %v505_v2 = vsub.f32 %v498_v57, %v504_v1  ;;  %v875_v1 = vld [vmem:[%s1101_s5] sm:$0xff] }
 0x336   : > { %729 = vmatpush.bf16.msra.mxu1 %v875_v1 }
 0x337   : > { %v506_v3 = vmul.f32 1.442695, %v505_v2 }
 0x339   : > { %907 = vpow2.f32 %v506_v3 }
 0x33c   : > { %v579_v5 = vpop.xlane.xlu1 %578 }
 0x33d   : > { %909 = vrcp.f32 %v579_v5  ;;  %v591_v17 = vand.u32 2147483648, %v579_v5  ;;  %vm585_vm8 = vweird.f32 %v579_v5  ;;  %v589_v18 = vand.u32 2147483647, %v579_v5 }
 0x33f   : > { %v908_v6 = vpop.eup %907  ;;  %v592_v22 = vor.u32 1.1754944e-38, %v591_v17  ;;  %vm590_vm10 = vcmp.eq.f32.partialorder %v589_v18, 8.507059e+37  ;;  %v939_v17 = vmov 32.0  }
 0x340   : > { %v508_v7 = vsel %vm410_vm1, %v908_v6, 0.0 }
 0x341   : > { %509 = vadd.xlane.f32.xlu2 %v508_v7 }
 0x343   : > { %v910_v8 = vpop.eup %909 }
 0x344   : > { %v581_v9 = vmul.f32 %v910_v8, %v579_v5  ;;  %v642_v10 = vpop.xlane.xlu0 %641  ;;  %vm586_vm7 = vweird.f32 %v910_v8 }
 0x345   : > { %v643_v11 = vsub.f32 %v636_v62, %v642_v10  ;;  %vm587_vm9 = vmor %vm585_vm8, %vm586_vm7  ;;  %v898_v10 = vld [vmem:[%s1102_s6] ss:$0 sm:$0xff] }
 0x346   : > { %v582_v12 = vsub.f32 1.0, %v581_v9 }
 0x347   : > { %v644_v14 = vmul.f32 1.442695, %v643_v11 }
 0x348   : > { %v583_v15 = vmul.f32 %v910_v8, %v582_v12 }
 0x349   : > { %911 = vpow2.f32 %v644_v14 }
 0x34a   : > { %v584_v16 = vadd.f32 %v910_v8, %v583_v15 }
 0x34c   : > { %v588_v21 = vsel %vm587_vm9, %v910_v8, %v584_v16 }
 0x34d   : > { %v593_v23 = vsel %vm590_vm10, %v592_v22, %v588_v21 }
 0x34e   : > { %v594_v26 = vmul.f32 %v906_v59, %v593_v23 }
 0x34f   : > { %v912_v19 = vpop.eup %911 }
 0x350   : > { %v646_v20 = vsel %vm410_vm1, %v912_v19, 0.0  ;;  %v595_v29 = vpack.c.bf16 %v594_v26, %v594_v26 }
 0x351   : > { %647 = vadd.xlane.f32.xlu2 %v646_v20 }
 0x354   : > { %v528_v24 = vpop.permute.xlu1 %527 }
 0x355   : > { %v533_v25 = vsel %vm461_vm2, %v528_v24, 0 }
 0x356   : > { %542 = vmatpush.bf16.msrb.mxu0 %v533_v25 }
 0x357   : > { %v597_v27 = vpop.permute.xlu0 %596 }
 0x358   : > { %v602_v28 = vsel %vm461_vm2, %v597_v27, 0 }
 0x359   : > { %611 = vmatpush.bf16.msrb.mxu2 %v602_v28 }
 0x35c   : > { %857 = vmatmul.msk.bf16.vlgmr.msrb.gmra.mxu2 %vm410_vm1, %v595_v29 }
 0x369   : > { %665 = vrot.lane.b32.xlu2 %v1030_v13, %s935_s14 }
 0x3b4   : > { %v510_v30 = vpop.xlane.xlu2 %509 }
 0x3b5   : > { %913 = vrcp.f32 %v510_v30  ;;  %v522_v35 = vand.u32 2147483648, %v510_v30  ;;  %v520_v36 = vand.u32 2147483647, %v510_v30  ;;  %vm516_vm12 = vweird.f32 %v510_v30 }
 0x3b7   : > { %v523_v38 = vor.u32 1.1754944e-38, %v522_v35  ;;  %vm521_vm14 = vcmp.eq.f32.partialorder %v520_v36, 8.507059e+37  ;;  %v899_v36 = vld [vmem:[%s1103_s7] ss:$0 sm:$0xff] }
 0x3bb   : > { %v914_v31 = vpop.eup %913 }
 0x3bc   : > { %v512_v32 = vmul.f32 %v914_v31, %v510_v30  ;;  %vm517_vm11 = vweird.f32 %v914_v31 }
 0x3bd   : > { %vm518_vm13 = vmor %vm516_vm12, %vm517_vm11 }
 0x3be   : > { %v513_v33 = vsub.f32 1.0, %v512_v32 }
 0x3c0   : > { %v514_v34 = vmul.f32 %v914_v31, %v513_v33 }
 0x3c2   : > { %v515_v37 = vadd.f32 %v914_v31, %v514_v34 }
 0x3c4   : > { %v648_v39 = vpop.xlane.xlu2 %647  ;;  %v519_v40 = vsel %vm518_vm13, %v914_v31, %v515_v37 }
 0x3c5   : > { %915 = vrcp.f32 %v648_v39  ;;  %v524_v41 = vsel %vm521_vm14, %v523_v38, %v519_v40  ;;  %v660_v48 = vand.u32 2147483648, %v648_v39  ;;  %v658_v50 = vand.u32 2147483647, %v648_v39  ;;  %v900_v38 = vld [vmem:[%s1104_s8] ss:$0 sm:$0xff] }
 0x3c6   : > { %v525_v42 = vmul.f32 %v908_v6, %v524_v41  ;;  %vm654_vm3 = vweird.f32 %v648_v39  ;;  %917 = vrcp.f32 %v939_v17 }
 0x3c7   : > { %v661_v53 = vor.u32 1.1754944e-38, %v660_v48  ;;  %vm659_vm5 = vcmp.eq.f32.partialorder %v658_v50, 8.507059e+37 }
 0x3c8   : > { %v526_v13 = vpack.c.bf16 %v525_v42, %v525_v42 }
 0x3ca   : > { %855 = vmatmul.msk.bf16.vlgmr.msrb.gmra.mxu0 %vm410_vm1, %v526_v13 }
 0x3cb   : > { %v916_v43 = vpop.eup %915 }
 0x3cc   : > { %v650_v44 = vmul.f32 %v916_v43, %v648_v39  ;;  %v666_v45 = vpop.permute.xlu2 %665  ;;  %vm655_vm15 = vweird.f32 %v916_v43 }
 0x3cd   : > { %v671_v46 = vsel %vm461_vm2, %v666_v45, 0  ;;  %vm656_vm4 = vmor %vm654_vm3, %vm655_vm15  ;;  %vm699_vm2 = vcmask 130048  }
 0x3ce   : > { %v651_v47 = vsub.f32 1.0, %v650_v44  ;;  %680 = vmatpush.bf16.msra.mxu0 %v671_v46 }
 0x3d0   : > { %v652_v49 = vmul.f32 %v916_v43, %v651_v47 }
 0x3d2   : > { %v653_v51 = vadd.f32 %v916_v43, %v652_v49 }
 0x3d4   : > { %v657_v54 = vsel %vm656_vm4, %v916_v43, %v653_v51 }
 0x3d5   : > { %v662_v55 = vsel %vm659_vm5, %v661_v53, %v657_v54 }
 0x3d6   : > { %v663_v56 = vmul.f32 %v912_v19, %v662_v55 }
 0x3d8   : > { %v664_v57 = vpack.c.bf16 %v663_v56, %v663_v56 }
 0x3da   : > { %859 = vmatmul.msk.bf16.vlgmr.msra.gmra.mxu0 %vm410_vm1, %v664_v57 }
 0x3df   : > { %v613_v58 = vpop.f32.mrf.mxu2 }
 0x3e0   : > { %691 = vrot.lane.b32.xlu1 %v613_v58, %s936_s15 }
 0x3e7   : > { %v615_v59 = vpop.f32.mrf.mxu2 }
 0x447   : > { %v544_v61 = vpop.f32.mrf.mxu0 }
 0x448   : > { %687 = vrot.lane.b32.xlu0 %v544_v61, %s937_s18 }
 0x44f   : > { %v546_v62 = vpop.f32.mrf.mxu0 }
 0x452   : > { %v692_v3 = vpop.permute.xlu1 %691 }
 0x457   : > { %v682_v63 = vpop.f32.mrf.mxu0 }
 0x458   : > { %695 = vrot.lane.b32.xlu2 %v682_v63, %s938_s20 }
 0x45f   : > { %v684_v0 = vpop.f32.mrf.mxu0 }
 0x4b2   : > { %v696_v6 = vpop.permute.xlu2 %695 }
 0x4ba   : > { %v688_v2 = vpop.permute.xlu0 %687 }
 0x4bb   : > { %v698_v5 = vsel %vm410_vm1, %v1050_v52, %v688_v2  ;;  %v918_v52 = vpop.eup %917 }
 0x4bc   : > { %v700_v7 = vsel %vm699_vm2, %v698_v5, %v692_v3  ;;  %v740_v18 = vmul.f32 32.0, %v918_v52  ;;  %vm744_vm1 = vweird.f32 %v918_v52 }
 0x4bd   : > { %v702_v8 = vsel %vm701_vm6, %v700_v7, %v696_v6 }
 0x4be   : > { %v703_v9 = vpack.c.bf16 %v702_v8, %v702_v8  ;;  %v741_v19 = vsub.f32 1.0, %v740_v18 }
 0x4c0   : > { %868 = vmatmul.msk.bf16.vlgmr.msra.gmra.mxu1 %vm363_vm0, %v703_v9  ;;  %v742_v20 = vmul.f32 %v918_v52, %v741_v19 }
 0x4c2   : > { %v743_v21 = vadd.f32 %v918_v52, %v742_v20 }
 0x4c4   : > { %v745_v22 = vsel %vm744_vm1, %v918_v52, %v743_v21 }
 0x53d   : > { %v731_v11 = vpop.f32.mrf.mxu1 }
 0x53e   : > { %v732_v12 = vadd.f32 %v898_v10, %v731_v11 }
 0x540   : > { %v735_v14 = vadd.f32 %v732_v12, %v1018_v4 }
 0x542   : > { %v736_v15 = vsel %vm363_vm0, %v735_v14, 0.0 }
 0x543   : > { %737 = vadd.xlane.f32.xlu0 %v736_v15 }
 0x545   : > { %v733_v16 = vpop.f32.mrf.mxu1 }
 0x5b6   : > { %v738_v23 = vpop.xlane.xlu0 %737 }
 0x5b7   : > { %v746_v24 = vmul.f32 %v745_v22, %v738_v23 }
 0x5b9   : > { %v747_v25 = vsub.f32 %v735_v14, %v746_v24 }
 0x5bb   : > { %v748_v26 = vmul.f32 %v747_v25, %v747_v25 }
 0x5bd   : > { %v749_v27 = vsel %vm363_vm0, %v748_v26, 0.0 }
 0x5be   : > { %750 = vadd.xlane.f32.xlu1 %v749_v27 }
 0x631   : > { %v751_v4 = vpop.xlane.xlu1 %750 }
 0x632   : > { %v752_v28 = vmul.f32 %v751_v4, %v745_v22 }
 0x634   : > { %v753_v29 = vadd.f32 1e-05, %v752_v28 }
 0x636   : > { %919 = vrsqrt.f32 %v753_v29  ;;  %vm760_vm8 = vweird.f32 %v753_v29 }
 0x63c   : > { %v920_v30 = vpop.eup %919 }
 0x63d   : > { %v755_v31 = vmul.f32 %v920_v30, %v753_v29  ;;  %vm761_vm7 = vweird.f32 %v920_v30 }
 0x63e   : > { %vm762_vm9 = vmor %vm760_vm8, %vm761_vm7 }
 0x63f   : > { %v756_v32 = vmul.f32 %v920_v30, %v755_v31 }
 0x641   : > { %v757_v33 = vmul.f32 0.5, %v756_v32 }
 0x643   : > { %v758_v34 = vsub.f32 1.5, %v757_v33 }
 0x645   : > { %v759_v35 = vmul.f32 %v920_v30, %v758_v34 }
 0x647   : > { %v763_v37 = vsel %vm762_vm9, %v920_v30, %v759_v35 }
 0x648   : > { %v764_v39 = vmul.f32 %v763_v37, %v747_v25 }
 0x64a   : > { %v768_v40 = vmul.f32 %v899_v36, %v764_v39 }
 0x64c   : > { %v772_v41 = vadd.f32 %v900_v38, %v768_v40 }
 0x64e   : > { %773 = vst.msk [vmem:[%s327_s12] sm:$0xff] %vm363_vm0, %v772_v41 }
 0x64f PF: > { %s19_s30 = sadd.s32 1, %s927_s30  }
 0x650   : > { %p16_p4 = scmp.ge.s32.totalorder %s19_s30, 4  }
 0x652   :  { %18 = sbr.rel (!%p16_p4) target bundleno = 1 (0x1), region = 86 }

// kernel: transformer_decoder_forward.10
= control target key start
LH: loop header
LB: loop body
LE: loop exit
PB: predicated region body
PF: predicated region fallthrough
CT: control target
= control target key end

     0   :  { %s1141_s13 = smov 0   ;;  %s1143_s14 = smov 0   ;;  %s1266_s0 = inlined_call_operand.vmem [shape: f32[2,8,32], index: 0, kind: input, shape index: {}]   ;;  %s1267_s1 = inlined_call_operand.vmem [shape: f32[2,8,32], index: 1, kind: input, shape index: {}]   ;;  %s1268_s2 = inlined_call_operand.vmem [shape: bf16[32,32], index: 2, kind: input, shape index: {}]   ;;  %s1269_s3 = inlined_call_operand.vmem [shape: f32[1,32], index: 3, kind: input, shape index: {}]   ;;  %s1270_s4 = inlined_call_operand.vmem [shape: bf16[32,64], index: 4, kind: input, shape index: {}]   ;;  %s1271_s5 = inlined_call_operand.vmem [shape: f32[1,64], index: 5, kind: input, shape index: {}]   ;;  %s1272_s6 = inlined_call_operand.vmem [shape: bf16[32,32], index: 6, kind: input, shape index: {}]   ;;  %s1273_s7 = inlined_call_operand.vmem [shape: f32[1,32], index: 7, kind: input, shape index: {}]   ;;  %s1274_s8 = inlined_call_operand.vmem [shape: f32[1,32], index: 8, kind: input, shape index: {}]   ;;  %s1275_s9 = inlined_call_operand.vmem [shape: f32[1,32], index: 9, kind: input, shape index: {}]   ;;  %s1276_s10 = inlined_call_operand.vmem [shape: f32[2,8,32], index: 10, kind: output, shape index: {}]  }
   0x1   :  { %s1145_s15 = smov 0  }
   0x2 LB: > { %s32_s16 = sadd.s32 1, %s1069_s14  ;;  %p944_p0 = scmp.ge.s32.totalorder %s1073_s15, 1  ;;  %s1073_s15 = sphi %s1145_s15, %s20_s15   ;;  %s1069_s14 = sphi %s1143_s14, %s1278_s14   ;;  %s1065_s13 = sphi %s1141_s13, %s1277_s13  }
   0x3   : > { %p34_p1 = scmp.ge.s32.totalorder %s32_s16, 2  ;;  %p339_p2 = scmp.lt.s32.totalorder %s1073_s15, 3 }
   0x5   : > { %s1280_s16 = smov (%p34_p1, %s32_s16), 0  ;;  %p340_p3 = pnand %p944_p0, %p339_p2 }
   0x6   : > { %p385_p4 = scmp.lt.s32.totalorder (!%p340_p3), %s1065_s13, 1  ;;  %s1075_s19 = smov (!%p340_p3), 120  }
   0x7   : > { %343 = sbr.rel (%p340_p3) target bundleno = 1616 (0x650), region = 60  ;;  %s1076_s20 = smov (!%p340_p3), 96  }
   0x8   : > { %s1077_s21 = smov (!%p340_p3), 112   ;;  %s1078_s22 = smov (!%p340_p3), 104  }
   0x9   : > { %s1079_s23 = smov (!%p340_p3), 88   ;;  %s1080_s24 = smov (!%p340_p3), 80  }
   0xa   : > { %s1081_s26 = smov (!%p340_p3), 72   ;;  %s1082_s27 = smov (!%p340_p3), 16  }
   0xb   : > { %s1083_s30 = smov (!%p340_p3), 8  }
   0xc   : > { %v986_v0 = vld [vmem:[%s1268_s2 + $0x8] sm:$0xff]  ;;  %v985_v2 = vld [vmem:[%s1268_s2] sm:$0xff]  ;;  %s1282_s13 = smov (!%p385_p4, %s1065_s13), 1  ;;  %vm439_vm0 = vcmask 261120   ;;  %vm490_vm1 = vcmask 64512   ;;  %vm541_vm2 = vcmask 1043456  }
   0xd   : > { %v988_v1 = vld [vmem:[%s1270_s4 + $0x8] sm:$0xff]  ;;  %449 = vmatpush.bf16.msra.mxu0 %v986_v0  ;;  %v987_v3 = vld [vmem:[%s1270_s4] sm:$0xff]  ;;  %s1171_s25 = sshll.u32 %s1282_s13, 3 }
   0xe   : > { %481 = vmatpush.bf16.msra.mxu1 %v988_v1  ;;  %s391_s28 = scalar_lea.vmem %s1266_s0, %s1171_s25  ;;  %s395_s11 = scalar_lea.vmem %s1267_s1, %s1171_s25  ;;  %v1026_v8 = vld [vmem:[%s1269_s3] ss:$0 sm:$0xff] }
   0xf   : > { %v1177_v4 = vld [vmem:[%s391_s28] sm:$0xff] }
  0x10   : > { %v423_v5 = vpack.c.bf16 %v1177_v4, %v1177_v4  ;;  %v405_v6 = vld [vmem:[%s395_s11] sm:$0xff]  ;;  %s1084_s11 = smov 24  }
  0x11   : > { %450 = vmatpush.bf16.msra.mxu0 %v985_v2  ;;  %v456_v7 = vpack.c.bf16 %v405_v6, %v405_v6  ;;  %v1027_v9 = vld [vmem:[%s1271_s5] ss:$0 sm:$0xff] }
  0x12   : > { %482 = vmatpush.bf16.msra.mxu1 %v987_v3 }
  0x14   : > { %956 = vmatmul.msk.bf16.vlgmr.msra.gmra.mxu0 %vm439_vm0, %v423_v5 }
  0x15   : > { %965 = vmatmul.msk.bf16.vlgmr.msra.gmra.mxu1 %vm439_vm0, %v456_v7 }
  0x91   : > { %v452_v10 = vpop.f32.mrf.mxu0 }
  0x92   : > { %v453_v11 = vadd.f32 %v1026_v8, %v452_v10  ;;  %v484_v12 = vpop.f32.mrf.mxu1 }
  0x93   : > { %v485_v13 = vadd.f32 %v1027_v9, %v484_v12 }
  0x94   : > { %v488_v14 = vpack.c.bf16 %v453_v11, %v453_v11 }
  0x95   : > { %v1193_v15 = vpack.c.bf16 %v485_v13, %v485_v13 }
  0x96   : > { %559 = vrot.lane.b32.xlu2 %v488_v14, %s1075_s19 }
  0x97   : > { %536 = vrot.lane.b32.xlu1 %v1193_v15, %s1076_s20  ;;  %v495_v16 = vsel %vm490_vm1, %v1193_v15, 0 }
  0x98   : > { %504 = vmatpush.bf16.xpose.msra.mxu2 %v495_v16 }
  0x99   : > { %v454_v17 = vpop.f32.mrf.mxu0 }
  0x9a   : > { %v486_v18 = vpop.f32.mrf.mxu1 }
  0x9e   : > { %630 = vrot.lane.b32.xlu2 %v1193_v15, %s1077_s21 }
  0x9f   : > { %561 = vrot.lane.b32.xlu1 %v1193_v15, %s1075_s19  ;;  %966 = vmatmul.msk.bf16.vlgmr.msra.gmra.mxu2 %vm490_vm1, %v488_v14 }
  0xa6   : > { %697 = vrot.lane.b32.xlu2 %v488_v14, %s1078_s22 }
  0xa7   : > { %628 = vrot.lane.b32.xlu1 %v488_v14, %s1077_s21 }
  0xf0   : > { %v560_v19 = vpop.permute.xlu2 %559 }
  0xf8   : > { %v631_v20 = vpop.permute.xlu2 %630 }
  0xf9   : > { %v636_v21 = vsel %vm490_vm1, %v631_v20, 0 }
  0xfa   : > { %645 = vmatpush.bf16.xpose.msrb.mxu1 %v636_v21 }
 0x100   : > { %v698_v53 = vpop.permute.xlu2 %697 }
 0x109   : > { %v537_v22 = vpop.permute.xlu1 %536 }
 0x10a   : > { %v543_v23 = vsel %vm541_vm2, %v537_v22, 0 }
 0x10b   : > { %552 = vmatpush.bf16.msra.mxu3 %v543_v23 }
 0x111   : > { %v562_v24 = vpop.permute.xlu1 %561 }
 0x112   : > { %v567_v25 = vsel %vm490_vm1, %v562_v24, 0 }
 0x113   : > { %576 = vmatpush.bf16.xpose.msrb.mxu3 %v567_v25 }
 0x119   : > { %v629_v26 = vpop.permute.xlu1 %628 }
 0x11a   : > { %970 = vmatmul.msk.bf16.vlgmr.msrb.gmra.mxu1 %vm490_vm1, %v629_v26 }
 0x122   : > { %v506_v27 = vpop.f32.mrf.mxu2 }
 0x123   : > { %v510_v28 = vsel %vm490_vm1, %v506_v27, -inf }
 0x124   : > { %511 = vmax.xlane.f32.xlu0 %v510_v28 }
 0x12a   : > { %v508_v29 = vpop.f32.mrf.mxu2 }
 0x197   : > { %v647_v30 = vpop.f32.mrf.mxu1  ;;  %v512_v31 = vpop.xlane.xlu0 %511 }
 0x198   : > { %v513_v32 = vsub.f32 %v506_v27, %v512_v31  ;;  %v651_v33 = vsel %vm490_vm1, %v647_v30, -inf }
 0x199   : > { %652 = vmax.xlane.f32.xlu2 %v651_v33 }
 0x19a   : > { %v514_v34 = vmul.f32 1.442695, %v513_v32 }
 0x19c   : > { %1031 = vpow2.f32 %v514_v34 }
 0x19f   : > { %v649_v35 = vpop.f32.mrf.mxu1 }
 0x1a2   : > { %v1032_v36 = vpop.eup %1031 }
 0x1a3   : > { %v516_v37 = vsel %vm490_vm1, %v1032_v36, 0.0 }
 0x1a4   : > { %517 = vadd.xlane.f32.xlu0 %v516_v37 }
 0x1b8   : > { %699 = vrot.lane.b32.xlu0 %v1193_v15, %s1078_s22 }
 0x20c   : > { %v653_v55 = vpop.xlane.xlu2 %652 }
 0x20d   : > { %v654_v56 = vsub.f32 %v647_v30, %v653_v55 }
 0x20f   : > { %v655_v58 = vmul.f32 1.442695, %v654_v56 }
 0x217   : > { %v518_v38 = vpop.xlane.xlu0 %517 }
 0x218   : > { %1033 = vrcp.f32 %v518_v38  ;;  %v530_v42 = vand.u32 2147483648, %v518_v38  ;;  %v528_v44 = vand.u32 2147483647, %v518_v38  ;;  %vm524_vm4 = vweird.f32 %v518_v38 }
 0x219   : > { %1035 = vpow2.f32 %v655_v58 }
 0x21a   : > { %v531_v46 = vor.u32 1.1754944e-38, %v530_v42  ;;  %vm529_vm6 = vcmp.eq.f32.partialorder %v528_v44, 8.507059e+37 }
 0x21e   : > { %v1034_v39 = vpop.eup %1033 }
 0x21f   : > { %v520_v40 = vmul.f32 %v1034_v39, %v518_v38  ;;  %vm525_vm3 = vweird.f32 %v1034_v39  ;;  %v1036_v61 = vpop.eup %1035 }
 0x220   : > { %vm526_vm5 = vmor %vm524_vm4, %vm525_vm3  ;;  %v657_v63 = vsel %vm490_vm1, %v1036_v61, 0.0 }
 0x221   : > { %v521_v41 = vsub.f32 1.0, %v520_v40 }
 0x223   : > { %v522_v43 = vmul.f32 %v1034_v39, %v521_v41 }
 0x225   : > { %v523_v45 = vadd.f32 %v1034_v39, %v522_v43 }
 0x227   : > { %v527_v47 = vsel %vm526_vm5, %v1034_v39, %v523_v45 }
 0x228   : > { %v532_v48 = vsel %vm529_vm6, %v531_v46, %v527_v47  ;;  %vm781_vm6 = vcmask 195584  }
 0x229   : > { %v533_v49 = vmul.f32 %v1032_v36, %v532_v48 }
 0x22a   : > { %v700_v50 = vpop.permute.xlu0 %699 }
 0x22b   : > { %v705_v51 = vsel %vm490_vm1, %v700_v50, 0  ;;  %v534_v52 = vpack.c.bf16 %v533_v49, %v533_v49 }
 0x22d   : > { %967 = vmatmul.msk.bf16.vlgmr.msra.gmra.mxu3 %vm490_vm1, %v534_v52 }
 0x22e   : > { %714 = vmatpush.bf16.xpose.msra.mxu3 %v705_v51 }
 0x23d   : > { %968 = vmatmul.msk.bf16.vlgmr.msrb.gmra.mxu3 %vm490_vm1, %v560_v19 }
 0x24d   : > { %972 = vmatmul.msk.bf16.vlgmr.msra.gmra.mxu3 %vm490_vm1, %v698_v53 }
 0x2b0   : > { %v1215_v54 = vpop.f32.mrf.mxu3 }
 0x2b8   : > { %v556_v57 = vpop.f32.mrf.mxu3 }
 0x2c0   : > { %v578_v59 = vpop.f32.mrf.mxu3 }
 0x2c1   : > { %v582_v60 = vsel %vm490_vm1, %v578_v59, -inf }
 0x2c2   : > { %583 = vmax.xlane.f32.xlu1 %v582_v60 }
 0x2c8   : > { %v580_v62 = vpop.f32.mrf.mxu3 }
 0x2c9   : > { %v990_v62 = vld [vmem:[%s1272_s6 + $0x8] sm:$0xff] }
 0x2ca   : > { %658 = vadd.xlane.f32.xlu1 %v657_v63  ;;  %808 = vmatpush.bf16.msra.mxu1 %v990_v62 }
 0x2d0   : > { %v716_v0 = vpop.f32.mrf.mxu3 }
 0x2d1   : > { %v720_v1 = vsel %vm490_vm1, %v716_v0, -inf }
 0x2d2   : > { %721 = vmax.xlane.f32.xlu0 %v720_v1 }
 0x2d8   : > { %v718_v2 = vpop.f32.mrf.mxu3 }
 0x2e3   : > { %607 = vrot.lane.b32.xlu1 %v1193_v15, %s1079_s23 }
 0x2e6   : > { %676 = vrot.lane.b32.xlu0 %v1193_v15, %s1080_s24 }
 0x335   : > { %v584_v3 = vpop.xlane.xlu1 %583 }
 0x336   : > { %v585_v5 = vsub.f32 %v578_v59, %v584_v3  ;;  %v989_v3 = vld [vmem:[%s1272_s6] sm:$0xff] }
 0x337   : > { %809 = vmatpush.bf16.msra.mxu1 %v989_v3 }
 0x338   : > { %v586_v6 = vmul.f32 1.442695, %v585_v5 }
 0x33a   : > { %1037 = vpow2.f32 %v586_v6 }
 0x33d   : > { %v659_v7 = vpop.xlane.xlu1 %658 }
 0x33e   : > { %1039 = vrcp.f32 %v659_v7  ;;  %v671_v19 = vand.u32 2147483648, %v659_v7  ;;  %vm665_vm8 = vweird.f32 %v659_v7  ;;  %v669_v20 = vand.u32 2147483647, %v659_v7 }
 0x340   : > { %v1038_v8 = vpop.eup %1037  ;;  %v672_v24 = vor.u32 1.1754944e-38, %v671_v19  ;;  %vm670_vm10 = vcmp.eq.f32.partialorder %v669_v20, 8.507059e+37  ;;  %v1085_v19 = vmov 32.0  }
 0x341   : > { %v588_v9 = vsel %vm490_vm1, %v1038_v8, 0.0 }
 0x342   : > { %589 = vadd.xlane.f32.xlu2 %v588_v9 }
 0x344   : > { %v1040_v10 = vpop.eup %1039 }
 0x345   : > { %v661_v11 = vmul.f32 %v1040_v10, %v659_v7  ;;  %v722_v12 = vpop.xlane.xlu0 %721  ;;  %vm666_vm7 = vweird.f32 %v1040_v10 }
 0x346   : > { %v723_v13 = vsub.f32 %v716_v0, %v722_v12  ;;  %vm667_vm9 = vmor %vm665_vm8, %vm666_vm7  ;;  %v1028_v12 = vld [vmem:[%s1273_s7] ss:$0 sm:$0xff] }
 0x347   : > { %v662_v14 = vsub.f32 1.0, %v661_v11 }
 0x348   : > { %v724_v16 = vmul.f32 1.442695, %v723_v13 }
 0x349   : > { %v663_v17 = vmul.f32 %v1040_v10, %v662_v14 }
 0x34a   : > { %1041 = vpow2.f32 %v724_v16 }
 0x34b   : > { %v664_v18 = vadd.f32 %v1040_v10, %v663_v17 }
 0x34d   : > { %v668_v23 = vsel %vm667_vm9, %v1040_v10, %v664_v18 }
 0x34e   : > { %v673_v25 = vsel %vm670_vm10, %v672_v24, %v668_v23 }
 0x34f   : > { %v674_v28 = vmul.f32 %v1036_v61, %v673_v25 }
 0x350   : > { %v1042_v21 = vpop.eup %1041 }
 0x351   : > { %v726_v22 = vsel %vm490_vm1, %v1042_v21, 0.0  ;;  %v675_v31 = vpack.c.bf16 %v674_v28, %v674_v28 }
 0x352   : > { %727 = vadd.xlane.f32.xlu2 %v726_v22 }
 0x355   : > { %v608_v26 = vpop.permute.xlu1 %607 }
 0x356   : > { %v613_v27 = vsel %vm541_vm2, %v608_v26, 0 }
 0x357   : > { %622 = vmatpush.bf16.msrb.mxu0 %v613_v27 }
 0x358   : > { %v677_v29 = vpop.permute.xlu0 %676 }
 0x359   : > { %v682_v30 = vsel %vm541_vm2, %v677_v29, 0 }
 0x35a   : > { %691 = vmatpush.bf16.msrb.mxu2 %v682_v30 }
 0x35d   : > { %971 = vmatmul.msk.bf16.vlgmr.msrb.gmra.mxu2 %vm490_vm1, %v675_v31 }
 0x36a   : > { %745 = vrot.lane.b32.xlu2 %v1193_v15, %s1081_s26  ;;  %s402_s26 = scalar_lea.vmem %s1276_s10, %s1171_s25 }
 0x3b5   : > { %v590_v32 = vpop.xlane.xlu2 %589 }
 0x3b6   : > { %1043 = vrcp.f32 %v590_v32  ;;  %v602_v37 = vand.u32 2147483648, %v590_v32  ;;  %v600_v38 = vand.u32 2147483647, %v590_v32  ;;  %vm596_vm12 = vweird.f32 %v590_v32 }
 0x3b8   : > { %v603_v40 = vor.u32 1.1754944e-38, %v602_v37  ;;  %vm601_vm14 = vcmp.eq.f32.partialorder %v600_v38, 8.507059e+37  ;;  %v1029_v38 = vld [vmem:[%s1274_s8] ss:$0 sm:$0xff] }
 0x3bc   : > { %v1044_v33 = vpop.eup %1043 }
 0x3bd   : > { %v592_v34 = vmul.f32 %v1044_v33, %v590_v32  ;;  %vm597_vm11 = vweird.f32 %v1044_v33 }
 0x3be   : > { %vm598_vm13 = vmor %vm596_vm12, %vm597_vm11 }
 0x3bf   : > { %v593_v35 = vsub.f32 1.0, %v592_v34 }
 0x3c1   : > { %v594_v36 = vmul.f32 %v1044_v33, %v593_v35 }
 0x3c3   : > { %v595_v39 = vadd.f32 %v1044_v33, %v594_v36 }
 0x3c5   : > { %v728_v41 = vpop.xlane.xlu2 %727  ;;  %v599_v42 = vsel %vm598_vm13, %v1044_v33, %v595_v39 }
 0x3c6   : > { %1045 = vrcp.f32 %v728_v41  ;;  %v604_v43 = vsel %vm601_vm14, %v603_v40, %v599_v42  ;;  %v740_v50 = vand.u32 2147483648, %v728_v41  ;;  %v738_v52 = vand.u32 2147483647, %v728_v41  ;;  %v1030_v40 = vld [vmem:[%s1275_s9] ss:$0 sm:$0xff] }
 0x3c7   : > { %v605_v44 = vmul.f32 %v1038_v8, %v604_v43  ;;  %vm734_vm3 = vweird.f32 %v728_v41  ;;  %1047 = vrcp.f32 %v1085_v19 }
 0x3c8   : > { %v741_v55 = vor.u32 1.1754944e-38, %v740_v50  ;;  %vm739_vm5 = vcmp.eq.f32.partialorder %v738_v52, 8.507059e+37 }
 0x3c9   : > { %v606_v15 = vpack.c.bf16 %v605_v44, %v605_v44 }
 0x3cb   : > { %969 = vmatmul.msk.bf16.vlgmr.msrb.gmra.mxu0 %vm490_vm1, %v606_v15 }
 0x3cc   : > { %v1046_v45 = vpop.eup %1045 }
 0x3cd   : > { %v730_v46 = vmul.f32 %v1046_v45, %v728_v41  ;;  %v746_v47 = vpop.permute.xlu2 %745  ;;  %vm735_vm15 = vweird.f32 %v1046_v45 }
 0x3ce   : > { %v751_v48 = vsel %vm541_vm2, %v746_v47, 0  ;;  %vm736_vm4 = vmor %vm734_vm3, %vm735_vm15  ;;  %vm779_vm2 = vcmask 130048  }
 0x3cf   : > { %v731_v49 = vsub.f32 1.0, %v730_v46  ;;  %760 = vmatpush.bf16.msra.mxu0 %v751_v48 }
 0x3d1   : > { %v732_v51 = vmul.f32 %v1046_v45, %v731_v49 }
 0x3d3   : > { %v733_v53 = vadd.f32 %v1046_v45, %v732_v51 }
 0x3d5   : > { %v737_v56 = vsel %vm736_vm4, %v1046_v45, %v733_v53 }
 0x3d6   : > { %v742_v57 = vsel %vm739_vm5, %v741_v55, %v737_v56 }
 0x3d7   : > { %v743_v58 = vmul.f32 %v1042_v21, %v742_v57 }
 0x3d9   : > { %v744_v59 = vpack.c.bf16 %v743_v58, %v743_v58 }
 0x3db   : > { %973 = vmatmul.msk.bf16.vlgmr.msra.gmra.mxu0 %vm490_vm1, %v744_v59 }
 0x3e0   : > { %v693_v60 = vpop.f32.mrf.mxu2 }
 0x3e1   : > { %771 = vrot.lane.b32.xlu1 %v693_v60, %s1082_s27 }
 0x3e8   : > { %v695_v61 = vpop.f32.mrf.mxu2 }
 0x448   : > { %v624_v63 = vpop.f32.mrf.mxu0 }
 0x449   : > { %767 = vrot.lane.b32.xlu0 %v624_v63, %s1083_s30 }
 0x450   : > { %v626_v0 = vpop.f32.mrf.mxu0 }
 0x453   : > { %v772_v6 = vpop.permute.xlu1 %771 }
 0x458   : > { %v762_v1 = vpop.f32.mrf.mxu0 }
 0x459   : > { %775 = vrot.lane.b32.xlu2 %v762_v1, %s1084_s11 }
 0x460   : > { %v764_v2 = vpop.f32.mrf.mxu0 }
 0x4b3   : > { %v776_v8 = vpop.permute.xlu2 %775 }
 0x4bb   : > { %v768_v5 = vpop.permute.xlu0 %767 }
 0x4bc   : > { %v778_v7 = vsel %vm490_vm1, %v1215_v54, %v768_v5  ;;  %v1048_v54 = vpop.eup %1047 }
 0x4bd   : > { %v780_v9 = vsel %vm779_vm2, %v778_v7, %v772_v6  ;;  %v820_v20 = vmul.f32 32.0, %v1048_v54  ;;  %vm824_vm1 = vweird.f32 %v1048_v54 }
 0x4be   : > { %v782_v10 = vsel %vm781_vm6, %v780_v9, %v776_v8 }
 0x4bf   : > { %v783_v11 = vpack.c.bf16 %v782_v10, %v782_v10  ;;  %v821_v21 = vsub.f32 1.0, %v820_v20 }
 0x4c1   : > { %982 = vmatmul.msk.bf16.vlgmr.msra.gmra.mxu1 %vm439_vm0, %v783_v11  ;;  %v822_v22 = vmul.f32 %v1048_v54, %v821_v21 }
 0x4c3   : > { %v823_v23 = vadd.f32 %v1048_v54, %v822_v22 }
 0x4c5   : > { %v825_v24 = vsel %vm824_vm1, %v1048_v54, %v823_v23 }
 0x53e   : > { %v811_v13 = vpop.f32.mrf.mxu1 }
 0x53f   : > { %v812_v14 = vadd.f32 %v1028_v12, %v811_v13 }
 0x541   : > { %v815_v16 = vadd.f32 %v812_v14, %v1177_v4 }
 0x543   : > { %v816_v17 = vsel %vm439_vm0, %v815_v16, 0.0 }
 0x544   : > { %817 = vadd.xlane.f32.xlu0 %v816_v17 }
 0x546   : > { %v813_v18 = vpop.f32.mrf.mxu1 }
 0x5b7   : > { %v818_v25 = vpop.xlane.xlu0 %817 }
 0x5b8   : > { %v826_v26 = vmul.f32 %v825_v24, %v818_v25 }
 0x5ba   : > { %v827_v27 = vsub.f32 %v815_v16, %v826_v26 }
 0x5bc   : > { %v828_v28 = vmul.f32 %v827_v27, %v827_v27 }
 0x5be   : > { %v829_v29 = vsel %vm439_vm0, %v828_v28, 0.0 }
 0x5bf   : > { %830 = vadd.xlane.f32.xlu1 %v829_v29 }
 0x632   : > { %v831_v4 = vpop.xlane.xlu1 %830 }
 0x633   : > { %v832_v30 = vmul.f32 %v831_v4, %v825_v24 }
 0x635   : > { %v833_v31 = vadd.f32 1e-05, %v832_v30 }
 0x637   : > { %1049 = vrsqrt.f32 %v833_v31  ;;  %vm840_vm8 = vweird.f32 %v833_v31 }
 0x63d   : > { %v1050_v32 = vpop.eup %1049 }
 0x63e   : > { %v835_v33 = vmul.f32 %v1050_v32, %v833_v31  ;;  %vm841_vm7 = vweird.f32 %v1050_v32 }
 0x63f   : > { %vm842_vm9 = vmor %vm840_vm8, %vm841_vm7 }
 0x640   : > { %v836_v34 = vmul.f32 %v1050_v32, %v835_v33 }
 0x642   : > { %v837_v35 = vmul.f32 0.5, %v836_v34 }
 0x644   : > { %v838_v36 = vsub.f32 1.5, %v837_v35 }
 0x646   : > { %v839_v37 = vmul.f32 %v1050_v32, %v838_v36 }
 0x648   : > { %v843_v39 = vsel %vm842_vm9, %v1050_v32, %v839_v37 }
 0x649   : > { %v844_v41 = vmul.f32 %v843_v39, %v827_v27 }
 0x64b   : > { %v848_v42 = vmul.f32 %v1029_v38, %v844_v41 }
 0x64d   : > { %v852_v43 = vadd.f32 %v1030_v40, %v848_v42 }
 0x64f   : > { %853 = vst.msk [vmem:[%s402_s26] sm:$0xff] %vm439_vm0, %v852_v43 }
 0x650 PF: > { %s20_s15 = sadd.s32 1, %s1073_s15   ;;  %s1277_s13 = smov %s1069_s14 }
 0x651   : > { %p17_p5 = scmp.ge.s32.totalorder %s20_s15, 4   ;;  %s1278_s14 = smov %s1280_s16 }
 0x653   :  { %19 = sbr.rel (!%p17_p5) target bundleno = 2 (0x2), region = 93 }

// kernel: transformer_decoder_forward.11
= control target key start
LH: loop header
LB: loop body
LE: loop exit
PB: predicated region body
PF: predicated region fallthrough
CT: control target
= control target key end

     0   :  { %vm50_vm0 = vcmask 261120   ;;  %v286_v30 = vmov 32.0   ;;  %s388_s1 = inlined_call_operand.vmem [shape: bf16[32,128], index: 1, kind: input, shape index: {}]   ;;  %s389_s0 = inlined_call_operand.vmem [shape: f32[16,32], index: 0, kind: input, shape index: {}]   ;;  %s390_s3 = inlined_call_operand.vmem [shape: bf16[128,32], index: 3, kind: input, shape index: {}]   ;;  %s391_s2 = inlined_call_operand.vmem [shape: f32[1,128], index: 2, kind: input, shape index: {}]   ;;  %s392_s4 = inlined_call_operand.vmem [shape: f32[1,32], index: 4, kind: input, shape index: {}]   ;;  %s393_s5 = inlined_call_operand.vmem [shape: f32[1,32], index: 5, kind: input, shape index: {}]   ;;  %s394_s6 = inlined_call_operand.vmem [shape: f32[1,32], index: 6, kind: input, shape index: {}]   ;;  %s395_s7 = inlined_call_operand.vmem [shape: f32[16,32], index: 7, kind: output, shape index: {}]  }
   0x1   :  { %v266_v0 = vld [vmem:[%s388_s1 + $0x8] sm:$0xff]  ;;  %v265_v1 = vld [vmem:[%s388_s1] sm:$0xff]  ;;  %v274_v2 = vld [vmem:[%s390_s3 + $0x38] sm:$0xff]  ;;  %280 = vrcp.f32 %v286_v30 }
   0x2   :  { %60 = vmatpush.bf16.msra.mxu0 %v266_v0  ;;  %v27_v3 = vld [vmem:[%s389_s0] sm:$0xff]  ;;  %v28_v4 = vld [vmem:[%s389_s0 + $0x8] sm:$0xff]  ;;  %139 = vmatpush.bf16.msra.mxu1 %v274_v2  ;;  %v273_v5 = vld [vmem:[%s390_s3 + $0x30] sm:$0xff] }
   0x3   :  { %v29_v6 = vpack.c.bf16 %v28_v4, %v27_v3  ;;  %v272_v7 = vld [vmem:[%s390_s3 + $0x28] sm:$0xff]  ;;  %v271_v8 = vld [vmem:[%s390_s3 + $0x20] sm:$0xff]  ;;  %v270_v9 = vld [vmem:[%s390_s3 + $0x18] sm:$0xff] }
   0x4   :  { %v269_v10 = vld [vmem:[%s390_s3 + $0x10] sm:$0xff]  ;;  %v268_v11 = vld [vmem:[%s390_s3 + $0x8] sm:$0xff]  ;;  %v267_v12 = vld [vmem:[%s390_s3] sm:$0xff] }
   0x5   :  { %v276_v14 = vld [vmem:[%s391_s2] ss:$0 sm:$0xff] }
   0x6   :  { %61 = vmatpush.bf16.msra.mxu0 %v265_v1  ;;  %140 = vmatpush.bf16.msra.mxu1 %v273_v5  ;;  %v277_v21 = vld [vmem:[%s392_s4] ss:$0 sm:$0xff] }
   0x7   :  { %v281_v31 = vpop.eup %280  ;;  %v278_v61 = vld [vmem:[%s393_s5] ss:$0 sm:$0xff] }
   0x8   :  { %v162_v32 = vmul.f32 32.0, %v281_v31  ;;  %vm166_vm1 = vweird.f32 %v281_v31  ;;  %v279_v0 = vld [vmem:[%s394_s6] ss:$0 sm:$0xff] }
   0x9   :  { %232 = vmatmul.msk.bf16.vlgmr.msra.gmra.mxu0 %vm50_vm0, %v29_v6 }
   0xa   :  { %141 = vmatpush.bf16.msra.mxu1 %v272_v7  ;;  %v163_v33 = vsub.f32 1.0, %v162_v32 }
   0xc   :  { %v164_v34 = vmul.f32 %v281_v31, %v163_v33 }
   0xe   :  { %142 = vmatpush.bf16.msra.mxu1 %v271_v8  ;;  %v165_v35 = vadd.f32 %v281_v31, %v164_v34 }
  0x10   :  { %v167_v36 = vsel %vm166_vm1, %v281_v31, %v165_v35 }
  0x12   :  { %143 = vmatpush.bf16.msra.mxu1 %v270_v9 }
  0x16   :  { %144 = vmatpush.bf16.msra.mxu1 %v269_v10 }
  0x1a   :  { %145 = vmatpush.bf16.msra.mxu1 %v268_v11 }
  0x1e   :  { %146 = vmatpush.bf16.msra.mxu1 %v267_v12 }
  0x86   :  { %v63_v13 = vpop.f32.mrf.mxu0 }
  0x87   :  { %v64_v15 = vadd.f32 %v276_v14, %v63_v13 }
  0x89   :  { %v68_v18 = vmax.f32 %v64_v15, 0.0 }
  0x8e   :  { %v65_v16 = vpop.f32.mrf.mxu0 }
  0x8f   :  { %v66_v17 = vadd.f32 %v276_v14, %v65_v16 }
  0x91   :  { %v69_v19 = vmax.f32 %v66_v17, 0.0 }
  0x93   :  { %v70_v20 = vpack.c.bf16 %v69_v19, %v68_v18 }
  0x95   :  { %147 = vmatmul.bf16.vlgmr.msra.gmra.mxu1 %v70_v20 }
 0x112   :  { %v148_v22 = vpop.f32.mrf.mxu1 }
 0x113   :  { %v149_v23 = vadd.f32 %v277_v21, %v148_v22 }
 0x115   :  { %v153_v24 = vadd.f32 %v149_v23, %v27_v3 }
 0x117   :  { %v155_v25 = vsel %vm50_vm0, %v153_v24, 0.0 }
 0x118   :  { %156 = vadd.xlane.f32.xlu0 %v155_v25 }
 0x11a   :  { %v150_v26 = vpop.f32.mrf.mxu1 }
 0x11b   :  { %v151_v27 = vadd.f32 %v277_v21, %v150_v26 }
 0x11d   :  { %v154_v28 = vadd.f32 %v151_v27, %v28_v4 }
 0x11f   :  { %v158_v29 = vsel %vm50_vm0, %v154_v28, 0.0 }
 0x120   :  { %159 = vadd.xlane.f32.xlu0 %v158_v29 }
 0x18b   :  { %v157_v37 = vpop.xlane.xlu0 %156 }
 0x18c   :  { %v168_v38 = vmul.f32 %v167_v36, %v157_v37 }
 0x18e   :  { %v170_v39 = vsub.f32 %v153_v24, %v168_v38 }
 0x190   :  { %v172_v40 = vmul.f32 %v170_v39, %v170_v39 }
 0x192   :  { %v174_v41 = vsel %vm50_vm0, %v172_v40, 0.0 }
 0x193   :  { %175 = vadd.xlane.f32.xlu1 %v174_v41  ;;  %v160_v42 = vpop.xlane.xlu0 %159 }
 0x194   :  { %v169_v43 = vmul.f32 %v167_v36, %v160_v42 }
 0x196   :  { %v171_v44 = vsub.f32 %v154_v28, %v169_v43 }
 0x198   :  { %v173_v45 = vmul.f32 %v171_v44, %v171_v44 }
 0x19a   :  { %v177_v46 = vsel %vm50_vm0, %v173_v45, 0.0 }
 0x19b   :  { %178 = vadd.xlane.f32.xlu1 %v177_v46 }
 0x206   :  { %v176_v47 = vpop.xlane.xlu1 %175 }
 0x207   :  { %v180_v48 = vmul.f32 %v176_v47, %v167_v36 }
 0x209   :  { %v182_v49 = vadd.f32 1e-05, %v180_v48 }
 0x20b   :  { %282 = vrsqrt.f32 %v182_v49  ;;  %vm190_vm3 = vweird.f32 %v182_v49 }
 0x20e   :  { %v179_v50 = vpop.xlane.xlu1 %178 }
 0x20f   :  { %v181_v51 = vmul.f32 %v179_v50, %v167_v36 }
 0x211   :  { %v283_v52 = vpop.eup %282  ;;  %v183_v53 = vadd.f32 1e-05, %v181_v51 }
 0x212   :  { %v185_v54 = vmul.f32 %v283_v52, %v182_v49  ;;  %vm191_vm2 = vweird.f32 %v283_v52 }
 0x213   :  { %284 = vrsqrt.f32 %v183_v53  ;;  %vm192_vm4 = vmor %vm190_vm3, %vm191_vm2  ;;  %vm200_vm6 = vweird.f32 %v183_v53 }
 0x214   :  { %v186_v55 = vmul.f32 %v283_v52, %v185_v54 }
 0x216   :  { %v187_v56 = vmul.f32 0.5, %v186_v55 }
 0x218   :  { %v188_v57 = vsub.f32 1.5, %v187_v56 }
 0x219   :  { %v285_v58 = vpop.eup %284 }
 0x21a   :  { %v189_v59 = vmul.f32 %v283_v52, %v188_v57  ;;  %v195_v60 = vmul.f32 %v285_v58, %v183_v53  ;;  %vm201_vm5 = vweird.f32 %v285_v58 }
 0x21b   :  { %vm202_vm7 = vmor %vm200_vm6, %vm201_vm5 }
 0x21c   :  { %v193_v62 = vsel %vm192_vm4, %v283_v52, %v189_v59  ;;  %v196_v63 = vmul.f32 %v285_v58, %v195_v60 }
 0x21d   :  { %v204_v1 = vmul.f32 %v193_v62, %v170_v39 }
 0x21e   :  { %v197_v2 = vmul.f32 0.5, %v196_v63 }
 0x21f   :  { %v210_v3 = vmul.f32 %v278_v61, %v204_v1 }
 0x220   :  { %v198_v4 = vsub.f32 1.5, %v197_v2 }
 0x221   :  { %v216_v5 = vadd.f32 %v279_v0, %v210_v3 }
 0x222   :  { %v199_v6 = vmul.f32 %v285_v58, %v198_v4 }
 0x223   :  { %218 = vst.msk [vmem:[%s395_s7] sm:$0xff] %vm50_vm0, %v216_v5 }
 0x224   :  { %v203_v7 = vsel %vm202_vm7, %v285_v58, %v199_v6 }
 0x225   :  { %v205_v8 = vmul.f32 %v203_v7, %v171_v44 }
 0x227   :  { %v211_v9 = vmul.f32 %v278_v61, %v205_v8 }
 0x229   :  { %v217_v10 = vadd.f32 %v279_v0, %v211_v9 }
 0x22b   :  { %219 = vst.msk [vmem:[%s395_s7 + $0x8] sm:$0xff] %vm50_vm0, %v217_v10 }

// kernel: transformer_decoder_forward.13
= control target key start
LH: loop header
LB: loop body
LE: loop exit
PB: predicated region body
PF: predicated region fallthrough
CT: control target
= control target key end

     0   :  { %15 = vsyncpa [#allocation3], 0  ;;  %s1439_s0 = inlined_call_operand.vmem [shape: f32[2,8,32], index: 0, kind: input, shape index: {}]   ;;  %s1440_s1 = inlined_call_operand.vmem [shape: f32[2,8,32], index: 1, kind: input, shape index: {}]   ;;  %s1441_s2 = inlined_call_operand.vmem [shape: bf16[32,32], index: 2, kind: input, shape index: {}]   ;;  %s1442_s3 = inlined_call_operand.vmem [shape: f32[1,32], index: 3, kind: input, shape index: {}]   ;;  %s1443_s4 = inlined_call_operand.vmem [shape: bf16[32,64], index: 4, kind: input, shape index: {}]   ;;  %s1444_s5 = inlined_call_operand.vmem [shape: f32[1,64], index: 5, kind: input, shape index: {}]   ;;  %s1445_s6 = inlined_call_operand.vmem [shape: bf16[32,32], index: 6, kind: input, shape index: {}]   ;;  %s1446_s7 = inlined_call_operand.vmem [shape: f32[1,32], index: 7, kind: input, shape index: {}]   ;;  %s1447_s8 = inlined_call_operand.hbm [shape: f32[1,32], index: 8, kind: input, shape index: {}]   ;;  %s1448_s9 = inlined_call_operand.hbm [shape: f32[1,32], index: 9, kind: input, shape index: {}]   ;;  %s1449_s10 = inlined_call_operand.vmem [shape: f32[2,8,32], index: 10, kind: output, shape index: {}]  }
   0x1   :  { %16 = vsyncpa [#allocation5], 0  ;;  %s1289_s13 = smov 0   ;;  %s1291_s14 = smov 0  }
   0x2   :  { %s1293_s15 = smov 0  }
   0x3 LB: > { %s993_s16 = sadd.s32 4294967295, %s1219_s15   ;;  %s34_s17 = sadd.s32 1, %s1215_s14  ;;  %s1219_s15 = sphi %s1293_s15, %s22_s15   ;;  %s1215_s14 = sphi %s1291_s14, %s1453_s14   ;;  %s1211_s13 = sphi %s1289_s13, %s1452_s13  }
   0x4   : > { %p36_p0 = scmp.ge.s32.totalorder %s34_s17, 2  ;;  %p995_p1 = scmp.ge.s32.totalorder %s1219_s15, 1 }
   0x5   : > { %p289_p2 = scmp.lt.s32.totalorder %s1219_s15, 3  ;;  %p1314_p4 = scmp.eq.s32.totalorder %s993_s16, 0 }
   0x6   : > { %s1455_s17 = smov (%p36_p0, %s34_s17), 0  ;;  %s319_s22 = sshll.u32 %s1447_s8, 4  ;;  %s320_s22 = int_to_ptr.hbm [resolvable:$true] %s319_s22 }
   0x7   : > { %p1310_p3 = pnand %p995_p1, %p289_p2  ;;  %s1221_s23 = smov [#allocation2]  }
   0x8   : > { %s321_s24 = sshll.u32 %s1221_s23, 4  ;;  %s331_s27 = sshll.u32 %s1448_s9, 4  ;;  %s322_s24 = int_to_ptr.vmem [resolvable:$true] %s321_s24  ;;  %s332_s27 = int_to_ptr.hbm [resolvable:$true] %s331_s27 }
   0x9   : > { %p1056_p5 = pneg %p1310_p3  ;;  %s1222_s28 = smov [#allocation4]  }
   0xa   : > { %s333_s29 = sshll.u32 %s1222_s28, 4  ;;  %363 = sbr.rel (%p1310_p3) target bundleno = 1622 (0x656), region = 60  ;;  %s334_s29 = int_to_ptr.vmem [resolvable:$true] %s333_s29 }
   0xb   : > { %p1057_p6 = pnand %p1314_p4, %p1056_p5 }
   0xd   : > { %1059 = dma.hbm_to_vmem [thread:$0]  (!%p1057_p6), %s320_s22, 16, %s322_s24, [#allocation3]  }
   0xe   : > { %1062 = dma.hbm_to_vmem [thread:$0]  (!%p1057_p6), %s332_s27, 16, %s334_s29, [#allocation5]  }
   0xf   : > { %1202 = dma.done.wait (%p1314_p4), [#allocation3], 16  }
  0x10   : > { %1204 = vsyncadd (%p1314_p4), [#allocation3], 4294967280 }
  0x11   : > { %1206 = dma.done.wait (%p1314_p4), [#allocation5], 16  }
  0x12   : > { %1208 = vsyncadd (%p1314_p4), [#allocation5], 4294967280  ;;  %p415_p7 = scmp.lt.s32.totalorder %s1211_s13, 1  ;;  %v1043_v0 = vld [vmem:[%s1441_s2 + $0x8] sm:$0xff]  ;;  %v1042_v2 = vld [vmem:[%s1441_s2] sm:$0xff]  ;;  %vm469_vm0 = vcmask 261120  }
  0x13   : > { %v1045_v1 = vld [vmem:[%s1443_s4 + $0x8] sm:$0xff]  ;;  %v1044_v3 = vld [vmem:[%s1443_s4] sm:$0xff]  ;;  %479 = vmatpush.bf16.msra.mxu0 %v1043_v0  ;;  %vm520_vm1 = vcmask 64512   ;;  %s1224_s18 = smov 120   ;;  %s1225_s20 = smov 112   ;;  %vm571_vm2 = vcmask 1043456  }
  0x14   : > { %s1457_s13 = smov (!%p415_p7, %s1211_s13), 1  ;;  %511 = vmatpush.bf16.msra.mxu1 %v1045_v1  ;;  %v1104_v8 = vld [vmem:[%s1442_s3] ss:$0 sm:$0xff]  ;;  %s1227_s22 = smov 88  }
  0x15   : > { %s1340_s30 = sshll.u32 %s1457_s13, 3  ;;  %v1105_v9 = vld [vmem:[%s1444_s5] ss:$0 sm:$0xff]  ;;  %s1228_s23 = smov 80  }
  0x16   : > { %s421_s16 = scalar_lea.vmem %s1439_s0, %s1340_s30  ;;  %s425_s21 = scalar_lea.vmem %s1440_s1, %s1340_s30 }
  0x17   : > { %v1362_v4 = vld [vmem:[%s421_s16] sm:$0xff]  ;;  %480 = vmatpush.bf16.msra.mxu0 %v1042_v2  ;;  %s1223_s16 = smov 96   ;;  %s1229_s19 = smov 72  }
  0x18   : > { %v435_v5 = vld [vmem:[%s425_s21] sm:$0xff]  ;;  %v453_v6 = vpack.c.bf16 %v1362_v4, %v1362_v4  ;;  %512 = vmatpush.bf16.msra.mxu1 %v1044_v3  ;;  %s1226_s21 = smov 104   ;;  %s1230_s24 = smov 16  }
  0x19   : > { %v486_v7 = vpack.c.bf16 %v435_v5, %v435_v5  ;;  %s1231_s26 = smov 8   ;;  %s1232_s27 = smov 24  }
  0x1a   : > { %1013 = vmatmul.msk.bf16.vlgmr.msra.gmra.mxu0 %vm469_vm0, %v453_v6 }
  0x1b   : > { %1022 = vmatmul.msk.bf16.vlgmr.msra.gmra.mxu1 %vm469_vm0, %v486_v7 }
  0x97   : > { %v482_v10 = vpop.f32.mrf.mxu0 }
  0x98   : > { %v514_v11 = vpop.f32.mrf.mxu1  ;;  %v483_v12 = vadd.f32 %v1104_v8, %v482_v10 }
  0x99   : > { %v515_v13 = vadd.f32 %v1105_v9, %v514_v11 }
  0x9a   : > { %v518_v14 = vpack.c.bf16 %v483_v12, %v483_v12 }
  0x9b   : > { %v1374_v15 = vpack.c.bf16 %v515_v13, %v515_v13 }
  0x9c   : > { %589 = vrot.lane.b32.xlu2 %v518_v14, %s1224_s18 }
  0x9d   : > { %566 = vrot.lane.b32.xlu1 %v1374_v15, %s1223_s16  ;;  %v525_v16 = vsel %vm520_vm1, %v1374_v15, 0 }
  0x9e   : > { %534 = vmatpush.bf16.xpose.msra.mxu2 %v525_v16 }
  0x9f   : > { %v484_v17 = vpop.f32.mrf.mxu0 }
  0xa0   : > { %v516_v18 = vpop.f32.mrf.mxu1 }
  0xa4   : > { %660 = vrot.lane.b32.xlu2 %v1374_v15, %s1225_s20 }
  0xa5   : > { %591 = vrot.lane.b32.xlu1 %v1374_v15, %s1224_s18  ;;  %1023 = vmatmul.msk.bf16.vlgmr.msra.gmra.mxu2 %vm520_vm1, %v518_v14 }
  0xac   : > { %727 = vrot.lane.b32.xlu2 %v518_v14, %s1226_s21 }
  0xad   : > { %658 = vrot.lane.b32.xlu1 %v518_v14, %s1225_s20  ;;  %s432_s20 = scalar_lea.vmem %s1449_s10, %s1340_s30 }
  0xf6   : > { %v590_v19 = vpop.permute.xlu2 %589 }
  0xfe   : > { %v661_v20 = vpop.permute.xlu2 %660 }
  0xff   : > { %v666_v21 = vsel %vm520_vm1, %v661_v20, 0 }
 0x100   : > { %675 = vmatpush.bf16.xpose.msrb.mxu1 %v666_v21 }
 0x106   : > { %v728_v53 = vpop.permute.xlu2 %727 }
 0x10f   : > { %v567_v22 = vpop.permute.xlu1 %566 }
 0x110   : > { %v573_v23 = vsel %vm571_vm2, %v567_v22, 0 }
 0x111   : > { %582 = vmatpush.bf16.msra.mxu3 %v573_v23 }
 0x117   : > { %v592_v24 = vpop.permute.xlu1 %591 }
 0x118   : > { %v597_v25 = vsel %vm520_vm1, %v592_v24, 0 }
 0x119   : > { %606 = vmatpush.bf16.xpose.msrb.mxu3 %v597_v25 }
 0x11f   : > { %v659_v26 = vpop.permute.xlu1 %658 }
 0x120   : > { %1027 = vmatmul.msk.bf16.vlgmr.msrb.gmra.mxu1 %vm520_vm1, %v659_v26 }
 0x128   : > { %v536_v27 = vpop.f32.mrf.mxu2 }
 0x129   : > { %v540_v28 = vsel %vm520_vm1, %v536_v27, -inf }
 0x12a   : > { %541 = vmax.xlane.f32.xlu0 %v540_v28 }
 0x130   : > { %v538_v29 = vpop.f32.mrf.mxu2 }
 0x19d   : > { %v677_v30 = vpop.f32.mrf.mxu1  ;;  %v542_v31 = vpop.xlane.xlu0 %541 }
 0x19e   : > { %v681_v32 = vsel %vm520_vm1, %v677_v30, -inf  ;;  %v543_v33 = vsub.f32 %v536_v27, %v542_v31 }
 0x19f   : > { %682 = vmax.xlane.f32.xlu2 %v681_v32 }
 0x1a0   : > { %v544_v34 = vmul.f32 1.442695, %v543_v33 }
 0x1a2   : > { %1109 = vpow2.f32 %v544_v34 }
 0x1a5   : > { %v679_v35 = vpop.f32.mrf.mxu1 }
 0x1a8   : > { %v1110_v36 = vpop.eup %1109 }
 0x1a9   : > { %v546_v37 = vsel %vm520_vm1, %v1110_v36, 0.0 }
 0x1aa   : > { %547 = vadd.xlane.f32.xlu0 %v546_v37 }
 0x1be   : > { %729 = vrot.lane.b32.xlu0 %v1374_v15, %s1226_s21 }
 0x212   : > { %v683_v55 = vpop.xlane.xlu2 %682 }
 0x213   : > { %v684_v56 = vsub.f32 %v677_v30, %v683_v55 }
 0x215   : > { %v685_v58 = vmul.f32 1.442695, %v684_v56 }
 0x21d   : > { %v548_v38 = vpop.xlane.xlu0 %547 }
 0x21e   : > { %1111 = vrcp.f32 %v548_v38  ;;  %v560_v42 = vand.u32 2147483648, %v548_v38  ;;  %v558_v44 = vand.u32 2147483647, %v548_v38  ;;  %vm554_vm4 = vweird.f32 %v548_v38 }
 0x21f   : > { %1113 = vpow2.f32 %v685_v58 }
 0x220   : > { %v561_v46 = vor.u32 1.1754944e-38, %v560_v42  ;;  %vm559_vm6 = vcmp.eq.f32.partialorder %v558_v44, 8.507059e+37 }
 0x224   : > { %v1112_v39 = vpop.eup %1111 }
 0x225   : > { %v550_v40 = vmul.f32 %v1112_v39, %v548_v38  ;;  %vm555_vm3 = vweird.f32 %v1112_v39  ;;  %v1114_v61 = vpop.eup %1113 }
 0x226   : > { %vm556_vm5 = vmor %vm554_vm4, %vm555_vm3  ;;  %v687_v63 = vsel %vm520_vm1, %v1114_v61, 0.0 }
 0x227   : > { %v551_v41 = vsub.f32 1.0, %v550_v40 }
 0x229   : > { %v552_v43 = vmul.f32 %v1112_v39, %v551_v41 }
 0x22b   : > { %v553_v45 = vadd.f32 %v1112_v39, %v552_v43 }
 0x22d   : > { %v557_v47 = vsel %vm556_vm5, %v1112_v39, %v553_v45 }
 0x22e   : > { %v562_v48 = vsel %vm559_vm6, %v561_v46, %v557_v47  ;;  %vm811_vm6 = vcmask 195584  }
 0x22f   : > { %v563_v49 = vmul.f32 %v1110_v36, %v562_v48 }
 0x230   : > { %v730_v50 = vpop.permute.xlu0 %729 }
 0x231   : > { %v735_v51 = vsel %vm520_vm1, %v730_v50, 0  ;;  %v564_v52 = vpack.c.bf16 %v563_v49, %v563_v49 }
 0x233   : > { %1024 = vmatmul.msk.bf16.vlgmr.msra.gmra.mxu3 %vm520_vm1, %v564_v52 }
 0x234   : > { %744 = vmatpush.bf16.xpose.msra.mxu3 %v735_v51 }
 0x243   : > { %1025 = vmatmul.msk.bf16.vlgmr.msrb.gmra.mxu3 %vm520_vm1, %v590_v19 }
 0x253   : > { %1029 = vmatmul.msk.bf16.vlgmr.msra.gmra.mxu3 %vm520_vm1, %v728_v53 }
 0x2b6   : > { %v1394_v54 = vpop.f32.mrf.mxu3 }
 0x2be   : > { %v586_v57 = vpop.f32.mrf.mxu3 }
 0x2c6   : > { %v608_v59 = vpop.f32.mrf.mxu3 }
 0x2c7   : > { %v612_v60 = vsel %vm520_vm1, %v608_v59, -inf }
 0x2c8   : > { %613 = vmax.xlane.f32.xlu1 %v612_v60 }
 0x2ce   : > { %v610_v62 = vpop.f32.mrf.mxu3 }
 0x2cf   : > { %v1047_v62 = vld [vmem:[%s1445_s6 + $0x8] sm:$0xff] }
 0x2d0   : > { %688 = vadd.xlane.f32.xlu1 %v687_v63  ;;  %838 = vmatpush.bf16.msra.mxu1 %v1047_v62 }
 0x2d6   : > { %v746_v0 = vpop.f32.mrf.mxu3 }
 0x2d7   : > { %v750_v1 = vsel %vm520_vm1, %v746_v0, -inf }
 0x2d8   : > { %751 = vmax.xlane.f32.xlu0 %v750_v1 }
 0x2de   : > { %v748_v2 = vpop.f32.mrf.mxu3 }
 0x2e9   : > { %637 = vrot.lane.b32.xlu1 %v1374_v15, %s1227_s22 }
 0x2ec   : > { %706 = vrot.lane.b32.xlu0 %v1374_v15, %s1228_s23 }
 0x33b   : > { %v614_v3 = vpop.xlane.xlu1 %613 }
 0x33c   : > { %v615_v5 = vsub.f32 %v608_v59, %v614_v3  ;;  %v1046_v3 = vld [vmem:[%s1445_s6] sm:$0xff] }
 0x33d   : > { %839 = vmatpush.bf16.msra.mxu1 %v1046_v3 }
 0x33e   : > { %v616_v6 = vmul.f32 1.442695, %v615_v5 }
 0x340   : > { %1115 = vpow2.f32 %v616_v6 }
 0x343   : > { %v689_v7 = vpop.xlane.xlu1 %688 }
 0x344   : > { %1117 = vrcp.f32 %v689_v7  ;;  %v701_v19 = vand.u32 2147483648, %v689_v7  ;;  %vm695_vm8 = vweird.f32 %v689_v7  ;;  %v699_v20 = vand.u32 2147483647, %v689_v7 }
 0x346   : > { %v1116_v8 = vpop.eup %1115  ;;  %v702_v24 = vor.u32 1.1754944e-38, %v701_v19  ;;  %vm700_vm10 = vcmp.eq.f32.partialorder %v699_v20, 8.507059e+37  ;;  %v1233_v19 = vmov 32.0  }
 0x347   : > { %v618_v9 = vsel %vm520_vm1, %v1116_v8, 0.0 }
 0x348   : > { %619 = vadd.xlane.f32.xlu2 %v618_v9 }
 0x34a   : > { %v1118_v10 = vpop.eup %1117 }
 0x34b   : > { %v691_v11 = vmul.f32 %v1118_v10, %v689_v7  ;;  %v752_v12 = vpop.xlane.xlu0 %751  ;;  %vm696_vm7 = vweird.f32 %v1118_v10 }
 0x34c   : > { %v753_v13 = vsub.f32 %v746_v0, %v752_v12  ;;  %vm697_vm9 = vmor %vm695_vm8, %vm696_vm7  ;;  %v1106_v12 = vld [vmem:[%s1446_s7] ss:$0 sm:$0xff] }
 0x34d   : > { %v692_v14 = vsub.f32 1.0, %v691_v11 }
 0x34e   : > { %v754_v16 = vmul.f32 1.442695, %v753_v13 }
 0x34f   : > { %v693_v17 = vmul.f32 %v1118_v10, %v692_v14 }
 0x350   : > { %1119 = vpow2.f32 %v754_v16 }
 0x351   : > { %v694_v18 = vadd.f32 %v1118_v10, %v693_v17 }
 0x353   : > { %v698_v23 = vsel %vm697_vm9, %v1118_v10, %v694_v18 }
 0x354   : > { %v703_v25 = vsel %vm700_vm10, %v702_v24, %v698_v23 }
 0x355   : > { %v704_v28 = vmul.f32 %v1114_v61, %v703_v25 }
 0x356   : > { %v1120_v21 = vpop.eup %1119 }
 0x357   : > { %v756_v22 = vsel %vm520_vm1, %v1120_v21, 0.0  ;;  %v705_v31 = vpack.c.bf16 %v704_v28, %v704_v28 }
 0x358   : > { %757 = vadd.xlane.f32.xlu2 %v756_v22 }
 0x35b   : > { %v638_v26 = vpop.permute.xlu1 %637 }
 0x35c   : > { %v643_v27 = vsel %vm571_vm2, %v638_v26, 0 }
 0x35d   : > { %652 = vmatpush.bf16.msrb.mxu0 %v643_v27 }
 0x35e   : > { %v707_v29 = vpop.permute.xlu0 %706 }
 0x35f   : > { %v712_v30 = vsel %vm571_vm2, %v707_v29, 0 }
 0x360   : > { %721 = vmatpush.bf16.msrb.mxu2 %v712_v30 }
 0x363   : > { %1028 = vmatmul.msk.bf16.vlgmr.msrb.gmra.mxu2 %vm520_vm1, %v705_v31 }
 0x370   : > { %775 = vrot.lane.b32.xlu2 %v1374_v15, %s1229_s19 }
 0x3bb   : > { %v620_v32 = vpop.xlane.xlu2 %619 }
 0x3bc   : > { %1121 = vrcp.f32 %v620_v32  ;;  %v632_v37 = vand.u32 2147483648, %v620_v32  ;;  %v630_v38 = vand.u32 2147483647, %v620_v32  ;;  %vm626_vm12 = vweird.f32 %v620_v32 }
 0x3be   : > { %v633_v40 = vor.u32 1.1754944e-38, %v632_v37  ;;  %vm631_vm14 = vcmp.eq.f32.partialorder %v630_v38, 8.507059e+37  ;;  %v1107_v38 = vld [vmem:[#allocation2] ss:$0 sm:$0xff] }
 0x3c2   : > { %v1122_v33 = vpop.eup %1121 }
 0x3c3   : > { %v622_v34 = vmul.f32 %v1122_v33, %v620_v32  ;;  %vm627_vm11 = vweird.f32 %v1122_v33 }
 0x3c4   : > { %vm628_vm13 = vmor %vm626_vm12, %vm627_vm11 }
 0x3c5   : > { %v623_v35 = vsub.f32 1.0, %v622_v34 }
 0x3c7   : > { %v624_v36 = vmul.f32 %v1122_v33, %v623_v35 }
 0x3c9   : > { %v625_v39 = vadd.f32 %v1122_v33, %v624_v36 }
 0x3cb   : > { %v758_v41 = vpop.xlane.xlu2 %757  ;;  %v629_v42 = vsel %vm628_vm13, %v1122_v33, %v625_v39 }
 0x3cc   : > { %1123 = vrcp.f32 %v758_v41  ;;  %v634_v43 = vsel %vm631_vm14, %v633_v40, %v629_v42  ;;  %v770_v50 = vand.u32 2147483648, %v758_v41  ;;  %v768_v52 = vand.u32 2147483647, %v758_v41  ;;  %v1108_v40 = vld [vmem:[#allocation4] ss:$0 sm:$0xff] }
 0x3cd   : > { %v635_v44 = vmul.f32 %v1116_v8, %v634_v43  ;;  %vm764_vm3 = vweird.f32 %v758_v41  ;;  %1125 = vrcp.f32 %v1233_v19 }
 0x3ce   : > { %v771_v55 = vor.u32 1.1754944e-38, %v770_v50  ;;  %vm769_vm5 = vcmp.eq.f32.partialorder %v768_v52, 8.507059e+37 }
 0x3cf   : > { %v636_v15 = vpack.c.bf16 %v635_v44, %v635_v44 }
 0x3d1   : > { %1026 = vmatmul.msk.bf16.vlgmr.msrb.gmra.mxu0 %vm520_vm1, %v636_v15 }
 0x3d2   : > { %v1124_v45 = vpop.eup %1123 }
 0x3d3   : > { %v760_v46 = vmul.f32 %v1124_v45, %v758_v41  ;;  %v776_v47 = vpop.permute.xlu2 %775  ;;  %vm765_vm15 = vweird.f32 %v1124_v45 }
 0x3d4   : > { %v781_v48 = vsel %vm571_vm2, %v776_v47, 0  ;;  %vm766_vm4 = vmor %vm764_vm3, %vm765_vm15  ;;  %vm809_vm2 = vcmask 130048  }
 0x3d5   : > { %v761_v49 = vsub.f32 1.0, %v760_v46  ;;  %790 = vmatpush.bf16.msra.mxu0 %v781_v48 }
 0x3d7   : > { %v762_v51 = vmul.f32 %v1124_v45, %v761_v49 }
 0x3d9   : > { %v763_v53 = vadd.f32 %v1124_v45, %v762_v51 }
 0x3db   : > { %v767_v56 = vsel %vm766_vm4, %v1124_v45, %v763_v53 }
 0x3dc   : > { %v772_v57 = vsel %vm769_vm5, %v771_v55, %v767_v56 }
 0x3dd   : > { %v773_v58 = vmul.f32 %v1120_v21, %v772_v57 }
 0x3df   : > { %v774_v59 = vpack.c.bf16 %v773_v58, %v773_v58 }
 0x3e1   : > { %1030 = vmatmul.msk.bf16.vlgmr.msra.gmra.mxu0 %vm520_vm1, %v774_v59 }
 0x3e6   : > { %v723_v60 = vpop.f32.mrf.mxu2 }
 0x3e7   : > { %801 = vrot.lane.b32.xlu1 %v723_v60, %s1230_s24 }
 0x3ee   : > { %v725_v61 = vpop.f32.mrf.mxu2 }
 0x44e   : > { %v654_v63 = vpop.f32.mrf.mxu0 }
 0x44f   : > { %797 = vrot.lane.b32.xlu0 %v654_v63, %s1231_s26 }
 0x456   : > { %v656_v0 = vpop.f32.mrf.mxu0 }
 0x459   : > { %v802_v6 = vpop.permute.xlu1 %801 }
 0x45e   : > { %v792_v1 = vpop.f32.mrf.mxu0 }
 0x45f   : > { %805 = vrot.lane.b32.xlu2 %v792_v1, %s1232_s27 }
 0x466   : > { %v794_v2 = vpop.f32.mrf.mxu0 }
 0x4b9   : > { %v806_v8 = vpop.permute.xlu2 %805 }
 0x4c1   : > { %v798_v5 = vpop.permute.xlu0 %797 }
 0x4c2   : > { %v808_v7 = vsel %vm520_vm1, %v1394_v54, %v798_v5  ;;  %v1126_v54 = vpop.eup %1125 }
 0x4c3   : > { %v810_v9 = vsel %vm809_vm2, %v808_v7, %v802_v6  ;;  %v850_v20 = vmul.f32 32.0, %v1126_v54  ;;  %vm854_vm1 = vweird.f32 %v1126_v54 }
 0x4c4   : > { %v812_v10 = vsel %vm811_vm6, %v810_v9, %v806_v8 }
 0x4c5   : > { %v813_v11 = vpack.c.bf16 %v812_v10, %v812_v10  ;;  %v851_v21 = vsub.f32 1.0, %v850_v20 }
 0x4c7   : > { %1039 = vmatmul.msk.bf16.vlgmr.msra.gmra.mxu1 %vm469_vm0, %v813_v11  ;;  %v852_v22 = vmul.f32 %v1126_v54, %v851_v21 }
 0x4c9   : > { %v853_v23 = vadd.f32 %v1126_v54, %v852_v22 }
 0x4cb   : > { %v855_v24 = vsel %vm854_vm1, %v1126_v54, %v853_v23 }
 0x544   : > { %v841_v13 = vpop.f32.mrf.mxu1 }
 0x545   : > { %v842_v14 = vadd.f32 %v1106_v12, %v841_v13 }
 0x547   : > { %v845_v16 = vadd.f32 %v842_v14, %v1362_v4 }
 0x549   : > { %v846_v17 = vsel %vm469_vm0, %v845_v16, 0.0 }
 0x54a   : > { %847 = vadd.xlane.f32.xlu0 %v846_v17 }
 0x54c   : > { %v843_v18 = vpop.f32.mrf.mxu1 }
 0x5bd   : > { %v848_v25 = vpop.xlane.xlu0 %847 }
 0x5be   : > { %v856_v26 = vmul.f32 %v855_v24, %v848_v25 }
 0x5c0   : > { %v857_v27 = vsub.f32 %v845_v16, %v856_v26 }
 0x5c2   : > { %v858_v28 = vmul.f32 %v857_v27, %v857_v27 }
 0x5c4   : > { %v859_v29 = vsel %vm469_vm0, %v858_v28, 0.0 }
 0x5c5   : > { %860 = vadd.xlane.f32.xlu1 %v859_v29 }
 0x638   : > { %v861_v4 = vpop.xlane.xlu1 %860 }
 0x639   : > { %v862_v30 = vmul.f32 %v861_v4, %v855_v24 }
 0x63b   : > { %v863_v31 = vadd.f32 1e-05, %v862_v30 }
 0x63d   : > { %1127 = vrsqrt.f32 %v863_v31  ;;  %vm870_vm8 = vweird.f32 %v863_v31 }
 0x643   : > { %v1128_v32 = vpop.eup %1127 }
 0x644   : > { %v865_v33 = vmul.f32 %v1128_v32, %v863_v31  ;;  %vm871_vm7 = vweird.f32 %v1128_v32 }
 0x645   : > { %vm872_vm9 = vmor %vm870_vm8, %vm871_vm7 }
 0x646   : > { %v866_v34 = vmul.f32 %v1128_v32, %v865_v33 }
 0x648   : > { %v867_v35 = vmul.f32 0.5, %v866_v34 }
 0x64a   : > { %v868_v36 = vsub.f32 1.5, %v867_v35 }
 0x64c   : > { %v869_v37 = vmul.f32 %v1128_v32, %v868_v36 }
 0x64e   : > { %v873_v39 = vsel %vm872_vm9, %v1128_v32, %v869_v37 }
 0x64f   : > { %v874_v41 = vmul.f32 %v873_v39, %v857_v27 }
 0x651   : > { %v878_v42 = vmul.f32 %v1107_v38, %v874_v41 }
 0x653   : > { %v882_v43 = vadd.f32 %v1108_v40, %v878_v42 }
 0x655   : > { %883 = vst.msk [vmem:[%s432_s20] sm:$0xff] %vm469_vm0, %v882_v43 }
 0x656 PF: > { %s22_s15 = sadd.s32 1, %s1219_s15   ;;  %s1452_s13 = smov %s1215_s14 }
 0x657   : > { %p19_p8 = scmp.ge.s32.totalorder %s22_s15, 4   ;;  %s1453_s14 = smov %s1455_s17 }
 0x659   :  { %21 = sbr.rel (!%p19_p8) target bundleno = 3 (0x3), region = 102 }
 0x65e   :  { %909 = vsyncpa [#allocation3], 1 }
 0x65f   :  { %911 = vsyncpa [#allocation3 + $0x1], 1 }
 0x660   :  { %912 = vsyncpa [#allocation5], 1 }

// kernel: transformer_decoder_forward.15
= control target key start
LH: loop header
LB: loop body
LE: loop exit
PB: predicated region body
PF: predicated region fallthrough
CT: control target
= control target key end

     0   :  { %vm19_vm0 = vcmask 261120   ;;  %v95_v1 = vmov 0.0   ;;  %s144_s1 = inlined_call_operand.vmem [shape: bf16[32,32], index: 1, kind: input, shape index: {}]   ;;  %s145_s0 = inlined_call_operand.vmem [shape: f32[16,32], index: 0, kind: input, shape index: {}]   ;;  %s146_s2 = inlined_call_operand.vmem [shape: f32[1,32], index: 2, kind: input, shape index: {}]   ;;  %s147_s3 = inlined_call_operand.vmem [shape: f32[16,32], index: 3, kind: output, shape index: {}]  }
   0x1   :  { %v92_v0 = vld [vmem:[%s144_s1 + $0x8] sm:$0xff]  ;;  %20 = vst.msk [vmem:[#allocation2] sm:$0xff] %vm19_vm0, %v95_v1  ;;  %v91_v2 = vld [vmem:[%s144_s1] sm:$0xff] }
   0x2   :  { %21 = vst.msk [vmem:[#allocation2 + $0x8] sm:$0xff] %vm19_vm0, %v95_v1  ;;  %53 = vmatpush.bf16.msra.mxu0 %v92_v0  ;;  %v24_v3 = vld [vmem:[%s145_s0] sm:$0xff]  ;;  %v25_v4 = vld [vmem:[%s145_s0 + $0x8] sm:$0xff] }
   0x3   :  { %v26_v5 = vpack.c.bf16 %v25_v4, %v24_v3  ;;  %v94_v10 = vld [vmem:[%s146_s2] ss:$0 sm:$0xff] }
   0x6   :  { %54 = vmatpush.bf16.msra.mxu0 %v91_v2 }
   0x8   :  { %v22_v6 = vld [vmem:[#allocation2] sm:$0xff] }
   0x9   :  { %90 = vmatmul.msk.bf16.vlgmr.msra.gmra.mxu0 %vm19_vm0, %v26_v5  ;;  %v23_v9 = vld [vmem:[#allocation2 + $0x8] sm:$0xff] }
  0x86   :  { %v56_v7 = vpop.f32.mrf.mxu0 }
  0x87   :  { %v61_v8 = vadd.f32 %v56_v7, %v22_v6 }
  0x89   :  { %63 = vst.msk [vmem:[#allocation2] sm:$0xff] %vm19_vm0, %v61_v8 }
  0x8e   :  { %v58_v11 = vpop.f32.mrf.mxu0 }
  0x8f   :  { %v62_v12 = vadd.f32 %v58_v11, %v23_v9 }
  0x90   :  { %v68_v13 = vld [vmem:[#allocation2] sm:$0xff] }
  0x91   :  { %v74_v14 = vadd.f32 %v94_v10, %v68_v13  ;;  %64 = vst.msk [vmem:[#allocation2 + $0x8] sm:$0xff] %vm19_vm0, %v62_v12 }
  0x93   :  { %76 = vst.msk [vmem:[%s147_s3] sm:$0xff] %vm19_vm0, %v74_v14 }
  0x98   :  { %v69_v15 = vld [vmem:[#allocation2 + $0x8] sm:$0xff] }
  0x99   :  { %v75_v16 = vadd.f32 %v94_v10, %v69_v15 }
  0x9b   :  { %77 = vst.msk [vmem:[%s147_s3 + $0x8] sm:$0xff] %vm19_vm0, %v75_v16 }

</bundles_post_ra>
